<compile_context>
chip_gen: v7x
topology: tpu7x:2x2x1
jax: 0.10.0
libtpu: 0.0.40
codegen_flags: <defaults>
</compile_context>

<pallas_src>
import jax
import jax.numpy as jnp
from jax.experimental import pallas as pl
from jax.experimental.pallas import tpu as pltpu

LATENT_DIMS = 3
IN_DIM = 28 * 28            # 784
IN_PAD = 896                # 7 * 128 -> lane-dense input/output rows
HID = 512
MS_PAD = 128                # padded width of the fused [mu | log_sigma] head


def vae_kernel(x_ref, eps_ref,
               w1_ref, b1_ref, w23_ref, b23_ref,
               wd1_ref, bd1_ref, wd2_ref, bd2_ref,
               out_ref, kl_ref):
    # ---- encoder linear1 + relu (bf16 operands on the MXU, f32 accumulate) ----
    h = jnp.dot(x_ref[...], w1_ref[...],
                preferred_element_type=jnp.float32) + b1_ref[...]
    h = jnp.maximum(h, 0.0)

    # ---- fused mu / log_sigma projection: one small f32 matmul, then split ----
    ms = jnp.dot(h, w23_ref[...],
                 preferred_element_type=jnp.float32) + b23_ref[...]
    mu = ms[:, 0:LATENT_DIMS]
    log_sigma = ms[:, LATENT_DIMS:2 * LATENT_DIMS]
    sigma = jnp.exp(log_sigma)
    z = mu + sigma * eps_ref[...]                       # reparameterization

    # per-row KL (sum over latent dim); padded batch rows are dropped in the
    # wrapper before the final sum, so they cannot corrupt encoder.kl.
    kl_ref[...] = jnp.sum(sigma * sigma + mu * mu - log_sigma - 0.5,
                          axis=1, keepdims=True)

    # ---- decoder linear1 (K = 3): three broadcast FMAs on the VPU ----
    wd1 = wd1_ref[...]                                  # (LATENT_DIMS, HID)
    h2 = bd1_ref[...] + z[:, 0:1] * wd1[0:1, :]
    for l in range(1, LATENT_DIMS):
        h2 = h2 + z[:, l:l + 1] * wd1[l:l + 1, :]
    h2 = jnp.maximum(h2, 0.0)                           # relu

    # ---- decoder linear2 + sigmoid (bf16 MXU matmul, EUP reciprocal) ----
    logits = jnp.dot(h2.astype(jnp.bfloat16), wd2_ref[...],
                     preferred_element_type=jnp.float32) + bd2_ref[...]
    out_ref[...] = pl.reciprocal(1.0 + jnp.exp(-logits), approx=True)


def _round_up(n, m):
    return (n + m - 1) // m * m


def _build_call(b_pad, tb, buffered_weights):
    """Construct the pallas_call for a padded batch of b_pad rows, tile tb."""
    grid = (b_pad // tb,)
    wkw = dict(pipeline_mode=pl.Buffered(1)) if buffered_weights else {}

    def wspec(shape):
        # grid-invariant operand: constant index map (+ single buffering)
        return pl.BlockSpec(shape, lambda i: (0, 0), **wkw)

    return pl.pallas_call(
        vae_kernel,
        out_shape=(jax.ShapeDtypeStruct((b_pad, IN_PAD), jnp.float32),
                   jax.ShapeDtypeStruct((b_pad, 1), jnp.float32)),
        grid_spec=pltpu.PrefetchScalarGridSpec(
            num_scalar_prefetch=0,
            grid=grid,
            in_specs=[
                pl.BlockSpec((tb, IN_PAD), lambda i: (i, 0)),        # x (bf16)
                pl.BlockSpec((tb, LATENT_DIMS), lambda i: (i, 0)),   # eps
                wspec((IN_PAD, HID)),                                # W1 (bf16)
                wspec((1, HID)),                                     # b1
                wspec((HID, MS_PAD)),                                # [W2 | W3]
                wspec((1, MS_PAD)),                                  # [b2 | b3]
                wspec((LATENT_DIMS, HID)),                           # Wd1
                wspec((1, HID)),                                     # bd1
                wspec((HID, IN_PAD)),                                # Wd2 (bf16)
                wspec((1, IN_PAD)),                                  # bd2
            ],
            out_specs=(
                pl.BlockSpec((tb, IN_PAD), lambda i: (i, 0)),        # recon
                pl.BlockSpec((tb, 1), lambda i: (i, 0)),             # per-row KL
            ),
        ),
        compiler_params=pltpu.CompilerParams(
            dimension_semantics=("parallel",)),
    )


def prepare_kernel_params(params):
    """Pad / fuse / cast torch-layout (in,out) weights into the kernel layout."""
    w1, b1, w2, b2, w3, b3, wd1, bd1, wd2, bd2 = params
    w1k = jnp.pad(w1, ((0, IN_PAD - IN_DIM), (0, 0))).astype(jnp.bfloat16)
    b1k = b1.astype(jnp.float32)
    w23 = jnp.concatenate([w2, w3], axis=1)             # (HID, 2*LATENT)
    w23k = jnp.pad(w23, ((0, 0), (0, MS_PAD - 2 * LATENT_DIMS))).astype(jnp.float32)
    b23 = jnp.concatenate([b2, b3], axis=1)
    b23k = jnp.pad(b23, ((0, 0), (0, MS_PAD - 2 * LATENT_DIMS))).astype(jnp.float32)
    wd1k = wd1.astype(jnp.float32)
    bd1k = bd1.astype(jnp.float32)
    wd2k = jnp.pad(wd2, ((0, 0), (0, IN_PAD - IN_DIM))).astype(jnp.bfloat16)
    bd2k = jnp.pad(bd2, ((0, 0), (0, IN_PAD - IN_DIM))).astype(jnp.float32)
    return (w1k, b1k, w23k, b23k, wd1k, bd1k, wd2k, bd2k)


def vae_forward(x, eps, params, *, tb=256):
    """x: (B, 1, 28, 28) or (B, 1, 784); eps: (B, LATENT_DIMS) N(0,1) noise.

    Returns (reconstruction (B, 1, 784), kl scalar) — kl plays the role of the
    PyTorch module's `encoder.kl` side-effect attribute.
    """
    B = x.shape[0]
    x2 = x.reshape(B, -1).astype(jnp.float32)           # torch.flatten(x, 1)
    assert x2.shape[1] == IN_DIM

    # Batch tiling: keep the tile a multiple of 16 (bf16 sublane packing) and
    # pad the batch up to a tile multiple. tb=256 fills the MXU M dim on
    # v5e/v6e/v7x at realistic batch sizes; tiny batches shrink the tile.
    tb_eff = min(tb, _round_up(B, 16))
    b_pad = _round_up(B, tb_eff)

    x_p = jnp.pad(x2, ((0, b_pad - B), (0, IN_PAD - IN_DIM))).astype(jnp.bfloat16)
    eps_p = jnp.pad(eps.astype(jnp.float32), ((0, b_pad - B), (0, 0)))
    args = (x_p, eps_p) + prepare_kernel_params(params)

    try:
        out_p, kl_rows = _build_call(b_pad, tb_eff, buffered_weights=True)(*args)
    except Exception:
        # Fallback if this Pallas version rejects pipeline_mode on BlockSpec:
        # identical semantics, weights just get default double-buffering.
        out_p, kl_rows = _build_call(b_pad, tb_eff, buffered_weights=False)(*args)

    out = out_p[:B, :IN_DIM]
    kl = jnp.sum(kl_rows[:B, 0])                         # == encoder.kl
    return out.reshape(-1, 1, IN_DIM), kl


def init_params(key):
    """Deterministic params mimicking torch.nn.Linear default init."""
    def linear(k, fan_in, fan_out):
        kw, kb = jax.random.split(k)
        bound = float(fan_in) ** -0.5
        w = jax.random.uniform(kw, (fan_in, fan_out), jnp.float32, -bound, bound)
        b = jax.random.uniform(kb, (1, fan_out), jnp.float32, -bound, bound)
        return w, b
    ks = jax.random.split(key, 5)
    w1, b1 = linear(ks[0], IN_DIM, HID)                  # encoder.linear1
    w2, b2 = linear(ks[1], HID, LATENT_DIMS)             # encoder.linear2 (mu)
    w3, b3 = linear(ks[2], HID, LATENT_DIMS)             # encoder.linear3 (log sigma)
    wd1, bd1 = linear(ks[3], LATENT_DIMS, HID)           # decoder.linear1
    wd2, bd2 = linear(ks[4], HID, IN_DIM)                # decoder.linear2
    return (w1, b1, w2, b2, w3, b3, wd1, bd1, wd2, bd2)


def _reference(x, eps, params):
    """Plain-JAX f32 reference of the same forward pass (sanity check)."""
    w1, b1, w2, b2, w3, b3, wd1, bd1, wd2, bd2 = params
    hp = jax.lax.Precision.HIGHEST
    xf = x.reshape(x.shape[0], -1)
    h = jnp.maximum(jnp.dot(xf, w1, precision=hp) + b1, 0.0)
    mu = jnp.dot(h, w2, precision=hp) + b2
    log_sigma = jnp.dot(h, w3, precision=hp) + b3
    sigma = jnp.exp(log_sigma)
    z = mu + sigma * eps
    kl = jnp.sum(sigma ** 2 + mu ** 2 - log_sigma - 0.5)
    h2 = jnp.maximum(jnp.dot(z, wd1, precision=hp) + bd1, 0.0)
    out = jax.nn.sigmoid(jnp.dot(h2, wd2, precision=hp) + bd2)
    return out.reshape(-1, 1, IN_DIM), kl


if __name__ == "__main__":
    key = jax.random.PRNGKey(0)
    pkey, xkey, ekey = jax.random.split(key, 3)
    params = init_params(pkey)

    # Small batch, deliberately NOT a multiple of the tile, to exercise padding.
    B = 12
    x = jax.random.uniform(xkey, (B, 1, 28, 28), jnp.float32)
    # Deterministic stand-in for torch.distributions.Normal(0,1).sample(mu.shape)
    eps = jax.random.normal(ekey, (B, LATENT_DIMS), jnp.float32)

    out, kl = vae_forward(x, eps, params)
    jax.block_until_ready((out, kl))

    assert out.shape == (B, 1, IN_DIM), out.shape

    ref_out, ref_kl = _reference(x, eps, params)
    max_err = float(jnp.max(jnp.abs(out - ref_out)))
    assert jnp.allclose(out, ref_out, atol=2e-2, rtol=2e-2), max_err
    assert jnp.allclose(kl, ref_kl, atol=0.5, rtol=2e-2), (float(kl), float(ref_kl))

    print("KERNEL_OK")
</pallas_src>

<mosaic_0001>
module attributes {stable_mosaic.version = 11 : i64} {
  func.func @vae_kernel(%arg0: i32, %arg1: memref<16x896xbf16, #tpu.memory_space<vmem>>, %arg2: memref<16x3xf32, #tpu.memory_space<vmem>>, %arg3: memref<896x512xbf16, #tpu.memory_space<vmem>>, %arg4: memref<1x512xf32, #tpu.memory_space<vmem>>, %arg5: memref<512x128xf32, #tpu.memory_space<vmem>>, %arg6: memref<1x128xf32, #tpu.memory_space<vmem>>, %arg7: memref<3x512xf32, #tpu.memory_space<vmem>>, %arg8: memref<1x512xf32, #tpu.memory_space<vmem>>, %arg9: memref<512x896xbf16, #tpu.memory_space<vmem>>, %arg10: memref<1x896xf32, #tpu.memory_space<vmem>>, %arg11: memref<16x896xf32, #tpu.memory_space<vmem>>, %arg12: memref<16x1xf32, #tpu.memory_space<vmem>>) attributes {dimension_semantics = [#tpu.dimension_semantics<parallel>], iteration_bounds = array<i64: 1>, scalar_prefetch = 0 : i64, scratch_operands = 0 : i64, tpu.core_type = #tpu.core_type<tc>, window_params = [{transform_indices = @transform_0, window_bounds = array<i64: 16, 896>}, {transform_indices = @transform_1, window_bounds = array<i64: 16, 3>}, {pipeline_mode = #tpu.pipeline_mode<synchronous>, transform_indices = @transform_2, window_bounds = array<i64: 896, 512>}, {pipeline_mode = #tpu.pipeline_mode<synchronous>, transform_indices = @transform_3, window_bounds = array<i64: 1, 512>}, {pipeline_mode = #tpu.pipeline_mode<synchronous>, transform_indices = @transform_4, window_bounds = array<i64: 512, 128>}, {pipeline_mode = #tpu.pipeline_mode<synchronous>, transform_indices = @transform_5, window_bounds = array<i64: 1, 128>}, {pipeline_mode = #tpu.pipeline_mode<synchronous>, transform_indices = @transform_6, window_bounds = array<i64: 3, 512>}, {pipeline_mode = #tpu.pipeline_mode<synchronous>, transform_indices = @transform_7, window_bounds = array<i64: 1, 512>}, {pipeline_mode = #tpu.pipeline_mode<synchronous>, transform_indices = @transform_8, window_bounds = array<i64: 512, 896>}, {pipeline_mode = #tpu.pipeline_mode<synchronous>, transform_indices = @transform_9, window_bounds = array<i64: 1, 896>}, {transform_indices = @transform_10, window_bounds = array<i64: 16, 896>}, {transform_indices = @transform_11, window_bounds = array<i64: 16, 1>}]} {
    %c0 = arith.constant 0 : index
    %c0_0 = arith.constant 0 : index
    %0 = vector.load %arg1[%c0, %c0_0] : memref<16x896xbf16, #tpu.memory_space<vmem>>, vector<16x896xbf16>
    %c0_1 = arith.constant 0 : index
    %c0_2 = arith.constant 0 : index
    %1 = vector.load %arg3[%c0_1, %c0_2] : memref<896x512xbf16, #tpu.memory_space<vmem>>, vector<896x512xbf16>
    %cst = arith.constant dense<0.000000e+00> : vector<16x512xf32>
    %2 = tpu.matmul %0, %1, %cst {dimension_numbers = #tpu.dot_dimension_numbers<[1], [0], [0], [1], [0, 0, 1, 1], [], []>} : vector<16x896xbf16>, vector<896x512xbf16>, vector<16x512xf32> -> vector<16x512xf32>
    %c0_3 = arith.constant 0 : index
    %c0_4 = arith.constant 0 : index
    %3 = vector.load %arg4[%c0_3, %c0_4] : memref<1x512xf32, #tpu.memory_space<vmem>>, vector<1x512xf32>
    %4 = vector.broadcast %3 : vector<1x512xf32> to vector<16x512xf32>
    %5 = arith.addf %2, %4 : vector<16x512xf32>
    %cst_5 = arith.constant 0.000000e+00 : f32
    %6 = vector.broadcast %cst_5 : f32 to vector<16x512xf32>
    %7 = arith.maximumf %5, %6 : vector<16x512xf32>
    %c0_6 = arith.constant 0 : index
    %c0_7 = arith.constant 0 : index
    %8 = vector.load %arg5[%c0_6, %c0_7] : memref<512x128xf32, #tpu.memory_space<vmem>>, vector<512x128xf32>
    %cst_8 = arith.constant dense<0.000000e+00> : vector<16x128xf32>
    %9 = tpu.matmul %7, %8, %cst_8 {dimension_numbers = #tpu.dot_dimension_numbers<[1], [0], [0], [1], [0, 0, 1, 1], [], []>} : vector<16x512xf32>, vector<512x128xf32>, vector<16x128xf32> -> vector<16x128xf32>
    %c0_9 = arith.constant 0 : index
    %c0_10 = arith.constant 0 : index
    %10 = vector.load %arg6[%c0_9, %c0_10] : memref<1x128xf32, #tpu.memory_space<vmem>>, vector<1x128xf32>
    %11 = vector.broadcast %10 : vector<1x128xf32> to vector<16x128xf32>
    %12 = arith.addf %9, %11 : vector<16x128xf32>
    %13 = vector.extract_strided_slice %12 {offsets = [0, 0], sizes = [16, 3], strides = [1, 1]} : vector<16x128xf32> to vector<16x3xf32>
    %14 = vector.extract_strided_slice %12 {offsets = [0, 3], sizes = [16, 3], strides = [1, 1]} : vector<16x128xf32> to vector<16x3xf32>
    %15 = math.exp %14 : vector<16x3xf32>
    %c0_11 = arith.constant 0 : index
    %c0_12 = arith.constant 0 : index
    %16 = vector.load %arg2[%c0_11, %c0_12] : memref<16x3xf32, #tpu.memory_space<vmem>>, vector<16x3xf32>
    %17 = arith.mulf %15, %16 : vector<16x3xf32>
    %18 = arith.addf %13, %17 : vector<16x3xf32>
    %19 = arith.mulf %15, %15 : vector<16x3xf32>
    %20 = arith.mulf %13, %13 : vector<16x3xf32>
    %21 = arith.addf %19, %20 : vector<16x3xf32>
    %22 = arith.subf %21, %14 : vector<16x3xf32>
    %cst_13 = arith.constant 5.000000e-01 : f32
    %23 = vector.broadcast %cst_13 : f32 to vector<16x3xf32>
    %24 = arith.subf %22, %23 : vector<16x3xf32>
    %cst_14 = arith.constant dense<0.000000e+00> : vector<16xf32>
    %25 = vector.multi_reduction <add>, %24, %cst_14 [1] : vector<16x3xf32> to vector<16xf32>
    %26 = vector.shape_cast %25 : vector<16xf32> to vector<16x1xf32>
    %c0_15 = arith.constant 0 : index
    %c0_16 = arith.constant 0 : index
    %27 = vector.load %arg12[%c0_15, %c0_16] : memref<16x1xf32, #tpu.memory_space<vmem>>, vector<16x1xf32>
    tpu.vector_store %arg12[%c0_15, %c0_16], %26 {strides = array<i32>} : memref<16x1xf32, #tpu.memory_space<vmem>>, vector<16x1xf32>,
    %c0_17 = arith.constant 0 : index
    %c0_18 = arith.constant 0 : index
    %28 = vector.load %arg7[%c0_17, %c0_18] : memref<3x512xf32, #tpu.memory_space<vmem>>, vector<3x512xf32>
    %c0_19 = arith.constant 0 : index
    %c0_20 = arith.constant 0 : index
    %29 = vector.load %arg8[%c0_19, %c0_20] : memref<1x512xf32, #tpu.memory_space<vmem>>, vector<1x512xf32>
    %30 = vector.extract_strided_slice %18 {offsets = [0, 0], sizes = [16, 1], strides = [1, 1]} : vector<16x3xf32> to vector<16x1xf32>
    %31 = vector.extract_strided_slice %28 {offsets = [0, 0], sizes = [1, 512], strides = [1, 1]} : vector<3x512xf32> to vector<1x512xf32>
    %32 = vector.broadcast %30 : vector<16x1xf32> to vector<16x512xf32>
    %33 = vector.broadcast %31 : vector<1x512xf32> to vector<16x512xf32>
    %34 = arith.mulf %32, %33 : vector<16x512xf32>
    %35 = vector.broadcast %29 : vector<1x512xf32> to vector<16x512xf32>
    %36 = arith.addf %35, %34 : vector<16x512xf32>
    %37 = vector.extract_strided_slice %18 {offsets = [0, 1], sizes = [16, 1], strides = [1, 1]} : vector<16x3xf32> to vector<16x1xf32>
    %38 = vector.extract_strided_slice %28 {offsets = [1, 0], sizes = [1, 512], strides = [1, 1]} : vector<3x512xf32> to vector<1x512xf32>
    %39 = vector.broadcast %37 : vector<16x1xf32> to vector<16x512xf32>
    %40 = vector.broadcast %38 : vector<1x512xf32> to vector<16x512xf32>
    %41 = arith.mulf %39, %40 : vector<16x512xf32>
    %42 = arith.addf %36, %41 : vector<16x512xf32>
    %43 = vector.extract_strided_slice %18 {offsets = [0, 2], sizes = [16, 1], strides = [1, 1]} : vector<16x3xf32> to vector<16x1xf32>
    %44 = vector.extract_strided_slice %28 {offsets = [2, 0], sizes = [1, 512], strides = [1, 1]} : vector<3x512xf32> to vector<1x512xf32>
    %45 = vector.broadcast %43 : vector<16x1xf32> to vector<16x512xf32>
    %46 = vector.broadcast %44 : vector<1x512xf32> to vector<16x512xf32>
    %47 = arith.mulf %45, %46 : vector<16x512xf32>
    %48 = arith.addf %42, %47 : vector<16x512xf32>
    %cst_21 = arith.constant 0.000000e+00 : f32
    %49 = vector.broadcast %cst_21 : f32 to vector<16x512xf32>
    %50 = arith.maximumf %48, %49 : vector<16x512xf32>
    %51 = arith.truncf %50 : vector<16x512xf32> to vector<16x512xbf16>
    %c0_22 = arith.constant 0 : index
    %c0_23 = arith.constant 0 : index
    %52 = vector.load %arg9[%c0_22, %c0_23] : memref<512x896xbf16, #tpu.memory_space<vmem>>, vector<512x896xbf16>
    %cst_24 = arith.constant dense<0.000000e+00> : vector<16x896xf32>
    %53 = tpu.matmul %51, %52, %cst_24 {dimension_numbers = #tpu.dot_dimension_numbers<[1], [0], [0], [1], [0, 0, 1, 1], [], []>} : vector<16x512xbf16>, vector<512x896xbf16>, vector<16x896xf32> -> vector<16x896xf32>
    %c0_25 = arith.constant 0 : index
    %c0_26 = arith.constant 0 : index
    %54 = vector.load %arg10[%c0_25, %c0_26] : memref<1x896xf32, #tpu.memory_space<vmem>>, vector<1x896xf32>
    %55 = vector.broadcast %54 : vector<1x896xf32> to vector<16x896xf32>
    %56 = arith.addf %53, %55 : vector<16x896xf32>
    %cst_27 = arith.constant 0.000000e+00 : f32
    %57 = vector.broadcast %cst_27 : f32 to vector<16x896xf32>
    %58 = arith.subf %57, %56 : vector<16x896xf32>
    %59 = math.exp %58 : vector<16x896xf32>
    %cst_28 = arith.constant 1.000000e+00 : f32
    %60 = vector.broadcast %cst_28 : f32 to vector<16x896xf32>
    %61 = arith.addf %60, %59 : vector<16x896xf32>
    %62 = tpu.reciprocal %61 {approx = true} : vector<16x896xf32> -> vector<16x896xf32>
    %c0_29 = arith.constant 0 : index
    %c0_30 = arith.constant 0 : index
    %63 = vector.load %arg11[%c0_29, %c0_30] : memref<16x896xf32, #tpu.memory_space<vmem>>, vector<16x896xf32>
    tpu.vector_store %arg11[%c0_29, %c0_30], %62 {strides = array<i32>} : memref<16x896xf32, #tpu.memory_space<vmem>>, vector<16x896xf32>,
    return
  }
  func.func @transform_0(%arg0: i32) -> (i32, i32) {
    %c0_i32 = arith.constant 0 : i32
    %c0_i32_0 = arith.constant 0 : i32
    return %arg0, %c0_i32 : i32, i32
  }
  func.func @transform_1(%arg0: i32) -> (i32, i32) {
    %c0_i32 = arith.constant 0 : i32
    %c0_i32_0 = arith.constant 0 : i32
    return %arg0, %c0_i32 : i32, i32
  }
  func.func @transform_2(%arg0: i32) -> (i32, i32) {
    %c0_i32 = arith.constant 0 : i32
    %c0_i32_0 = arith.constant 0 : i32
    %c0_i32_1 = arith.constant 0 : i32
    return %c0_i32, %c0_i32_0 : i32, i32
  }
  func.func @transform_3(%arg0: i32) -> (i32, i32) {
    %c0_i32 = arith.constant 0 : i32
    %c0_i32_0 = arith.constant 0 : i32
    %c0_i32_1 = arith.constant 0 : i32
    return %c0_i32, %c0_i32_0 : i32, i32
  }
  func.func @transform_4(%arg0: i32) -> (i32, i32) {
    %c0_i32 = arith.constant 0 : i32
    %c0_i32_0 = arith.constant 0 : i32
    %c0_i32_1 = arith.constant 0 : i32
    return %c0_i32, %c0_i32_0 : i32, i32
  }
  func.func @transform_5(%arg0: i32) -> (i32, i32) {
    %c0_i32 = arith.constant 0 : i32
    %c0_i32_0 = arith.constant 0 : i32
    %c0_i32_1 = arith.constant 0 : i32
    return %c0_i32, %c0_i32_0 : i32, i32
  }
  func.func @transform_6(%arg0: i32) -> (i32, i32) {
    %c0_i32 = arith.constant 0 : i32
    %c0_i32_0 = arith.constant 0 : i32
    %c0_i32_1 = arith.constant 0 : i32
    return %c0_i32, %c0_i32_0 : i32, i32
  }
  func.func @transform_7(%arg0: i32) -> (i32, i32) {
    %c0_i32 = arith.constant 0 : i32
    %c0_i32_0 = arith.constant 0 : i32
    %c0_i32_1 = arith.constant 0 : i32
    return %c0_i32, %c0_i32_0 : i32, i32
  }
  func.func @transform_8(%arg0: i32) -> (i32, i32) {
    %c0_i32 = arith.constant 0 : i32
    %c0_i32_0 = arith.constant 0 : i32
    %c0_i32_1 = arith.constant 0 : i32
    return %c0_i32, %c0_i32_0 : i32, i32
  }
  func.func @transform_9(%arg0: i32) -> (i32, i32) {
    %c0_i32 = arith.constant 0 : i32
    %c0_i32_0 = arith.constant 0 : i32
    %c0_i32_1 = arith.constant 0 : i32
    return %c0_i32, %c0_i32_0 : i32, i32
  }
  func.func @transform_10(%arg0: i32) -> (i32, i32) {
    %c0_i32 = arith.constant 0 : i32
    %c0_i32_0 = arith.constant 0 : i32
    return %arg0, %c0_i32 : i32, i32
  }
  func.func @transform_11(%arg0: i32) -> (i32, i32) {
    %c0_i32 = arith.constant 0 : i32
    %c0_i32_0 = arith.constant 0 : i32
    return %arg0, %c0_i32 : i32, i32
  }
}

module attributes {stable_mosaic.version = 11 : i64} {
  func.func @vae_kernel(%arg0: i32, %arg1: memref<16x896xbf16, #tpu.memory_space<vmem>>, %arg2: memref<16x3xf32, #tpu.memory_space<vmem>>, %arg3: memref<896x512xbf16, #tpu.memory_space<vmem>>, %arg4: memref<1x512xf32, #tpu.memory_space<vmem>>, %arg5: memref<512x128xf32, #tpu.memory_space<vmem>>, %arg6: memref<1x128xf32, #tpu.memory_space<vmem>>, %arg7: memref<3x512xf32, #tpu.memory_space<vmem>>, %arg8: memref<1x512xf32, #tpu.memory_space<vmem>>, %arg9: memref<512x896xbf16, #tpu.memory_space<vmem>>, %arg10: memref<1x896xf32, #tpu.memory_space<vmem>>, %arg11: memref<16x896xf32, #tpu.memory_space<vmem>>, %arg12: memref<16x1xf32, #tpu.memory_space<vmem>>) attributes {dimension_semantics = [#tpu.dimension_semantics<parallel>], iteration_bounds = array<i64: 1>, scalar_prefetch = 0 : i64, scratch_operands = 0 : i64, tpu.core_type = #tpu.core_type<tc>, window_params = [{transform_indices = @transform_0, window_bounds = array<i64: 16, 896>}, {transform_indices = @transform_1, window_bounds = array<i64: 16, 3>}, {pipeline_mode = #tpu.pipeline_mode<synchronous>, transform_indices = @transform_2, window_bounds = array<i64: 896, 512>}, {pipeline_mode = #tpu.pipeline_mode<synchronous>, transform_indices = @transform_3, window_bounds = array<i64: 1, 512>}, {pipeline_mode = #tpu.pipeline_mode<synchronous>, transform_indices = @transform_4, window_bounds = array<i64: 512, 128>}, {pipeline_mode = #tpu.pipeline_mode<synchronous>, transform_indices = @transform_5, window_bounds = array<i64: 1, 128>}, {pipeline_mode = #tpu.pipeline_mode<synchronous>, transform_indices = @transform_6, window_bounds = array<i64: 3, 512>}, {pipeline_mode = #tpu.pipeline_mode<synchronous>, transform_indices = @transform_7, window_bounds = array<i64: 1, 512>}, {pipeline_mode = #tpu.pipeline_mode<synchronous>, transform_indices = @transform_8, window_bounds = array<i64: 512, 896>}, {pipeline_mode = #tpu.pipeline_mode<synchronous>, transform_indices = @transform_9, window_bounds = array<i64: 1, 896>}, {transform_indices = @transform_10, window_bounds = array<i64: 16, 896>}, {transform_indices = @transform_11, window_bounds = array<i64: 16, 1>}]} {
    %c0 = arith.constant 0 : index
    %c0_0 = arith.constant 0 : index
    %0 = vector.load %arg1[%c0, %c0_0] : memref<16x896xbf16, #tpu.memory_space<vmem>>, vector<16x896xbf16>
    %c0_1 = arith.constant 0 : index
    %c0_2 = arith.constant 0 : index
    %1 = vector.load %arg3[%c0_1, %c0_2] : memref<896x512xbf16, #tpu.memory_space<vmem>>, vector<896x512xbf16>
    %cst = arith.constant dense<0.000000e+00> : vector<16x512xf32>
    %2 = tpu.matmul %0, %1, %cst {dimension_numbers = #tpu.dot_dimension_numbers<[1], [0], [0], [1], [0, 0, 1, 1], [], []>} : vector<16x896xbf16>, vector<896x512xbf16>, vector<16x512xf32> -> vector<16x512xf32>
    %c0_3 = arith.constant 0 : index
    %c0_4 = arith.constant 0 : index
    %3 = vector.load %arg4[%c0_3, %c0_4] : memref<1x512xf32, #tpu.memory_space<vmem>>, vector<1x512xf32>
    %4 = vector.broadcast %3 : vector<1x512xf32> to vector<16x512xf32>
    %5 = arith.addf %2, %4 : vector<16x512xf32>
    %cst_5 = arith.constant 0.000000e+00 : f32
    %6 = vector.broadcast %cst_5 : f32 to vector<16x512xf32>
    %7 = arith.maximumf %5, %6 : vector<16x512xf32>
    %c0_6 = arith.constant 0 : index
    %c0_7 = arith.constant 0 : index
    %8 = vector.load %arg5[%c0_6, %c0_7] : memref<512x128xf32, #tpu.memory_space<vmem>>, vector<512x128xf32>
    %cst_8 = arith.constant dense<0.000000e+00> : vector<16x128xf32>
    %9 = tpu.matmul %7, %8, %cst_8 {dimension_numbers = #tpu.dot_dimension_numbers<[1], [0], [0], [1], [0, 0, 1, 1], [], []>} : vector<16x512xf32>, vector<512x128xf32>, vector<16x128xf32> -> vector<16x128xf32>
    %c0_9 = arith.constant 0 : index
    %c0_10 = arith.constant 0 : index
    %10 = vector.load %arg6[%c0_9, %c0_10] : memref<1x128xf32, #tpu.memory_space<vmem>>, vector<1x128xf32>
    %11 = vector.broadcast %10 : vector<1x128xf32> to vector<16x128xf32>
    %12 = arith.addf %9, %11 : vector<16x128xf32>
    %13 = vector.extract_strided_slice %12 {offsets = [0, 0], sizes = [16, 3], strides = [1, 1]} : vector<16x128xf32> to vector<16x3xf32>
    %14 = vector.extract_strided_slice %12 {offsets = [0, 3], sizes = [16, 3], strides = [1, 1]} : vector<16x128xf32> to vector<16x3xf32>
    %15 = math.exp %14 : vector<16x3xf32>
    %c0_11 = arith.constant 0 : index
    %c0_12 = arith.constant 0 : index
    %16 = vector.load %arg2[%c0_11, %c0_12] : memref<16x3xf32, #tpu.memory_space<vmem>>, vector<16x3xf32>
    %17 = arith.mulf %15, %16 : vector<16x3xf32>
    %18 = arith.addf %13, %17 : vector<16x3xf32>
    %19 = arith.mulf %15, %15 : vector<16x3xf32>
    %20 = arith.mulf %13, %13 : vector<16x3xf32>
    %21 = arith.addf %19, %20 : vector<16x3xf32>
    %22 = arith.subf %21, %14 : vector<16x3xf32>
    %cst_13 = arith.constant 5.000000e-01 : f32
    %23 = vector.broadcast %cst_13 : f32 to vector<16x3xf32>
    %24 = arith.subf %22, %23 : vector<16x3xf32>
    %cst_14 = arith.constant dense<0.000000e+00> : vector<16xf32>
    %25 = vector.multi_reduction <add>, %24, %cst_14 [1] : vector<16x3xf32> to vector<16xf32>
    %26 = vector.shape_cast %25 : vector<16xf32> to vector<16x1xf32>
    %c0_15 = arith.constant 0 : index
    %c0_16 = arith.constant 0 : index
    %27 = vector.load %arg12[%c0_15, %c0_16] : memref<16x1xf32, #tpu.memory_space<vmem>>, vector<16x1xf32>
    tpu.vector_store %arg12[%c0_15, %c0_16], %26 {strides = array<i32>} : memref<16x1xf32, #tpu.memory_space<vmem>>, vector<16x1xf32>,
    %c0_17 = arith.constant 0 : index
    %c0_18 = arith.constant 0 : index
    %28 = vector.load %arg7[%c0_17, %c0_18] : memref<3x512xf32, #tpu.memory_space<vmem>>, vector<3x512xf32>
    %c0_19 = arith.constant 0 : index
    %c0_20 = arith.constant 0 : index
    %29 = vector.load %arg8[%c0_19, %c0_20] : memref<1x512xf32, #tpu.memory_space<vmem>>, vector<1x512xf32>
    %30 = vector.extract_strided_slice %18 {offsets = [0, 0], sizes = [16, 1], strides = [1, 1]} : vector<16x3xf32> to vector<16x1xf32>
    %31 = vector.extract_strided_slice %28 {offsets = [0, 0], sizes = [1, 512], strides = [1, 1]} : vector<3x512xf32> to vector<1x512xf32>
    %32 = vector.broadcast %30 : vector<16x1xf32> to vector<16x512xf32>
    %33 = vector.broadcast %31 : vector<1x512xf32> to vector<16x512xf32>
    %34 = arith.mulf %32, %33 : vector<16x512xf32>
    %35 = vector.broadcast %29 : vector<1x512xf32> to vector<16x512xf32>
    %36 = arith.addf %35, %34 : vector<16x512xf32>
    %37 = vector.extract_strided_slice %18 {offsets = [0, 1], sizes = [16, 1], strides = [1, 1]} : vector<16x3xf32> to vector<16x1xf32>
    %38 = vector.extract_strided_slice %28 {offsets = [1, 0], sizes = [1, 512], strides = [1, 1]} : vector<3x512xf32> to vector<1x512xf32>
    %39 = vector.broadcast %37 : vector<16x1xf32> to vector<16x512xf32>
    %40 = vector.broadcast %38 : vector<1x512xf32> to vector<16x512xf32>
    %41 = arith.mulf %39, %40 : vector<16x512xf32>
    %42 = arith.addf %36, %41 : vector<16x512xf32>
    %43 = vector.extract_strided_slice %18 {offsets = [0, 2], sizes = [16, 1], strides = [1, 1]} : vector<16x3xf32> to vector<16x1xf32>
    %44 = vector.extract_strided_slice %28 {offsets = [2, 0], sizes = [1, 512], strides = [1, 1]} : vector<3x512xf32> to vector<1x512xf32>
    %45 = vector.broadcast %43 : vector<16x1xf32> to vector<16x512xf32>
    %46 = vector.broadcast %44 : vector<1x512xf32> to vector<16x512xf32>
    %47 = arith.mulf %45, %46 : vector<16x512xf32>
    %48 = arith.addf %42, %47 : vector<16x512xf32>
    %cst_21 = arith.constant 0.000000e+00 : f32
    %49 = vector.broadcast %cst_21 : f32 to vector<16x512xf32>
    %50 = arith.maximumf %48, %49 : vector<16x512xf32>
    %51 = arith.truncf %50 : vector<16x512xf32> to vector<16x512xbf16>
    %c0_22 = arith.constant 0 : index
    %c0_23 = arith.constant 0 : index
    %52 = vector.load %arg9[%c0_22, %c0_23] : memref<512x896xbf16, #tpu.memory_space<vmem>>, vector<512x896xbf16>
    %cst_24 = arith.constant dense<0.000000e+00> : vector<16x896xf32>
    %53 = tpu.matmul %51, %52, %cst_24 {dimension_numbers = #tpu.dot_dimension_numbers<[1], [0], [0], [1], [0, 0, 1, 1], [], []>} : vector<16x512xbf16>, vector<512x896xbf16>, vector<16x896xf32> -> vector<16x896xf32>
    %c0_25 = arith.constant 0 : index
    %c0_26 = arith.constant 0 : index
    %54 = vector.load %arg10[%c0_25, %c0_26] : memref<1x896xf32, #tpu.memory_space<vmem>>, vector<1x896xf32>
    %55 = vector.broadcast %54 : vector<1x896xf32> to vector<16x896xf32>
    %56 = arith.addf %53, %55 : vector<16x896xf32>
    %cst_27 = arith.constant 0.000000e+00 : f32
    %57 = vector.broadcast %cst_27 : f32 to vector<16x896xf32>
    %58 = arith.subf %57, %56 : vector<16x896xf32>
    %59 = math.exp %58 : vector<16x896xf32>
    %cst_28 = arith.constant 1.000000e+00 : f32
    %60 = vector.broadcast %cst_28 : f32 to vector<16x896xf32>
    %61 = arith.addf %60, %59 : vector<16x896xf32>
    %62 = tpu.reciprocal %61 {approx = true} : vector<16x896xf32> -> vector<16x896xf32>
    %c0_29 = arith.constant 0 : index
    %c0_30 = arith.constant 0 : index
    %63 = vector.load %arg11[%c0_29, %c0_30] : memref<16x896xf32, #tpu.memory_space<vmem>>, vector<16x896xf32>
    tpu.vector_store %arg11[%c0_29, %c0_30], %62 {strides = array<i32>} : memref<16x896xf32, #tpu.memory_space<vmem>>, vector<16x896xf32>,
    return
  }
  func.func @transform_0(%arg0: i32) -> (i32, i32) {
    %c0_i32 = arith.constant 0 : i32
    %c0_i32_0 = arith.constant 0 : i32
    return %arg0, %c0_i32 : i32, i32
  }
  func.func @transform_1(%arg0: i32) -> (i32, i32) {
    %c0_i32 = arith.constant 0 : i32
    %c0_i32_0 = arith.constant 0 : i32
    return %arg0, %c0_i32 : i32, i32
  }
  func.func @transform_2(%arg0: i32) -> (i32, i32) {
    %c0_i32 = arith.constant 0 : i32
    %c0_i32_0 = arith.constant 0 : i32
    %c0_i32_1 = arith.constant 0 : i32
    return %c0_i32, %c0_i32_0 : i32, i32
  }
  func.func @transform_3(%arg0: i32) -> (i32, i32) {
    %c0_i32 = arith.constant 0 : i32
    %c0_i32_0 = arith.constant 0 : i32
    %c0_i32_1 = arith.constant 0 : i32
    return %c0_i32, %c0_i32_0 : i32, i32
  }
  func.func @transform_4(%arg0: i32) -> (i32, i32) {
    %c0_i32 = arith.constant 0 : i32
    %c0_i32_0 = arith.constant 0 : i32
    %c0_i32_1 = arith.constant 0 : i32
    return %c0_i32, %c0_i32_0 : i32, i32
  }
  func.func @transform_5(%arg0: i32) -> (i32, i32) {
    %c0_i32 = arith.constant 0 : i32
    %c0_i32_0 = arith.constant 0 : i32
    %c0_i32_1 = arith.constant 0 : i32
    return %c0_i32, %c0_i32_0 : i32, i32
  }
  func.func @transform_6(%arg0: i32) -> (i32, i32) {
    %c0_i32 = arith.constant 0 : i32
    %c0_i32_0 = arith.constant 0 : i32
    %c0_i32_1 = arith.constant 0 : i32
    return %c0_i32, %c0_i32_0 : i32, i32
  }
  func.func @transform_7(%arg0: i32) -> (i32, i32) {
    %c0_i32 = arith.constant 0 : i32
    %c0_i32_0 = arith.constant 0 : i32
    %c0_i32_1 = arith.constant 0 : i32
    return %c0_i32, %c0_i32_0 : i32, i32
  }
  func.func @transform_8(%arg0: i32) -> (i32, i32) {
    %c0_i32 = arith.constant 0 : i32
    %c0_i32_0 = arith.constant 0 : i32
    %c0_i32_1 = arith.constant 0 : i32
    return %c0_i32, %c0_i32_0 : i32, i32
  }
  func.func @transform_9(%arg0: i32) -> (i32, i32) {
    %c0_i32 = arith.constant 0 : i32
    %c0_i32_0 = arith.constant 0 : i32
    %c0_i32_1 = arith.constant 0 : i32
    return %c0_i32, %c0_i32_0 : i32, i32
  }
  func.func @transform_10(%arg0: i32) -> (i32, i32) {
    %c0_i32 = arith.constant 0 : i32
    %c0_i32_0 = arith.constant 0 : i32
    return %arg0, %c0_i32 : i32, i32
  }
  func.func @transform_11(%arg0: i32) -> (i32, i32) {
    %c0_i32 = arith.constant 0 : i32
    %c0_i32_0 = arith.constant 0 : i32
    return %arg0, %c0_i32 : i32, i32
  }
}

</mosaic_0001>

<bundles_post_ra>
// kernel: tpu_custom_call.1
= control target key start
LH: loop header
LB: loop body
LE: loop exit
PB: predicated region body
PF: predicated region fallthrough
CT: control target
= control target key end

     0   :  { %17 = vsyncpa [#allocation3], 0  ;;  %s6155_s0 = inlined_call_operand.hbm [shape: bf16[16,896], index: 0, kind: input, shape index: {}]   ;;  %s6156_s1 = inlined_call_operand.vmem [shape: f32[16,3], index: 1, kind: input, shape index: {}]   ;;  %s6157_s2 = inlined_call_operand.hbm [shape: bf16[896,512], index: 2, kind: input, shape index: {}]   ;;  %s6158_s3 = inlined_call_operand.vmem [shape: f32[1,512], index: 3, kind: input, shape index: {}]   ;;  %s6159_s4 = inlined_call_operand.hbm [shape: f32[512,128], index: 4, kind: input, shape index: {}]   ;;  %s6160_s5 = inlined_call_operand.vmem [shape: f32[1,128], index: 5, kind: input, shape index: {}]   ;;  %s6161_s6 = inlined_call_operand.vmem [shape: f32[3,512], index: 6, kind: input, shape index: {}]   ;;  %s6162_s7 = inlined_call_operand.vmem [shape: f32[1,512], index: 7, kind: input, shape index: {}]   ;;  %s6163_s8 = inlined_call_operand.hbm [shape: bf16[512,896], index: 8, kind: input, shape index: {}]   ;;  %s6164_s9 = inlined_call_operand.vmem [shape: f32[1,896], index: 9, kind: input, shape index: {}]   ;;  %s6165_s10 = inlined_call_operand.hbm [shape: f32[16,896], index: 10, kind: output, shape index: {0}]   ;;  %s6166_s11 = inlined_call_operand.vmem [shape: f32[16,1], index: 11, kind: output, shape index: {1}]  }
   0x1   :  { %18 = vsyncpa [#allocation6], 0 }
   0x2   :  { %19 = vsyncpa [#allocation9], 0 }
   0x3   :  { %20 = vsyncpa [#allocation4], 0  ;;  %s5818_s17 = smov [#allocation5]   ;;  %s5700_s21 = scalar_lea.hbm %s6157_s2, 28672 }
   0x4   :  { %s40_s18 = sshll.u32 %s5818_s17, 4  ;;  %p5701_p0 = scmp.ne.s32.totalorder %s6157_s2, %s5700_s21  ;;  %s41_s18 = int_to_ptr.vmem [resolvable:$true] %s40_s18 }
   0x5   :  { %p5704_p1 = scmp.lt.u32.totalorder %s5700_s21, %s6157_s2 }
   0x7   :  { %p5706_p2 = pnand %p5704_p1, %p5701_p0 }
   0x9   :  { %5709 = shalt.err (!%p5706_p2)
}
   0xa   :  { %s5710_s26 = scalar_lea.vmem %s41_s18, 28672  ;;  %p5715_p4 = scmp.lt.s32.totalorder %s41_s18, %s41_s18 }
   0xb   :  { %p5711_p3 = scmp.ne.s32.totalorder %s41_s18, %s5710_s26  ;;  %p5716_p5 = scmp.lt.s32.totalorder %s5710_s26, %s5710_s26 }
   0xd   :  { %p5717_p6 = por %p5716_p5, %p5715_p4 }
   0xf   :  { %p5718_p7 = pnand %p5717_p6, %p5711_p3 }
  0x11   :  { %5721 = shalt.err (!%p5718_p7)
}
  0x12   :  { %s5819_s27 = smov 256   ;;  %s5820_s28 = smov 16  }
  0x13   :  { %46 = dma.hbm_to_vmem [thread:$0]  %s6157_s2, 28672, %s41_s18, [#allocation6], %s5819_s27, %s5819_s27, %s5820_s28  }
  0x14   :  { %s5821_s12 = smov [#allocation2]   ;;  %s5722_s16 = scalar_lea.hbm %s6155_s0, 896 }
  0x15   :  { %s26_s13 = sshll.u32 %s5821_s12, 4  ;;  %p5723_p8 = scmp.ne.s32.totalorder %s6155_s0, %s5722_s16  ;;  %s27_s13 = int_to_ptr.vmem [resolvable:$true] %s26_s13 }
  0x16   :  { %p5726_p9 = scmp.lt.u32.totalorder %s5722_s16, %s6155_s0 }
  0x18   :  { %p5728_p10 = pnand %p5726_p9, %p5723_p8 }
  0x1a   :  { %5731 = shalt.err (!%p5728_p10)
}
  0x1b   :  { %s5732_s22 = scalar_lea.vmem %s27_s13, 896  ;;  %p5737_p12 = scmp.lt.s32.totalorder %s27_s13, %s27_s13 }
  0x1c   :  { %p5733_p11 = scmp.ne.s32.totalorder %s27_s13, %s5732_s22  ;;  %p5738_p13 = scmp.lt.s32.totalorder %s5732_s22, %s5732_s22 }
  0x1e   :  { %p5739_p0 = por %p5738_p13, %p5737_p12 }
  0x20   :  { %p5740_p1 = pnand %p5739_p0, %p5733_p11 }
  0x22   :  { %5743 = shalt.err (!%p5740_p1)
}
  0x23   :  { %s5822_s2 = smov 448   ;;  %s5823_s18 = smov 28  }
  0x24   :  { %32 = dma.hbm_to_vmem [thread:$0]  %s6155_s0, 896, %s27_s13, [#allocation3], %s5822_s2, %s5822_s2, %s5823_s18  }
  0x25   :  { %s5824_s25 = smov [#allocation7]   ;;  %s5744_s29 = scalar_lea.hbm %s6159_s4, 8192 }
  0x26   :  { %s54_s26 = sshll.u32 %s5824_s25, 4  ;;  %p5745_p2 = scmp.ne.s32.totalorder %s6159_s4, %s5744_s29  ;;  %s55_s26 = int_to_ptr.vmem [resolvable:$true] %s54_s26 }
  0x27   :  { %p5748_p3 = scmp.lt.u32.totalorder %s5744_s29, %s6159_s4 }
  0x29   :  { %p5750_p4 = pnand %p5748_p3, %p5745_p2 }
  0x2b   :  { %5753 = shalt.err (!%p5750_p4)
}
  0x2c   :  { %s5754_s16 = scalar_lea.vmem %s55_s26, 8192  ;;  %p5759_p6 = scmp.lt.s32.totalorder %s55_s26, %s55_s26 }
  0x2d   :  { %p5755_p5 = scmp.ne.s32.totalorder %s55_s26, %s5754_s16  ;;  %p5760_p7 = scmp.lt.s32.totalorder %s5754_s16, %s5754_s16 }
  0x2f   :  { %p5761_p8 = por %p5760_p7, %p5759_p6 }
  0x31   :  { %p5762_p9 = pnand %p5761_p8, %p5755_p5 }
  0x33   :  { %5765 = shalt.err (!%p5762_p9)
}
  0x34   :  { %s5825_s0 = smov 128   ;;  %s5826_s13 = smov 8  }
  0x35   :  { %60 = dma.hbm_to_vmem [thread:$0]  %s6159_s4, 8192, %s55_s26, [#allocation6], %s5825_s0, %s5825_s0, %s5826_s13  }
  0x36   :  { %s5827_s20 = smov [#allocation8]   ;;  %s5766_s24 = scalar_lea.hbm %s6163_s8, 28672 }
  0x37   :  { %s72_s21 = sshll.u32 %s5827_s20, 4  ;;  %p5767_p10 = scmp.ne.s32.totalorder %s6163_s8, %s5766_s24  ;;  %s73_s21 = int_to_ptr.vmem [resolvable:$true] %s72_s21 }
  0x38   :  { %p5770_p11 = scmp.lt.u32.totalorder %s5766_s24, %s6163_s8 }
  0x3a   :  { %p5772_p12 = pnand %p5770_p11, %p5767_p10 }
  0x3c   :  { %5775 = shalt.err (!%p5772_p12)
}
  0x3d   :  { %s5776_s30 = scalar_lea.vmem %s73_s21, 28672  ;;  %p5781_p0 = scmp.lt.s32.totalorder %s73_s21, %s73_s21 }
  0x3e   :  { %p5777_p13 = scmp.ne.s32.totalorder %s73_s21, %s5776_s30  ;;  %p5782_p1 = scmp.lt.s32.totalorder %s5776_s30, %s5776_s30 }
  0x40   :  { %p5783_p2 = por %p5782_p1, %p5781_p0 }
  0x42   :  { %p5784_p3 = pnand %p5783_p2, %p5777_p13 }
  0x44   :  { %5787 = shalt.err (!%p5784_p3)
}
  0x45   :  { %78 = dma.hbm_to_vmem [thread:$0]  %s6163_s8, 28672, %s73_s21, [#allocation9], %s5822_s2, %s5822_s2, %s5823_s18  }
  0x46   :  { %5810 = dma.done.wait [#allocation3], 896  }
  0x47   :  { %5811 = vsyncadd [#allocation3], 4294966400 }
  0x48   :  { %5812 = dma.done.wait [#allocation6], 36864  }
  0x49   :  { %5813 = vsyncadd [#allocation6], 4294930432 }
  0x4a   :  { %5814 = dma.done.wait [#allocation9], 28672  }
  0x4b   :  { %5815 = vsyncadd [#allocation9], 4294938624  ;;  %v5828_v0 = vmov 0   ;;  %v4973_v1 = vld [vmem:[#allocation5 + $0x4] ss:$16 sps:$4 sm:$0xff]   ;;  %s5829_s18 = smov 3  }
  0x4c   :  { %1665 = vmatprep.mubr.bf16.mxu1 %v5828_v0  ;;  %4967 = vset.pattern.permute.xlu0 %v5828_v0  ;;  %v4975_v2 = vld [vmem:[#allocation5 + $0x604] ss:$16 sps:$4 sm:$0xff]   ;;  %v4977_v3 = vld [vmem:[#allocation5] ss:$16 sps:$4 sm:$0xff]   ;;  %v5026_v34 = vld [vmem:[#allocation5 + $0xc] ss:$16 sps:$4 sm:$0xff]  }
  0x4d   :  { %1504 = vmatprep.subr.bf16.mxu0 %v4973_v1  ;;  %v4978_v4 = vld [vmem:[#allocation5 + $0x600] ss:$16 sps:$4 sm:$0xff]   ;;  %1633 = vmatprep.subr.bf16.mxu1 %v4975_v2  ;;  %v4979_v5 = vld [vmem:[#allocation5 + $0x24] ss:$16 sps:$4 sm:$0xff]   ;;  %v5024_v36 = vld [vmem:[#allocation5 + $0x8] ss:$16 sps:$4 sm:$0xff]  }
  0x4e   :  { %1505 = vmatpush1.bf16.msra.mxu0 %v4977_v3  ;;  %1634 = vmatpush1.bf16.msra.mxu1 %v4978_v4  ;;  %v4981_v6 = vld [vmem:[#allocation5 + $0x624] ss:$16 sps:$4 sm:$0xff]   ;;  %v4983_v7 = vld [vmem:[#allocation5 + $0x20] ss:$16 sps:$4 sm:$0xff]   ;;  %v5032_v39 = vld [vmem:[#allocation5 + $0x2c] ss:$16 sps:$4 sm:$0xff]  }
  0x4f   :  { %1506 = vmatprep.subr.bf16.mxu0 %v4979_v5  ;;  %v4984_v8 = vld [vmem:[#allocation5 + $0x620] ss:$16 sps:$4 sm:$0xff]   ;;  %1635 = vmatprep.subr.bf16.mxu1 %v4981_v6  ;;  %v4985_v9 = vld [vmem:[#allocation5 + $0x44] ss:$16 sps:$4 sm:$0xff]   ;;  %v5030_v40 = vld [vmem:[#allocation5 + $0x28] ss:$16 sps:$4 sm:$0xff]  }
  0x50   :  { %v4987_v10 = vld [vmem:[#allocation5 + $0x644] ss:$16 sps:$4 sm:$0xff]   ;;  %v4989_v11 = vld [vmem:[#allocation5 + $0x40] ss:$16 sps:$4 sm:$0xff]   ;;  %v5038_v43 = vld [vmem:[#allocation5 + $0x4c] ss:$16 sps:$4 sm:$0xff]  }
  0x51   :  { %v4990_v12 = vld [vmem:[#allocation5 + $0x640] ss:$16 sps:$4 sm:$0xff]   ;;  %v4991_v13 = vld [vmem:[#allocation5 + $0x64] ss:$16 sps:$4 sm:$0xff]   ;;  %v5036_v44 = vld [vmem:[#allocation5 + $0x48] ss:$16 sps:$4 sm:$0xff]  }
  0x52   :  { %1507 = vmatpush1.bf16.msra.mxu0 %v4983_v7  ;;  %1636 = vmatpush1.bf16.msra.mxu1 %v4984_v8  ;;  %v4993_v14 = vld [vmem:[#allocation5 + $0x664] ss:$16 sps:$4 sm:$0xff]   ;;  %v4995_v15 = vld [vmem:[#allocation5 + $0x60] ss:$16 sps:$4 sm:$0xff]   ;;  %v5044_v47 = vld [vmem:[#allocation5 + $0x6c] ss:$16 sps:$4 sm:$0xff]  }
  0x53   :  { %1508 = vmatprep.subr.bf16.mxu0 %v4985_v9  ;;  %1637 = vmatprep.subr.bf16.mxu1 %v4987_v10  ;;  %v4996_v16 = vld [vmem:[#allocation5 + $0x660] ss:$16 sps:$4 sm:$0xff]   ;;  %v4997_v17 = vld [vmem:[#allocation5 + $0x84] ss:$16 sps:$4 sm:$0xff]   ;;  %v5042_v48 = vld [vmem:[#allocation5 + $0x68] ss:$16 sps:$4 sm:$0xff]  }
  0x54   :  { %v4999_v18 = vld [vmem:[#allocation5 + $0x684] ss:$16 sps:$4 sm:$0xff]   ;;  %v5001_v19 = vld [vmem:[#allocation5 + $0x80] ss:$16 sps:$4 sm:$0xff]   ;;  %v5072_v51 = vld [vmem:[#allocation2 + $0x4] ss:$28 sps:$4 sm:$0xff]  }
  0x55   :  { %v5002_v20 = vld [vmem:[#allocation5 + $0x680] ss:$16 sps:$4 sm:$0xff]   ;;  %v5003_v21 = vld [vmem:[#allocation5 + $0xa4] ss:$16 sps:$4 sm:$0xff]   ;;  %v5050_v52 = vld [vmem:[#allocation5 + $0x8c] ss:$16 sps:$4 sm:$0xff]   ;;  %1536 = vmatprep.mubr.bf16.mxu0 %v5072_v51 }
  0x56   :  { %1509 = vmatpush1.bf16.msra.mxu0 %v4989_v11  ;;  %1638 = vmatpush1.bf16.msra.mxu1 %v4990_v12  ;;  %v5005_v22 = vld [vmem:[#allocation5 + $0x6a4] ss:$16 sps:$4 sm:$0xff]   ;;  %v5007_v23 = vld [vmem:[#allocation5 + $0xa0] ss:$16 sps:$4 sm:$0xff]   ;;  %v5048_v53 = vld [vmem:[#allocation5 + $0x88] ss:$16 sps:$4 sm:$0xff]  }
  0x57   :  { %1510 = vmatprep.subr.bf16.mxu0 %v4991_v13  ;;  %1639 = vmatprep.subr.bf16.mxu1 %v4993_v14  ;;  %v5008_v24 = vld [vmem:[#allocation5 + $0x6a0] ss:$16 sps:$4 sm:$0xff]   ;;  %v5009_v25 = vld [vmem:[#allocation5 + $0xc4] ss:$16 sps:$4 sm:$0xff]   ;;  %v5056_v56 = vld [vmem:[#allocation5 + $0xac] ss:$16 sps:$4 sm:$0xff]  }
  0x58   :  { %v5011_v26 = vld [vmem:[#allocation5 + $0x6c4] ss:$16 sps:$4 sm:$0xff]   ;;  %v5013_v27 = vld [vmem:[#allocation5 + $0xc0] ss:$16 sps:$4 sm:$0xff]   ;;  %v5054_v57 = vld [vmem:[#allocation5 + $0xa8] ss:$16 sps:$4 sm:$0xff]  }
  0x59   :  { %v5014_v28 = vld [vmem:[#allocation5 + $0x6c0] ss:$16 sps:$4 sm:$0xff]   ;;  %v5015_v29 = vld [vmem:[#allocation5 + $0xe4] ss:$16 sps:$4 sm:$0xff]   ;;  %v5062_v60 = vld [vmem:[#allocation5 + $0xcc] ss:$16 sps:$4 sm:$0xff]  }
  0x5a   :  { %1511 = vmatpush1.bf16.msra.mxu0 %v4995_v15  ;;  %1640 = vmatpush1.bf16.msra.mxu1 %v4996_v16  ;;  %v5017_v30 = vld [vmem:[#allocation5 + $0x6e4] ss:$16 sps:$4 sm:$0xff]   ;;  %v5019_v31 = vld [vmem:[#allocation5 + $0xe0] ss:$16 sps:$4 sm:$0xff]   ;;  %v5060_v61 = vld [vmem:[#allocation5 + $0xc8] ss:$16 sps:$4 sm:$0xff]  }
  0x5b   :  { %1512 = vmatprep.subr.bf16.mxu0 %v4997_v17  ;;  %1641 = vmatprep.subr.bf16.mxu1 %v4999_v18  ;;  %v5020_v32 = vld [vmem:[#allocation5 + $0x6e0] ss:$16 sps:$4 sm:$0xff]   ;;  %v5021_v33 = vld [vmem:[#allocation5 + $0x104] ss:$16 sps:$4 sm:$0xff]   ;;  %v5068_v1 = vld [vmem:[#allocation5 + $0xec] ss:$16 sps:$4 sm:$0xff]  }
  0x5c   :  { %v5023_v35 = vld [vmem:[#allocation2 + $0x18] ss:$28 sps:$4 sm:$0xff]   ;;  %v5028_v38 = vld [vmem:[#allocation5 + $0x124] ss:$16 sps:$4 sm:$0xff]   ;;  %v5066_v2 = vld [vmem:[#allocation5 + $0xe8] ss:$16 sps:$4 sm:$0xff]  }
  0x5d   :  { %v5027_v37 = vld [vmem:[#allocation5 + $0x100] ss:$16 sps:$4 sm:$0xff]   ;;  %v5034_v42 = vld [vmem:[#allocation5 + $0x144] ss:$16 sps:$4 sm:$0xff]   ;;  %v5078_v5 = vld [vmem:[#allocation5 + $0x10c] ss:$16 sps:$4 sm:$0xff]  }
  0x5e   :  { %1513 = vmatpush1.bf16.msra.mxu0 %v5001_v19  ;;  %1642 = vmatpush1.bf16.msra.mxu1 %v5002_v20  ;;  %v5033_v41 = vld [vmem:[#allocation5 + $0x120] ss:$16 sps:$4 sm:$0xff]   ;;  %v5040_v46 = vld [vmem:[#allocation5 + $0x164] ss:$16 sps:$4 sm:$0xff]   ;;  %v5076_v8 = vld [vmem:[#allocation5 + $0x108] ss:$16 sps:$4 sm:$0xff]  }
  0x5f   :  { %1514 = vmatprep.subr.bf16.mxu0 %v5003_v21  ;;  %1643 = vmatprep.subr.bf16.mxu1 %v5005_v22  ;;  %v5039_v45 = vld [vmem:[#allocation5 + $0x140] ss:$16 sps:$4 sm:$0xff]   ;;  %v5046_v50 = vld [vmem:[#allocation5 + $0x184] ss:$16 sps:$4 sm:$0xff]   ;;  %v5084_v10 = vld [vmem:[#allocation5 + $0x12c] ss:$16 sps:$4 sm:$0xff]  }
  0x60   :  { %v5045_v49 = vld [vmem:[#allocation5 + $0x160] ss:$16 sps:$4 sm:$0xff]   ;;  %v5052_v55 = vld [vmem:[#allocation5 + $0x1a4] ss:$16 sps:$4 sm:$0xff]   ;;  %v5082_v12 = vld [vmem:[#allocation5 + $0x128] ss:$16 sps:$4 sm:$0xff]  }
  0x61   :  { %v5051_v54 = vld [vmem:[#allocation5 + $0x180] ss:$16 sps:$4 sm:$0xff]   ;;  %v5058_v59 = vld [vmem:[#allocation5 + $0x1c4] ss:$16 sps:$4 sm:$0xff]   ;;  %v5090_v14 = vld [vmem:[#allocation5 + $0x14c] ss:$16 sps:$4 sm:$0xff]  }
  0x62   :  { %1515 = vmatpush1.bf16.msra.mxu0 %v5007_v23  ;;  %1644 = vmatpush1.bf16.msra.mxu1 %v5008_v24  ;;  %v5057_v58 = vld [vmem:[#allocation5 + $0x1a0] ss:$16 sps:$4 sm:$0xff]   ;;  %v5064_v63 = vld [vmem:[#allocation5 + $0x1e4] ss:$16 sps:$4 sm:$0xff]   ;;  %v5088_v16 = vld [vmem:[#allocation5 + $0x148] ss:$16 sps:$4 sm:$0xff]  }
  0x63   :  { %1516 = vmatprep.subr.bf16.mxu0 %v5009_v25  ;;  %1645 = vmatprep.subr.bf16.mxu1 %v5011_v26  ;;  %v5063_v62 = vld [vmem:[#allocation5 + $0x1c0] ss:$16 sps:$4 sm:$0xff]   ;;  %v5075_v4 = vld [vmem:[#allocation5 + $0x204] ss:$16 sps:$4 sm:$0xff]   ;;  %v5096_v18 = vld [vmem:[#allocation5 + $0x16c] ss:$16 sps:$4 sm:$0xff]  }
  0x64   :  { %v5069_v3 = vld [vmem:[#allocation5 + $0x1e0] ss:$16 sps:$4 sm:$0xff]   ;;  %v5952_v6 = vld [vmem:[#allocation2] ss:$28 sps:$4 sm:$0xff]   ;;  %v5102_v22 = vld [vmem:[#allocation5 + $0x18c] ss:$16 sps:$4 sm:$0xff]  }
  0x65   :  { %v5073_v7 = vld [vmem:[#allocation5 + $0x200] ss:$16 sps:$4 sm:$0xff]   ;;  %v5081_v9 = vld [vmem:[#allocation5 + $0x224] ss:$16 sps:$4 sm:$0xff]   ;;  %v5094_v20 = vld [vmem:[#allocation5 + $0x168] ss:$16 sps:$4 sm:$0xff]  }
  0x66   :  { %1517 = vmatpush1.bf16.msra.mxu0 %v5013_v27  ;;  %1646 = vmatpush1.bf16.msra.mxu1 %v5014_v28  ;;  %v5079_v11 = vld [vmem:[#allocation5 + $0x220] ss:$16 sps:$4 sm:$0xff]   ;;  %v5087_v13 = vld [vmem:[#allocation5 + $0x244] ss:$16 sps:$4 sm:$0xff]   ;;  %v5100_v24 = vld [vmem:[#allocation5 + $0x188] ss:$16 sps:$4 sm:$0xff]  }
  0x67   :  { %1518 = vmatprep.subr.bf16.mxu0 %v5015_v29  ;;  %1647 = vmatprep.subr.bf16.mxu1 %v5017_v30  ;;  %v5085_v15 = vld [vmem:[#allocation5 + $0x240] ss:$16 sps:$4 sm:$0xff]   ;;  %v5093_v17 = vld [vmem:[#allocation5 + $0x264] ss:$16 sps:$4 sm:$0xff]   ;;  %v5108_v26 = vld [vmem:[#allocation5 + $0x1ac] ss:$16 sps:$4 sm:$0xff]  }
  0x68   :  { %v5091_v19 = vld [vmem:[#allocation5 + $0x260] ss:$16 sps:$4 sm:$0xff]   ;;  %v5099_v21 = vld [vmem:[#allocation5 + $0x284] ss:$16 sps:$4 sm:$0xff]   ;;  %v5106_v28 = vld [vmem:[#allocation5 + $0x1a8] ss:$16 sps:$4 sm:$0xff]  }
  0x69   :  { %v5097_v23 = vld [vmem:[#allocation5 + $0x280] ss:$16 sps:$4 sm:$0xff]   ;;  %v5105_v25 = vld [vmem:[#allocation5 + $0x2a4] ss:$16 sps:$4 sm:$0xff]   ;;  %v5114_v30 = vld [vmem:[#allocation5 + $0x1cc] ss:$16 sps:$4 sm:$0xff]  }
  0x6a   :  { %1519 = vmatpush1.bf16.msra.mxu0 %v5019_v31  ;;  %1648 = vmatpush1.bf16.msra.mxu1 %v5020_v32  ;;  %v5103_v27 = vld [vmem:[#allocation5 + $0x2a0] ss:$16 sps:$4 sm:$0xff]   ;;  %v5111_v29 = vld [vmem:[#allocation5 + $0x2c4] ss:$16 sps:$4 sm:$0xff]   ;;  %v5112_v32 = vld [vmem:[#allocation5 + $0x1c8] ss:$16 sps:$4 sm:$0xff]  }
  0x6b   :  { %1520 = vmatprep.subr.bf16.mxu0 %v5021_v33  ;;  %1676 = vmatprep.subr.bf16.mxu1 %v5026_v34  ;;  %v5109_v31 = vld [vmem:[#allocation5 + $0x2c0] ss:$16 sps:$4 sm:$0xff]   ;;  %v5117_v33 = vld [vmem:[#allocation5 + $0x2e4] ss:$16 sps:$4 sm:$0xff]   ;;  %vm2129_vm0 = vcmask 23552   ;;  %vm2136_vm1 = vcmask 7168  }
  0x6c   :  { %v5171_v34 = vld [vmem:[#allocation2 + $0xc] ss:$28 sps:$4 sm:$0xff]  }
  0x6d   :  { %1666 = vmatmul.mubr.bf16.vlgmr.msra.gmra.mrb[0].mxu1 %v5023_v35  ;;  %v5120_v35 = vld [vmem:[#allocation5 + $0x1ec] ss:$16 sps:$4 sm:$0xff]  }
  0x6e   :  { %1521 = vmatpush1.bf16.msra.mxu0 %v5027_v37  ;;  %1677 = vmatpush1.bf16.msra.mxu1 %v5024_v36  ;;  %v5115_v36 = vld [vmem:[#allocation5 + $0x2e0] ss:$16 sps:$4 sm:$0xff]   ;;  %v5118_v37 = vld [vmem:[#allocation5 + $0x1e8] ss:$16 sps:$4 sm:$0xff]  }
  0x6f   :  { %1522 = vmatprep.subr.bf16.mxu0 %v5028_v38  ;;  %1678 = vmatprep.subr.bf16.mxu1 %v5032_v39  ;;  %v5123_v38 = vld [vmem:[#allocation5 + $0x304] ss:$16 sps:$4 sm:$0xff]   ;;  %v5126_v39 = vld [vmem:[#allocation5 + $0x20c] ss:$16 sps:$4 sm:$0xff]  }
  0x70   :  { %1708 = vmatprep.mubr.bf16.mxu1 %v5072_v51  ;;  %v5144_v51 = vld [vmem:[#allocation5 + $0x26c] ss:$16 sps:$4 sm:$0xff]  }
  0x72   :  { %1523 = vmatpush1.bf16.msra.mxu0 %v5033_v41  ;;  %1679 = vmatpush1.bf16.msra.mxu1 %v5030_v40  ;;  %v5121_v40 = vld [vmem:[#allocation5 + $0x300] ss:$16 sps:$4 sm:$0xff]   ;;  %v5124_v41 = vld [vmem:[#allocation5 + $0x208] ss:$16 sps:$4 sm:$0xff]  }
  0x73   :  { %1524 = vmatprep.subr.bf16.mxu0 %v5034_v42  ;;  %1680 = vmatprep.subr.bf16.mxu1 %v5038_v43  ;;  %v5129_v42 = vld [vmem:[#allocation5 + $0x324] ss:$16 sps:$4 sm:$0xff]   ;;  %v5132_v43 = vld [vmem:[#allocation5 + $0x22c] ss:$16 sps:$4 sm:$0xff]  }
  0x76   :  { %1525 = vmatpush1.bf16.msra.mxu0 %v5039_v45  ;;  %1681 = vmatpush1.bf16.msra.mxu1 %v5036_v44  ;;  %v5127_v44 = vld [vmem:[#allocation5 + $0x320] ss:$16 sps:$4 sm:$0xff]   ;;  %v5130_v45 = vld [vmem:[#allocation5 + $0x228] ss:$16 sps:$4 sm:$0xff]  }
  0x77   :  { %1526 = vmatprep.subr.bf16.mxu0 %v5040_v46  ;;  %1682 = vmatprep.subr.bf16.mxu1 %v5044_v47  ;;  %v5135_v46 = vld [vmem:[#allocation5 + $0x344] ss:$16 sps:$4 sm:$0xff]   ;;  %v5138_v47 = vld [vmem:[#allocation5 + $0x24c] ss:$16 sps:$4 sm:$0xff]  }
  0x7a   :  { %1527 = vmatpush1.bf16.msra.mxu0 %v5045_v49  ;;  %1683 = vmatpush1.bf16.msra.mxu1 %v5042_v48  ;;  %v5133_v48 = vld [vmem:[#allocation5 + $0x340] ss:$16 sps:$4 sm:$0xff]   ;;  %v5136_v49 = vld [vmem:[#allocation5 + $0x248] ss:$16 sps:$4 sm:$0xff]  }
  0x7b   :  { %1528 = vmatprep.subr.bf16.mxu0 %v5046_v50  ;;  %1684 = vmatprep.subr.bf16.mxu1 %v5050_v52  ;;  %v5141_v50 = vld [vmem:[#allocation5 + $0x364] ss:$16 sps:$4 sm:$0xff]   ;;  %v5139_v52 = vld [vmem:[#allocation5 + $0x360] ss:$16 sps:$4 sm:$0xff]  }
  0x7e   :  { %1529 = vmatpush1.bf16.msra.mxu0 %v5051_v54  ;;  %1685 = vmatpush1.bf16.msra.mxu1 %v5048_v53  ;;  %v5142_v53 = vld [vmem:[#allocation5 + $0x268] ss:$16 sps:$4 sm:$0xff]   ;;  %v5147_v54 = vld [vmem:[#allocation5 + $0x384] ss:$16 sps:$4 sm:$0xff]  }
  0x7f   :  { %1530 = vmatprep.subr.bf16.mxu0 %v5052_v55  ;;  %1686 = vmatprep.subr.bf16.mxu1 %v5056_v56  ;;  %v5150_v55 = vld [vmem:[#allocation5 + $0x28c] ss:$16 sps:$4 sm:$0xff]   ;;  %v5145_v56 = vld [vmem:[#allocation5 + $0x380] ss:$16 sps:$4 sm:$0xff]  }
  0x82   :  { %1531 = vmatpush1.bf16.msra.mxu0 %v5057_v58  ;;  %1687 = vmatpush1.bf16.msra.mxu1 %v5054_v57  ;;  %v5148_v57 = vld [vmem:[#allocation5 + $0x288] ss:$16 sps:$4 sm:$0xff]   ;;  %v5153_v58 = vld [vmem:[#allocation5 + $0x3a4] ss:$16 sps:$4 sm:$0xff]  }
  0x83   :  { %1532 = vmatprep.subr.bf16.mxu0 %v5058_v59  ;;  %1688 = vmatprep.subr.bf16.mxu1 %v5062_v60  ;;  %v5156_v59 = vld [vmem:[#allocation5 + $0x2ac] ss:$16 sps:$4 sm:$0xff]   ;;  %v5151_v60 = vld [vmem:[#allocation5 + $0x3a0] ss:$16 sps:$4 sm:$0xff]  }
  0x86   :  { %1533 = vmatpush1.bf16.msra.mxu0 %v5063_v62  ;;  %1689 = vmatpush1.bf16.msra.mxu1 %v5060_v61  ;;  %v5154_v61 = vld [vmem:[#allocation5 + $0x2a8] ss:$16 sps:$4 sm:$0xff]   ;;  %v5159_v62 = vld [vmem:[#allocation5 + $0x3c4] ss:$16 sps:$4 sm:$0xff]  }
  0x87   :  { %1534 = vmatprep.subr.bf16.mxu0 %v5064_v63  ;;  %1690 = vmatprep.subr.bf16.mxu1 %v5068_v1  ;;  %v5162_v63 = vld [vmem:[#allocation5 + $0x2cc] ss:$16 sps:$4 sm:$0xff]   ;;  %v5157_v1 = vld [vmem:[#allocation5 + $0x3c0] ss:$16 sps:$4 sm:$0xff]  }
  0x8a   :  { %1535 = vmatpush1.bf16.msra.mxu0 %v5069_v3  ;;  %1691 = vmatpush1.bf16.msra.mxu1 %v5066_v2  ;;  %v5160_v2 = vld [vmem:[#allocation5 + $0x2c8] ss:$16 sps:$4 sm:$0xff]   ;;  %v5165_v3 = vld [vmem:[#allocation5 + $0x3e4] ss:$16 sps:$4 sm:$0xff]  }
  0x8b   :  { %1547 = vmatprep.subr.bf16.mxu0 %v5075_v4  ;;  %1692 = vmatprep.subr.bf16.mxu1 %v5078_v5  ;;  %v5168_v4 = vld [vmem:[#allocation5 + $0x2ec] ss:$16 sps:$4 sm:$0xff]   ;;  %v5163_v5 = vld [vmem:[#allocation5 + $0x3e0] ss:$16 sps:$4 sm:$0xff]  }
  0x8d   :  { %1537 = vmatmul.mubr.bf16.vlgmr.msra.gmra.mrb[0].mxu0 %v5952_v6 }
  0x8e   :  { %1548 = vmatpush1.bf16.msra.mxu0 %v5073_v7  ;;  %1693 = vmatpush1.bf16.msra.mxu1 %v5076_v8  ;;  %v5174_v7 = vld [vmem:[#allocation5 + $0x404] ss:$16 sps:$4 sm:$0xff]   ;;  %v5177_v8 = vld [vmem:[#allocation5 + $0x30c] ss:$16 sps:$4 sm:$0xff]  }
  0x8f   :  { %1549 = vmatprep.subr.bf16.mxu0 %v5081_v9  ;;  %1694 = vmatprep.subr.bf16.mxu1 %v5084_v10  ;;  %v5956_v9 = vld [vmem:[#allocation2 + $0x8] ss:$28 sps:$4 sm:$0xff]  }
  0x90   :  { %1579 = vmatprep.mubr.bf16.mxu0 %v5171_v34  ;;  %v5172_v10 = vld [vmem:[#allocation5 + $0x400] ss:$16 sps:$4 sm:$0xff]  }
  0x92   :  { %1550 = vmatpush1.bf16.msra.mxu0 %v5079_v11  ;;  %1695 = vmatpush1.bf16.msra.mxu1 %v5082_v12  ;;  %v5175_v11 = vld [vmem:[#allocation5 + $0x308] ss:$16 sps:$4 sm:$0xff]   ;;  %v5180_v12 = vld [vmem:[#allocation5 + $0x424] ss:$16 sps:$4 sm:$0xff]  }
  0x93   :  { %1551 = vmatprep.subr.bf16.mxu0 %v5087_v13  ;;  %1696 = vmatprep.subr.bf16.mxu1 %v5090_v14  ;;  %v5183_v13 = vld [vmem:[#allocation5 + $0x32c] ss:$16 sps:$4 sm:$0xff]   ;;  %v5178_v14 = vld [vmem:[#allocation5 + $0x420] ss:$16 sps:$4 sm:$0xff]  }
  0x96   :  { %1552 = vmatpush1.bf16.msra.mxu0 %v5085_v15  ;;  %1697 = vmatpush1.bf16.msra.mxu1 %v5088_v16  ;;  %v5181_v15 = vld [vmem:[#allocation5 + $0x328] ss:$16 sps:$4 sm:$0xff]   ;;  %v5186_v16 = vld [vmem:[#allocation5 + $0x444] ss:$16 sps:$4 sm:$0xff]  }
  0x97   :  { %1553 = vmatprep.subr.bf16.mxu0 %v5093_v17  ;;  %1698 = vmatprep.subr.bf16.mxu1 %v5096_v18  ;;  %v5959_v17 = vld [vmem:[#allocation2 + $0x14] ss:$28 sps:$4 sm:$0xff]  }
  0x98   :  { %v5189_v18 = vld [vmem:[#allocation5 + $0x34c] ss:$16 sps:$4 sm:$0xff]  }
  0x9a   :  { %1554 = vmatpush1.bf16.msra.mxu0 %v5091_v19  ;;  %1699 = vmatpush1.bf16.msra.mxu1 %v5094_v20  ;;  %v5184_v19 = vld [vmem:[#allocation5 + $0x440] ss:$16 sps:$4 sm:$0xff]   ;;  %v5187_v20 = vld [vmem:[#allocation5 + $0x348] ss:$16 sps:$4 sm:$0xff]  }
  0x9b   :  { %1555 = vmatprep.subr.bf16.mxu0 %v5099_v21  ;;  %1700 = vmatprep.subr.bf16.mxu1 %v5102_v22  ;;  %v5192_v21 = vld [vmem:[#allocation5 + $0x464] ss:$16 sps:$4 sm:$0xff]   ;;  %v5195_v22 = vld [vmem:[#allocation5 + $0x36c] ss:$16 sps:$4 sm:$0xff]  }
  0x9e   :  { %1556 = vmatpush1.bf16.msra.mxu0 %v5097_v23  ;;  %1701 = vmatpush1.bf16.msra.mxu1 %v5100_v24  ;;  %v5190_v23 = vld [vmem:[#allocation5 + $0x460] ss:$16 sps:$4 sm:$0xff]   ;;  %v5193_v24 = vld [vmem:[#allocation5 + $0x368] ss:$16 sps:$4 sm:$0xff]  }
  0x9f   :  { %1557 = vmatprep.subr.bf16.mxu0 %v5105_v25  ;;  %1702 = vmatprep.subr.bf16.mxu1 %v5108_v26  ;;  %v5198_v25 = vld [vmem:[#allocation5 + $0x484] ss:$16 sps:$4 sm:$0xff]   ;;  %v5201_v26 = vld [vmem:[#allocation5 + $0x38c] ss:$16 sps:$4 sm:$0xff]  }
  0xa2   :  { %1558 = vmatpush1.bf16.msra.mxu0 %v5103_v27  ;;  %1703 = vmatpush1.bf16.msra.mxu1 %v5106_v28  ;;  %v5196_v27 = vld [vmem:[#allocation5 + $0x480] ss:$16 sps:$4 sm:$0xff]   ;;  %v5199_v28 = vld [vmem:[#allocation5 + $0x388] ss:$16 sps:$4 sm:$0xff]  }
  0xa3   :  { %1559 = vmatprep.subr.bf16.mxu0 %v5111_v29  ;;  %1704 = vmatprep.subr.bf16.mxu1 %v5114_v30  ;;  %v5204_v29 = vld [vmem:[#allocation5 + $0x4a4] ss:$16 sps:$4 sm:$0xff]   ;;  %v5207_v30 = vld [vmem:[#allocation5 + $0x3ac] ss:$16 sps:$4 sm:$0xff]  }
  0xa6   :  { %1560 = vmatpush1.bf16.msra.mxu0 %v5109_v31  ;;  %1705 = vmatpush1.bf16.msra.mxu1 %v5112_v32  ;;  %v5202_v31 = vld [vmem:[#allocation5 + $0x4a0] ss:$16 sps:$4 sm:$0xff]   ;;  %v5205_v32 = vld [vmem:[#allocation5 + $0x3a8] ss:$16 sps:$4 sm:$0xff]  }
  0xa7   :  { %1561 = vmatprep.subr.bf16.mxu0 %v5117_v33  ;;  %1706 = vmatprep.subr.bf16.mxu1 %v5120_v35  ;;  %v5210_v33 = vld [vmem:[#allocation5 + $0x4c4] ss:$16 sps:$4 sm:$0xff]   ;;  %v5208_v35 = vld [vmem:[#allocation5 + $0x4c0] ss:$16 sps:$4 sm:$0xff]  }
  0xaa   :  { %1562 = vmatpush1.bf16.msra.mxu0 %v5115_v36  ;;  %1707 = vmatpush1.bf16.msra.mxu1 %v5118_v37  ;;  %v5211_v36 = vld [vmem:[#allocation5 + $0x3c8] ss:$16 sps:$4 sm:$0xff]   ;;  %v5216_v37 = vld [vmem:[#allocation5 + $0x4e4] ss:$16 sps:$4 sm:$0xff]  }
  0xab   :  { %1563 = vmatprep.subr.bf16.mxu0 %v5123_v38  ;;  %1719 = vmatprep.subr.bf16.mxu1 %v5126_v39  ;;  %v5219_v38 = vld [vmem:[#allocation5 + $0x3ec] ss:$16 sps:$4 sm:$0xff]   ;;  %v5214_v39 = vld [vmem:[#allocation5 + $0x4e0] ss:$16 sps:$4 sm:$0xff]  }
  0xad   :  { %1709 = vmatmul.mubr.bf16.vlgmr.msra.gmra.mrb[4].mxu1 %v5952_v6  ;;  %v5166_v6 = vld [vmem:[#allocation5 + $0x2e8] ss:$16 sps:$4 sm:$0xff]  }
  0xae   :  { %1564 = vmatpush1.bf16.msra.mxu0 %v5121_v40  ;;  %1720 = vmatpush1.bf16.msra.mxu1 %v5124_v41  ;;  %v5217_v40 = vld [vmem:[#allocation5 + $0x3e8] ss:$16 sps:$4 sm:$0xff]   ;;  %v5222_v41 = vld [vmem:[#allocation5 + $0x504] ss:$16 sps:$4 sm:$0xff]  }
  0xaf   :  { %1565 = vmatprep.subr.bf16.mxu0 %v5129_v42  ;;  %1721 = vmatprep.subr.bf16.mxu1 %v5132_v43  ;;  %v5225_v42 = vld [vmem:[#allocation5 + $0x40c] ss:$16 sps:$4 sm:$0xff]   ;;  %v5220_v43 = vld [vmem:[#allocation5 + $0x500] ss:$16 sps:$4 sm:$0xff]  }
  0xb0   :  { %1751 = vmatprep.mubr.bf16.mxu1 %v5171_v34  ;;  %v5213_v34 = vld [vmem:[#allocation5 + $0x3cc] ss:$16 sps:$4 sm:$0xff]  }
  0xb2   :  { %1566 = vmatpush1.bf16.msra.mxu0 %v5127_v44  ;;  %1722 = vmatpush1.bf16.msra.mxu1 %v5130_v45  ;;  %v5223_v44 = vld [vmem:[#allocation5 + $0x408] ss:$16 sps:$4 sm:$0xff]   ;;  %v5228_v45 = vld [vmem:[#allocation5 + $0x524] ss:$16 sps:$4 sm:$0xff]  }
  0xb3   :  { %1567 = vmatprep.subr.bf16.mxu0 %v5135_v46  ;;  %1723 = vmatprep.subr.bf16.mxu1 %v5138_v47  ;;  %v5231_v46 = vld [vmem:[#allocation5 + $0x42c] ss:$16 sps:$4 sm:$0xff]   ;;  %v5226_v47 = vld [vmem:[#allocation5 + $0x520] ss:$16 sps:$4 sm:$0xff]  }
  0xb6   :  { %1568 = vmatpush1.bf16.msra.mxu0 %v5133_v48  ;;  %1724 = vmatpush1.bf16.msra.mxu1 %v5136_v49  ;;  %v5229_v48 = vld [vmem:[#allocation5 + $0x428] ss:$16 sps:$4 sm:$0xff]   ;;  %v5234_v49 = vld [vmem:[#allocation5 + $0x544] ss:$16 sps:$4 sm:$0xff]  }
  0xb7   :  { %1569 = vmatprep.subr.bf16.mxu0 %v5141_v50  ;;  %1725 = vmatprep.subr.bf16.mxu1 %v5144_v51  ;;  %v5237_v50 = vld [vmem:[#allocation5 + $0x44c] ss:$16 sps:$4 sm:$0xff]   ;;  %v5232_v51 = vld [vmem:[#allocation5 + $0x540] ss:$16 sps:$4 sm:$0xff]  }
  0xba   :  { %1570 = vmatpush1.bf16.msra.mxu0 %v5139_v52  ;;  %1726 = vmatpush1.bf16.msra.mxu1 %v5142_v53  ;;  %v5235_v52 = vld [vmem:[#allocation5 + $0x448] ss:$16 sps:$4 sm:$0xff]   ;;  %v5240_v53 = vld [vmem:[#allocation5 + $0x564] ss:$16 sps:$4 sm:$0xff]  }
  0xbb   :  { %1571 = vmatprep.subr.bf16.mxu0 %v5147_v54  ;;  %1727 = vmatprep.subr.bf16.mxu1 %v5150_v55  ;;  %v5243_v54 = vld [vmem:[#allocation5 + $0x46c] ss:$16 sps:$4 sm:$0xff]   ;;  %v5238_v55 = vld [vmem:[#allocation5 + $0x560] ss:$16 sps:$4 sm:$0xff]  }
  0xbe   :  { %1572 = vmatpush1.bf16.msra.mxu0 %v5145_v56  ;;  %1728 = vmatpush1.bf16.msra.mxu1 %v5148_v57  ;;  %v5241_v56 = vld [vmem:[#allocation5 + $0x468] ss:$16 sps:$4 sm:$0xff]   ;;  %v5246_v57 = vld [vmem:[#allocation5 + $0x584] ss:$16 sps:$4 sm:$0xff]  }
  0xbf   :  { %1573 = vmatprep.subr.bf16.mxu0 %v5153_v58  ;;  %1729 = vmatprep.subr.bf16.mxu1 %v5156_v59  ;;  %v5249_v58 = vld [vmem:[#allocation5 + $0x48c] ss:$16 sps:$4 sm:$0xff]   ;;  %v5244_v59 = vld [vmem:[#allocation5 + $0x580] ss:$16 sps:$4 sm:$0xff]  }
  0xc2   :  { %1574 = vmatpush1.bf16.msra.mxu0 %v5151_v60  ;;  %1730 = vmatpush1.bf16.msra.mxu1 %v5154_v61  ;;  %v5247_v60 = vld [vmem:[#allocation5 + $0x488] ss:$16 sps:$4 sm:$0xff]   ;;  %v5252_v61 = vld [vmem:[#allocation5 + $0x5a4] ss:$16 sps:$4 sm:$0xff]  }
  0xc3   :  { %1575 = vmatprep.subr.bf16.mxu0 %v5159_v62  ;;  %1731 = vmatprep.subr.bf16.mxu1 %v5162_v63  ;;  %v5255_v62 = vld [vmem:[#allocation5 + $0x4ac] ss:$16 sps:$4 sm:$0xff]   ;;  %v5250_v63 = vld [vmem:[#allocation5 + $0x5a0] ss:$16 sps:$4 sm:$0xff]  }
  0xc6   :  { %1576 = vmatpush1.bf16.msra.mxu0 %v5157_v1  ;;  %1732 = vmatpush1.bf16.msra.mxu1 %v5160_v2  ;;  %v5253_v1 = vld [vmem:[#allocation5 + $0x4a8] ss:$16 sps:$4 sm:$0xff]   ;;  %v5258_v2 = vld [vmem:[#allocation5 + $0x5c4] ss:$16 sps:$4 sm:$0xff]  }
  0xc7   :  { %1577 = vmatprep.subr.bf16.mxu0 %v5165_v3  ;;  %1733 = vmatprep.subr.bf16.mxu1 %v5168_v4  ;;  %v5261_v3 = vld [vmem:[#allocation5 + $0x4cc] ss:$16 sps:$4 sm:$0xff]   ;;  %v5256_v4 = vld [vmem:[#allocation5 + $0x5c0] ss:$16 sps:$4 sm:$0xff]  }
  0xca   :  { %1578 = vmatpush1.bf16.msra.mxu0 %v5163_v5  ;;  %1734 = vmatpush1.bf16.msra.mxu1 %v5166_v6  ;;  %v5259_v5 = vld [vmem:[#allocation5 + $0x4c8] ss:$16 sps:$4 sm:$0xff]   ;;  %v5264_v6 = vld [vmem:[#allocation5 + $0x5e4] ss:$16 sps:$4 sm:$0xff]  }
  0xcb   :  { %1590 = vmatprep.subr.bf16.mxu0 %v5174_v7  ;;  %1735 = vmatprep.subr.bf16.mxu1 %v5177_v8  ;;  %v5267_v7 = vld [vmem:[#allocation5 + $0x4ec] ss:$16 sps:$4 sm:$0xff]   ;;  %v1872_v8 = vld [vmem:[#allocation7 + $0x80] sm:$0xff] }
  0xcd   :  { %1580 = vmatmul.mubr.bf16.vlgmr.msra.gmra.mrb[0].mxu0 %v5956_v9 }
  0xce   :  { %1591 = vmatpush1.bf16.msra.mxu0 %v5172_v10  ;;  %1736 = vmatpush1.bf16.msra.mxu1 %v5175_v11  ;;  %v5262_v10 = vld [vmem:[#allocation5 + $0x5e0] ss:$16 sps:$4 sm:$0xff]   ;;  %v5265_v11 = vld [vmem:[#allocation5 + $0x4e8] ss:$16 sps:$4 sm:$0xff]  }
  0xcf   :  { %1592 = vmatprep.subr.bf16.mxu0 %v5180_v12  ;;  %1737 = vmatprep.subr.bf16.mxu1 %v5183_v13  ;;  %v5273_v12 = vld [vmem:[#allocation5 + $0x50c] ss:$16 sps:$4 sm:$0xff]   ;;  %v1856_v13 = vld [vmem:[#allocation7] sm:$0xff] }
  0xd0   :  { %1622 = vmatprep.mubr.bf16.mxu0 %v5959_v17 }
  0xd2   :  { %1593 = vmatpush1.bf16.msra.mxu0 %v5178_v14  ;;  %1738 = vmatpush1.bf16.msra.mxu1 %v5181_v15  ;;  %v1857_v14 = vld [vmem:[#allocation7 + $0x8] sm:$0xff]  ;;  %v1874_v15 = vld [vmem:[#allocation7 + $0x90] sm:$0xff] }
  0xd3   :  { %1594 = vmatprep.subr.bf16.mxu0 %v5186_v16  ;;  %1739 = vmatprep.subr.bf16.mxu1 %v5189_v18  ;;  %v1875_v16 = vld [vmem:[#allocation7 + $0x98] sm:$0xff] }
  0xd6   :  { %1595 = vmatpush1.bf16.msra.mxu0 %v5184_v19  ;;  %1740 = vmatpush1.bf16.msra.mxu1 %v5187_v20  ;;  %v5271_v19 = vld [vmem:[#allocation5 + $0x508] ss:$16 sps:$4 sm:$0xff]   ;;  %v5276_v20 = vld [vmem:[#allocation5 + $0x52c] ss:$16 sps:$4 sm:$0xff]  }
  0xd7   :  { %1596 = vmatprep.subr.bf16.mxu0 %v5192_v21  ;;  %1741 = vmatprep.subr.bf16.mxu1 %v5195_v22  ;;  %v1858_v21 = vld [vmem:[#allocation7 + $0x10] sm:$0xff]  ;;  %v1859_v22 = vld [vmem:[#allocation7 + $0x18] sm:$0xff] }
  0xda   :  { %1597 = vmatpush1.bf16.msra.mxu0 %v5190_v23  ;;  %1742 = vmatpush1.bf16.msra.mxu1 %v5193_v24  ;;  %v4831_v23 = vpack.c.bf16 %v1857_v14, %v1856_v13  ;;  %v1876_v24 = vld [vmem:[#allocation7 + $0xa0] sm:$0xff] }
  0xdb   :  { %1598 = vmatprep.subr.bf16.mxu0 %v5198_v25  ;;  %1743 = vmatprep.subr.bf16.mxu1 %v5201_v26  ;;  %v1877_v25 = vld [vmem:[#allocation7 + $0xa8] sm:$0xff]  ;;  %v4833_v26 = vpack.c.bf16 %v1875_v16, %v1874_v15 }
  0xdc   :  { %v5313_v16 = vld [vmem:[#allocation5 + $0x6c8] ss:$16 sps:$4 sm:$0xff]  }
  0xde   :  { %1599 = vmatpush1.bf16.msra.mxu0 %v5196_v27  ;;  %1744 = vmatpush1.bf16.msra.mxu1 %v5199_v28  ;;  %v5274_v27 = vld [vmem:[#allocation5 + $0x528] ss:$16 sps:$4 sm:$0xff]   ;;  %v5279_v28 = vld [vmem:[#allocation5 + $0x54c] ss:$16 sps:$4 sm:$0xff]  }
  0xdf   :  { %1600 = vmatprep.subr.bf16.mxu0 %v5204_v29  ;;  %1745 = vmatprep.subr.bf16.mxu1 %v5207_v30  ;;  %v1860_v29 = vld [vmem:[#allocation7 + $0x20] sm:$0xff]  ;;  %v1861_v30 = vld [vmem:[#allocation7 + $0x28] sm:$0xff] }
  0xe2   :  { %1601 = vmatpush1.bf16.msra.mxu0 %v5202_v31  ;;  %1746 = vmatpush1.bf16.msra.mxu1 %v5205_v32  ;;  %v4835_v31 = vpack.c.bf16 %v1859_v22, %v1858_v21  ;;  %v1878_v32 = vld [vmem:[#allocation7 + $0xb0] sm:$0xff]  ;;  %v1884_v21 = vld [vmem:[#allocation7 + $0xe0] sm:$0xff]  ;;  %v1885_v22 = vld [vmem:[#allocation7 + $0xe8] sm:$0xff] }
  0xe3   :  { %1602 = vmatprep.subr.bf16.mxu0 %v5210_v33  ;;  %1747 = vmatprep.subr.bf16.mxu1 %v5213_v34  ;;  %v1879_v33 = vld [vmem:[#allocation7 + $0xb8] sm:$0xff]  ;;  %v4837_v34 = vpack.c.bf16 %v1877_v25, %v1876_v24  ;;  %v1868_v24 = vld [vmem:[#allocation7 + $0x60] sm:$0xff]  ;;  %v1869_v25 = vld [vmem:[#allocation7 + $0x68] sm:$0xff] }
  0xe6   :  { %1603 = vmatpush1.bf16.msra.mxu0 %v5208_v35  ;;  %1748 = vmatpush1.bf16.msra.mxu1 %v5211_v36  ;;  %v5277_v35 = vld [vmem:[#allocation5 + $0x548] ss:$16 sps:$4 sm:$0xff]   ;;  %v5282_v36 = vld [vmem:[#allocation5 + $0x56c] ss:$16 sps:$4 sm:$0xff]  }
  0xe7   :  { %1604 = vmatprep.subr.bf16.mxu0 %v5216_v37  ;;  %1749 = vmatprep.subr.bf16.mxu1 %v5219_v38  ;;  %v1862_v37 = vld [vmem:[#allocation7 + $0x30] sm:$0xff]  ;;  %v1863_v38 = vld [vmem:[#allocation7 + $0x38] sm:$0xff] }
  0xea   :  { %1605 = vmatpush1.bf16.msra.mxu0 %v5214_v39  ;;  %1750 = vmatpush1.bf16.msra.mxu1 %v5217_v40  ;;  %v4839_v39 = vpack.c.bf16 %v1861_v30, %v1860_v29  ;;  %v1880_v40 = vld [vmem:[#allocation7 + $0xc0] sm:$0xff]  ;;  %v1870_v30 = vld [vmem:[#allocation7 + $0x70] sm:$0xff] }
  0xeb   :  { %1606 = vmatprep.subr.bf16.mxu0 %v5222_v41  ;;  %1762 = vmatprep.subr.bf16.mxu1 %v5225_v42  ;;  %v1881_v41 = vld [vmem:[#allocation7 + $0xc8] sm:$0xff]  ;;  %v4841_v42 = vpack.c.bf16 %v1879_v33, %v1878_v32  ;;  %v1904_v33 = vld [vmem:[#allocation7 + $0x180] sm:$0xff] }
  0xed   :  { %1752 = vmatmul.mubr.bf16.vlgmr.msra.gmra.mrb[4].mxu1 %v5956_v9  ;;  %v1873_v9 = vld [vmem:[#allocation7 + $0x88] sm:$0xff] }
  0xee   :  { %1607 = vmatpush1.bf16.msra.mxu0 %v5220_v43  ;;  %1763 = vmatpush1.bf16.msra.mxu1 %v5223_v44  ;;  %v4829_v18 = vpack.c.bf16 %v1873_v9, %v1872_v8  ;;  %v5280_v43 = vld [vmem:[#allocation5 + $0x568] ss:$16 sps:$4 sm:$0xff]   ;;  %v5285_v44 = vld [vmem:[#allocation5 + $0x58c] ss:$16 sps:$4 sm:$0xff]  }
  0xef   :  { %1608 = vmatprep.subr.bf16.mxu0 %v5228_v45  ;;  %1764 = vmatprep.subr.bf16.mxu1 %v5231_v46  ;;  %v1864_v45 = vld [vmem:[#allocation7 + $0x40] sm:$0xff]  ;;  %v1865_v46 = vld [vmem:[#allocation7 + $0x48] sm:$0xff] }
  0xf0   :  { %1794 = vmatprep.mubr.bf16.mxu1 %v5959_v17  ;;  %v5964_v17 = vld [vmem:[#allocation2 + $0x10] ss:$28 sps:$4 sm:$0xff]   ;;  %v5309_v8 = vld [vmem:[#allocation5 + $0x68c] ss:$16 sps:$4 sm:$0xff]  }
  0xf1   :  { %v5307_v9 = vld [vmem:[#allocation5 + $0x688] ss:$16 sps:$4 sm:$0xff]  }
  0xf2   :  { %1609 = vmatpush1.bf16.msra.mxu0 %v5226_v47  ;;  %1765 = vmatpush1.bf16.msra.mxu1 %v5229_v48  ;;  %v4843_v47 = vpack.c.bf16 %v1863_v38, %v1862_v37  ;;  %v1882_v48 = vld [vmem:[#allocation7 + $0xd0] sm:$0xff]  ;;  %v1889_v37 = vld [vmem:[#allocation7 + $0x108] sm:$0xff] }
  0xf3   :  { %1610 = vmatprep.subr.bf16.mxu0 %v5234_v49  ;;  %1766 = vmatprep.subr.bf16.mxu1 %v5237_v50  ;;  %v1883_v49 = vld [vmem:[#allocation7 + $0xd8] sm:$0xff]  ;;  %v4845_v50 = vpack.c.bf16 %v1881_v41, %v1880_v40  ;;  %v1906_v38 = vld [vmem:[#allocation7 + $0x190] sm:$0xff] }
  0xf6   :  { %1611 = vmatpush1.bf16.msra.mxu0 %v5232_v51  ;;  %1767 = vmatpush1.bf16.msra.mxu1 %v5235_v52  ;;  %v5283_v51 = vld [vmem:[#allocation5 + $0x588] ss:$16 sps:$4 sm:$0xff]   ;;  %v5288_v52 = vld [vmem:[#allocation5 + $0x5ac] ss:$16 sps:$4 sm:$0xff]  }
  0xf7   :  { %1612 = vmatprep.subr.bf16.mxu0 %v5240_v53  ;;  %1768 = vmatprep.subr.bf16.mxu1 %v5243_v54  ;;  %v1866_v53 = vld [vmem:[#allocation7 + $0x50] sm:$0xff]  ;;  %v1867_v54 = vld [vmem:[#allocation7 + $0x58] sm:$0xff] }
  0xfa   :  { %1613 = vmatpush1.bf16.msra.mxu0 %v5238_v55  ;;  %1769 = vmatpush1.bf16.msra.mxu1 %v5241_v56  ;;  %v4847_v55 = vpack.c.bf16 %v1865_v46, %v1864_v45  ;;  %v4849_v56 = vpack.c.bf16 %v1883_v49, %v1882_v48  ;;  %v1909_v45 = vld [vmem:[#allocation7 + $0x1a8] sm:$0xff]  ;;  %v1892_v48 = vld [vmem:[#allocation7 + $0x120] sm:$0xff] }
  0xfb   :  { %1614 = vmatprep.subr.bf16.mxu0 %v5246_v57  ;;  %1770 = vmatprep.subr.bf16.mxu1 %v5249_v58  ;;  %v5286_v57 = vld [vmem:[#allocation5 + $0x5a8] ss:$16 sps:$4 sm:$0xff]   ;;  %v5291_v58 = vld [vmem:[#allocation5 + $0x5cc] ss:$16 sps:$4 sm:$0xff]  }
  0xfc   :  { %v1893_v49 = vld [vmem:[#allocation7 + $0x128] sm:$0xff] }
  0xfe   :  { %1615 = vmatpush1.bf16.msra.mxu0 %v5244_v59  ;;  %1771 = vmatpush1.bf16.msra.mxu1 %v5247_v60  ;;  %v4851_v59 = vpack.c.bf16 %v1867_v54, %v1866_v53  ;;  %v5289_v60 = vld [vmem:[#allocation5 + $0x5c8] ss:$16 sps:$4 sm:$0xff]   ;;  %v1894_v54 = vld [vmem:[#allocation7 + $0x130] sm:$0xff] }
  0xff   :  { %1616 = vmatprep.subr.bf16.mxu0 %v5252_v61  ;;  %1772 = vmatprep.subr.bf16.mxu1 %v5255_v62  ;;  %v5294_v61 = vld [vmem:[#allocation5 + $0x5ec] ss:$16 sps:$4 sm:$0xff]   ;;  %v5292_v62 = vld [vmem:[#allocation5 + $0x5e8] ss:$16 sps:$4 sm:$0xff]  }
 0x102   :  { %1617 = vmatpush1.bf16.msra.mxu0 %v5250_v63  ;;  %1773 = vmatpush1.bf16.msra.mxu1 %v5253_v1  ;;  %v5297_v63 = vld [vmem:[#allocation5 + $0x60c] ss:$16 sps:$4 sm:$0xff]   ;;  %v5295_v1 = vld [vmem:[#allocation5 + $0x608] ss:$16 sps:$4 sm:$0xff]  }
 0x103   :  { %1618 = vmatprep.subr.bf16.mxu0 %v5258_v2  ;;  %1774 = vmatprep.subr.bf16.mxu1 %v5261_v3  ;;  %v5300_v2 = vld [vmem:[#allocation5 + $0x62c] ss:$16 sps:$4 sm:$0xff]   ;;  %v5298_v3 = vld [vmem:[#allocation5 + $0x628] ss:$16 sps:$4 sm:$0xff]  }
 0x106   :  { %1619 = vmatpush1.bf16.msra.mxu0 %v5256_v4  ;;  %1775 = vmatpush1.bf16.msra.mxu1 %v5259_v5  ;;  %v5303_v4 = vld [vmem:[#allocation5 + $0x64c] ss:$16 sps:$4 sm:$0xff]   ;;  %v5301_v5 = vld [vmem:[#allocation5 + $0x648] ss:$16 sps:$4 sm:$0xff]  }
 0x107   :  { %1620 = vmatprep.subr.bf16.mxu0 %v5264_v6  ;;  %1776 = vmatprep.subr.bf16.mxu1 %v5267_v7  ;;  %v5306_v6 = vld [vmem:[#allocation5 + $0x66c] ss:$16 sps:$4 sm:$0xff]   ;;  %v5304_v7 = vld [vmem:[#allocation5 + $0x668] ss:$16 sps:$4 sm:$0xff]  }
 0x10a   :  { %1621 = vmatpush1.bf16.msra.mxu0 %v5262_v10  ;;  %1777 = vmatpush1.bf16.msra.mxu1 %v5265_v11  ;;  %v5312_v10 = vld [vmem:[#allocation5 + $0x6ac] ss:$16 sps:$4 sm:$0xff]   ;;  %v5310_v11 = vld [vmem:[#allocation5 + $0x6a8] ss:$16 sps:$4 sm:$0xff]  }
 0x10b   :  { %1778 = vmatprep.subr.bf16.mxu1 %v5273_v12  ;;  %4830 = vmatprep.subr.bf16.mxu0 %v4829_v18  ;;  %v5315_v12 = vld [vmem:[#allocation5 + $0x6cc] ss:$16 sps:$4 sm:$0xff]  }
 0x10c   :  { %v5318_v18 = vld [vmem:[#allocation5 + $0x6ec] ss:$16 sps:$4 sm:$0xff]  }
 0x10d   :  { %1623 = vmatmul.mubr.bf16.vlgmr.msra.gmra.mrb[0].mxu0 %v5964_v17 }
 0x10e   :  { %1779 = vmatpush1.bf16.msra.mxu1 %v5271_v19  ;;  %4832 = vmatpush3.bf16.msra.mxu0 %v4831_v23  ;;  %v5316_v19 = vld [vmem:[#allocation5 + $0x6e8] ss:$16 sps:$4 sm:$0xff]   ;;  %v4853_v23 = vpack.c.bf16 %v1885_v22, %v1884_v21 }
 0x10f   :  { %1780 = vmatprep.subr.bf16.mxu1 %v5276_v20  ;;  %4834 = vmatprep.subr.bf16.mxu0 %v4833_v26  ;;  %v5699_v20 = vld [vmem:[#allocation2 + $0x18] ss:$28 sps:$4 sm:$0xff]   ;;  %v4855_v26 = vpack.c.bf16 %v1869_v25, %v1868_v24  ;;  %v2081_v22 = vld [vmem:[%s6156_s1] sm:$0xff]  ;;  %v328_v24 = vlaneseq }
 0x110   :  { %2085 = vrot.lane.b32.xlu0 %v2081_v22, %s5829_s18 }
 0x111   :  { %v5985_v25 = vshrl.u32 %v328_v24, 7 }
 0x112   :  { %1781 = vmatpush1.bf16.msra.mxu1 %v5274_v27  ;;  %4836 = vmatpush3.bf16.msra.mxu0 %v4835_v31  ;;  %v1886_v27 = vld [vmem:[#allocation7 + $0xf0] sm:$0xff]  ;;  %v1871_v31 = vld [vmem:[#allocation7 + $0x78] sm:$0xff] }
 0x113   :  { %1782 = vmatprep.subr.bf16.mxu1 %v5279_v28  ;;  %4838 = vmatprep.subr.bf16.mxu0 %v4837_v34  ;;  %v1887_v28 = vld [vmem:[#allocation7 + $0xf8] sm:$0xff]  ;;  %v4859_v32 = vpack.c.bf16 %v1871_v31, %v1870_v30  ;;  %v1905_v34 = vld [vmem:[#allocation7 + $0x188] sm:$0xff] }
 0x114   :  { %v4857_v29 = vpack.c.bf16 %v1887_v28, %v1886_v27  ;;  %v326_v27 = vld [vmem:[%s6158_s3] sm:$0xf]  ;;  %v5994_v28 = vsub.s32 1, %v5985_v25 }
 0x116   :  { %1783 = vmatpush1.bf16.msra.mxu1 %v5277_v35  ;;  %4840 = vmatpush3.bf16.msra.mxu0 %v4839_v39  ;;  %v1888_v35 = vld [vmem:[#allocation7 + $0x100] sm:$0xff]  ;;  %v1907_v39 = vld [vmem:[#allocation7 + $0x198] sm:$0xff]  ;;  %v335_v30 = vrot.slane %v326_v27, %v5994_v28 }
 0x117   :  { %1784 = vmatprep.subr.bf16.mxu1 %v5282_v36  ;;  %4842 = vmatprep.subr.bf16.mxu0 %v4841_v42  ;;  %v4861_v36 = vpack.c.bf16 %v1905_v34, %v1904_v33  ;;  %v4863_v40 = vpack.c.bf16 %v1889_v37, %v1888_v35  ;;  %v4865_v41 = vpack.c.bf16 %v1907_v39, %v1906_v38  ;;  %v1890_v42 = vld [vmem:[#allocation7 + $0x110] sm:$0xff] }
 0x11a   :  { %1785 = vmatpush1.bf16.msra.mxu1 %v5280_v43  ;;  %4844 = vmatpush3.bf16.msra.mxu0 %v4843_v47  ;;  %v1891_v43 = vld [vmem:[#allocation7 + $0x118] sm:$0xff] }
 0x11b   :  { %1786 = vmatprep.subr.bf16.mxu1 %v5285_v44  ;;  %4846 = vmatprep.subr.bf16.mxu0 %v4845_v50  ;;  %v1908_v44 = vld [vmem:[#allocation7 + $0x1a0] sm:$0xff]  ;;  %v4867_v46 = vpack.c.bf16 %v1891_v43, %v1890_v42  ;;  %v1910_v50 = vld [vmem:[#allocation7 + $0x1b0] sm:$0xff] }
 0x11c   :  { %v4869_v47 = vpack.c.bf16 %v1909_v45, %v1908_v44 }
 0x11e   :  { %1787 = vmatpush1.bf16.msra.mxu1 %v5283_v51  ;;  %4848 = vmatpush3.bf16.msra.mxu0 %v4847_v55  ;;  %v1911_v51 = vld [vmem:[#allocation7 + $0x1b8] sm:$0xff] }
 0x11f   :  { %1788 = vmatprep.subr.bf16.mxu1 %v5288_v52  ;;  %4850 = vmatprep.subr.bf16.mxu0 %v4849_v56  ;;  %v4871_v52 = vpack.c.bf16 %v1893_v49, %v1892_v48  ;;  %v4873_v53 = vpack.c.bf16 %v1911_v51, %v1910_v50  ;;  %v1895_v55 = vld [vmem:[#allocation7 + $0x138] sm:$0xff]  ;;  %v1912_v56 = vld [vmem:[#allocation7 + $0x1c0] sm:$0xff] }
 0x122   :  { %1789 = vmatpush1.bf16.msra.mxu1 %v5286_v57  ;;  %4852 = vmatpush3.bf16.msra.mxu0 %v4851_v59  ;;  %v1913_v57 = vld [vmem:[#allocation7 + $0x1c8] sm:$0xff] }
 0x123   :  { %1790 = vmatprep.subr.bf16.mxu1 %v5291_v58  ;;  %4854 = vmatprep.subr.bf16.mxu0 %v4853_v23  ;;  %v4875_v58 = vpack.c.bf16 %v1895_v55, %v1894_v54  ;;  %v4877_v59 = vpack.c.bf16 %v1913_v57, %v1912_v56  ;;  %v2082_v23 = vld [vmem:[%s6156_s1 + $0x8] sm:$0xff] }
 0x124   :  { %2087 = vrot.lane.b32.xlu0 %v2082_v23, %s5829_s18 }
 0x126   :  { %1791 = vmatpush1.bf16.msra.mxu1 %v5289_v60  ;;  %4856 = vmatpush3.bf16.msra.mxu0 %v4855_v26  ;;  %v1896_v60 = vld [vmem:[#allocation7 + $0x140] sm:$0xff]  ;;  %v5988_v26 = vsub.s32 0, %v5985_v25 }
 0x127   :  { %1792 = vmatprep.subr.bf16.mxu1 %v5294_v61  ;;  %4858 = vmatprep.subr.bf16.mxu0 %v4857_v29  ;;  %v1897_v61 = vld [vmem:[#allocation7 + $0x148] sm:$0xff] }
 0x128   :  { %v331_v29 = vrot.slane %v326_v27, %v5988_v26 }
 0x12a   :  { %1793 = vmatpush1.bf16.msra.mxu1 %v5292_v62  ;;  %4860 = vmatpush3.bf16.msra.mxu0 %v4859_v32  ;;  %v1914_v62 = vld [vmem:[#allocation7 + $0x1d0] sm:$0xff] }
 0x12b   :  { %1805 = vmatprep.subr.bf16.mxu1 %v5297_v63  ;;  %v1915_v63 = vld [vmem:[#allocation7 + $0x1d8] sm:$0xff] }
 0x12d   :  { %1795 = vmatmul.mubr.bf16.vlgmr.msra.gmra.mrb[4].mxu1 %v5964_v17 }
 0x12e   :  { %1806 = vmatpush1.bf16.msra.mxu1 %v5295_v1  ;;  %1837 = vmatprep.mubr.bf16.mxu1 %v5828_v0  ;;  %v4879_v1 = vpack.c.bf16 %v1897_v61, %v1896_v60 }
 0x12f   :  { %1807 = vmatprep.subr.bf16.mxu1 %v5300_v2  ;;  %v4881_v2 = vpack.c.bf16 %v1915_v63, %v1914_v62 }
 0x132   :  { %1808 = vmatpush1.bf16.msra.mxu1 %v5298_v3  ;;  %v1898_v3 = vld [vmem:[#allocation7 + $0x150] sm:$0xff] }
 0x133   :  { %1809 = vmatprep.subr.bf16.mxu1 %v5303_v4  ;;  %v1899_v4 = vld [vmem:[#allocation7 + $0x158] sm:$0xff] }
 0x136   :  { %1810 = vmatpush1.bf16.msra.mxu1 %v5301_v5  ;;  %v1916_v5 = vld [vmem:[#allocation7 + $0x1e0] sm:$0xff] }
 0x137   :  { %1811 = vmatprep.subr.bf16.mxu1 %v5306_v6  ;;  %v1917_v6 = vld [vmem:[#allocation7 + $0x1e8] sm:$0xff] }
 0x13a   :  { %1812 = vmatpush1.bf16.msra.mxu1 %v5304_v7  ;;  %v4883_v7 = vpack.c.bf16 %v1899_v4, %v1898_v3 }
 0x13b   :  { %1813 = vmatprep.subr.bf16.mxu1 %v5309_v8  ;;  %v4885_v8 = vpack.c.bf16 %v1917_v6, %v1916_v5 }
 0x13e   :  { %1814 = vmatpush1.bf16.msra.mxu1 %v5307_v9  ;;  %v1900_v9 = vld [vmem:[#allocation7 + $0x160] sm:$0xff] }
 0x13f   :  { %1815 = vmatprep.subr.bf16.mxu1 %v5312_v10  ;;  %v1901_v10 = vld [vmem:[#allocation7 + $0x168] sm:$0xff] }
 0x140   :  { %v5969_v13 = vpop.f32.mrb[0].mxu1 }
 0x141   :  { %v5971_v14 = vpop.f32.mrb[1].mxu1 }
 0x142   :  { %v5973_v15 = vpop.f32.mrb[2].mxu1  ;;  %1816 = vmatpush1.bf16.msra.mxu1 %v5310_v11  ;;  %v4887_v11 = vpack.c.bf16 %v1901_v10, %v1900_v9 }
 0x143   :  { %v5975_v17 = vpop.f32.mrb[3].mxu1  ;;  %1817 = vmatprep.subr.bf16.mxu1 %v5315_v12  ;;  %v1918_v12 = vld [vmem:[#allocation7 + $0x1f0] sm:$0xff] }
 0x146   :  { %1818 = vmatpush1.bf16.msra.mxu1 %v5313_v16  ;;  %v1919_v16 = vld [vmem:[#allocation7 + $0x1f8] sm:$0xff] }
 0x147   :  { %1819 = vmatprep.subr.bf16.mxu1 %v5318_v18  ;;  %v4889_v18 = vpack.c.bf16 %v1919_v16, %v1918_v12 }
 0x14a   :  { %1820 = vmatpush1.bf16.msra.mxu1 %v5316_v19  ;;  %v1902_v19 = vld [vmem:[#allocation7 + $0x170] sm:$0xff] }
 0x14b   :  { %4862 = vmatprep.subr.bf16.mxu1 %v4861_v36 }
 0x14d   :  { %1838 = vmatmul.mubr.bf16.vlgmr.msra.gmra.mrb[4].mxu1 %v5699_v20  ;;  %v1903_v20 = vld [vmem:[#allocation7 + $0x178] sm:$0xff] }
 0x14e   :  { %4864 = vmatpush3.bf16.msra.mxu1 %v4863_v40  ;;  %v4891_v21 = vpack.c.bf16 %v1903_v20, %v1902_v19 }
 0x14f   :  { %4866 = vmatprep.subr.bf16.mxu1 %v4865_v41 }
 0x152   :  { %4868 = vmatpush3.bf16.msra.mxu1 %v4867_v46 }
 0x153   :  { %4870 = vmatprep.subr.bf16.mxu1 %v4869_v47  ;;  %v6003_v47 = vsub.s32 2, %v5985_v25 }
 0x156   :  { %4872 = vmatpush3.bf16.msra.mxu1 %v4871_v52 }
 0x157   :  { %4874 = vmatprep.subr.bf16.mxu1 %v4873_v53 }
 0x15a   :  { %4876 = vmatpush3.bf16.msra.mxu1 %v4875_v58 }
 0x15b   :  { %4878 = vmatprep.subr.bf16.mxu1 %v4877_v59 }
 0x15e   :  { %4880 = vmatpush3.bf16.msra.mxu1 %v4879_v1 }
 0x15f   :  { %4882 = vmatprep.subr.bf16.mxu1 %v4881_v2  ;;  %v4482_v2 = vld [vmem:[%s6160_s5] ss:$0 sm:$0xff]  ;;  %s5831_s5 = smov 125  }
 0x162   :  { %4884 = vmatpush3.bf16.msra.mxu1 %v4883_v7 }
 0x163   :  { %4886 = vmatprep.subr.bf16.mxu1 %v4885_v8 }
 0x166   :  { %4888 = vmatpush3.bf16.msra.mxu1 %v4887_v11 }
 0x167   :  { %4890 = vmatprep.subr.bf16.mxu1 %v4889_v18  ;;  %v5830_v18 = vmov 1  }
 0x168   :  { %4968 = vset.pattern.permute.xlu1 %v5830_v18 }
 0x16a   :  { %4892 = vmatpush3.bf16.msra.mxu1 %v4891_v21 }
 0x182   :  { %v2086_v20 = vpop.permute.xlu0 %2085 }
 0x196   :  { %v2088_v23 = vpop.permute.xlu0 %2087 }
 0x1e0   :  { %v1624_v31 = vpop.f32.mrb[0].mxu0 }
 0x1e1   :  { %v4893_v32 = vadd.f32 %v1624_v31, %v331_v29  ;;  %v1626_v33 = vpop.f32.mrb[1].mxu0  ;;  %v5322_v31 = vld [vmem:[#allocation8 + $0x8] ss:$28 sps:$4 sm:$0xff]  }
 0x1e2   :  { %v4895_v34 = vadd.f32 %v1626_v33, %v335_v30  ;;  %v1628_v35 = vpop.f32.mrb[2].mxu0  ;;  %v5327_v33 = vld [vmem:[#allocation8 + $0x3c] ss:$28 sps:$4 sm:$0xff]  }
 0x1e3   :  { %v4894_v36 = vadd.f32 %v4893_v32, %v5969_v13  ;;  %v4897_v37 = vadd.f32 %v1628_v35, %v331_v29  ;;  %v1630_v38 = vpop.f32.mrb[3].mxu0  ;;  %v6006_v13 = vsub.s32 3, %v5985_v25  ;;  %v5319_v29 = vld [vmem:[#allocation8] ss:$28 sps:$4 sm:$0xff]   ;;  %v5324_v32 = vld [vmem:[#allocation8 + $0xc] ss:$28 sps:$4 sm:$0xff]  }
 0x1e4   :  { %v4896_v39 = vadd.f32 %v4895_v34, %v5971_v14  ;;  %v4899_v40 = vadd.f32 %v1630_v38, %v335_v30  ;;  %v339_v14 = vrot.slane %v326_v27, %v6003_v47  ;;  %v5321_v30 = vld [vmem:[#allocation8 + $0x4] ss:$28 sps:$4 sm:$0xff]   ;;  %3890 = vmatprep.subr.bf16.mxu1 %v5324_v32  ;;  %v5325_v35 = vld [vmem:[#allocation8 + $0x38] ss:$28 sps:$4 sm:$0xff]  }
 0x1e5   :  { %v4898_v41 = vadd.f32 %v4897_v37, %v5973_v15  ;;  %v1848_v44 = vmax.f32 %v4894_v36, 0.0  ;;  %v343_v15 = vrot.slane %v326_v27, %v6006_v13  ;;  %3804 = vmatprep.subr.bf16.mxu0 %v5321_v30  ;;  %v5330_v34 = vld [vmem:[#allocation8 + $0x44] ss:$28 sps:$4 sm:$0xff]   ;;  %v5333_v37 = vld [vmem:[#allocation8 + $0x74] ss:$28 sps:$4 sm:$0xff]  }
 0x1e6   :  { %v1849_v42 = vmax.f32 %v4896_v39, 0.0  ;;  %v4900_v43 = vadd.f32 %v4899_v40, %v5975_v17  ;;  %v5328_v36 = vld [vmem:[#allocation8 + $0x40] ss:$28 sps:$4 sm:$0xff]   ;;  %v5331_v39 = vld [vmem:[#allocation8 + $0x70] ss:$28 sps:$4 sm:$0xff]  }
 0x1e7   :  { %v1852_v46 = vmax.f32 %v4898_v41, 0.0  ;;  %v5336_v38 = vld [vmem:[#allocation8 + $0x7c] ss:$28 sps:$4 sm:$0xff]   ;;  %v5339_v41 = vld [vmem:[#allocation8 + $0xac] ss:$28 sps:$4 sm:$0xff]  }
 0x1e8   :  { %v1853_v45 = vmax.f32 %v4900_v43, 0.0  ;;  %1991 = vmatprep.mubr.f32.mxu0 %v1849_v42  ;;  %v5334_v40 = vld [vmem:[#allocation8 + $0x78] ss:$28 sps:$4 sm:$0xff]   ;;  %v5337_v43 = vld [vmem:[#allocation8 + $0xa8] ss:$28 sps:$4 sm:$0xff]  }
 0x1e9   :  { %1992 = vmatmul.mubr.f32.vlgmr.msra.gmra.mrb[4].mxu0 %v1848_v44  ;;  %v5342_v42 = vld [vmem:[#allocation8 + $0xb4] ss:$28 sps:$4 sm:$0xff]   ;;  %v5391_v30 = vld [vmem:[#allocation8 + $0x2a0] ss:$28 sps:$4 sm:$0xff]   ;;  %v5394_v32 = vld [vmem:[#allocation8 + $0x2a8] ss:$28 sps:$4 sm:$0xff]  }
 0x1ea   :  { %1996 = vmatprep.mubr.f32.mxu0 %v1853_v45  ;;  %3805 = vmatpush1.bf16.msra.mxu0 %v5319_v29  ;;  %v5340_v44 = vld [vmem:[#allocation8 + $0xb0] ss:$28 sps:$4 sm:$0xff]   ;;  %v5345_v45 = vld [vmem:[#allocation8 + $0xe4] ss:$28 sps:$4 sm:$0xff]  }
 0x1eb   :  { %3806 = vmatprep.subr.bf16.mxu0 %v5327_v33  ;;  %v5396_v29 = vld [vmem:[#allocation8 + $0x2ac] ss:$28 sps:$4 sm:$0xff]   ;;  %v5832_v33 = vmov 2  }
 0x1ed   :  { %1997 = vmatmul.mubr.f32.gmra.mrb[6].mxu0 %v1852_v46  ;;  %v5348_v46 = vld [vmem:[#allocation8 + $0xec] ss:$28 sps:$4 sm:$0xff]  }
 0x1ee   :  { %3807 = vmatpush1.bf16.msra.mxu0 %v5325_v35  ;;  %v5400_v35 = vld [vmem:[#allocation8 + $0x2e0] ss:$28 sps:$4 sm:$0xff]  }
 0x1ef   :  { %3808 = vmatprep.subr.bf16.mxu0 %v5333_v37  ;;  %v5405_v37 = vld [vmem:[#allocation8 + $0x314] ss:$28 sps:$4 sm:$0xff]  }
 0x1f2   :  { %3809 = vmatpush1.bf16.msra.mxu0 %v5331_v39  ;;  %v5403_v39 = vld [vmem:[#allocation8 + $0x310] ss:$28 sps:$4 sm:$0xff]  }
 0x1f3   :  { %3810 = vmatprep.subr.bf16.mxu0 %v5339_v41  ;;  %v5411_v41 = vld [vmem:[#allocation8 + $0x34c] ss:$28 sps:$4 sm:$0xff]  }
 0x1f6   :  { %3811 = vmatpush1.bf16.msra.mxu0 %v5337_v43  ;;  %v5409_v43 = vld [vmem:[#allocation8 + $0x348] ss:$28 sps:$4 sm:$0xff]  }
 0x1f7   :  { %3812 = vmatprep.subr.bf16.mxu0 %v5345_v45  ;;  %v5417_v45 = vld [vmem:[#allocation8 + $0x384] ss:$28 sps:$4 sm:$0xff]  }
 0x220   :  { %v1839_v48 = vpop.f32.mrb[4].mxu1 }
 0x221   :  { %v4901_v49 = vadd.f32 %v1839_v48, %v339_v14  ;;  %v1841_v17 = vpop.f32.mrb[5].mxu1  ;;  %v5351_v48 = vld [vmem:[#allocation8 + $0x11c] ss:$28 sps:$4 sm:$0xff]  }
 0x222   :  { %v4902_v50 = vadd.f32 %v1841_v17, %v343_v15  ;;  %v1843_v51 = vpop.f32.mrb[6].mxu1  ;;  %v5349_v17 = vld [vmem:[#allocation8 + $0x118] ss:$28 sps:$4 sm:$0xff]  }
 0x223   :  { %v1845_v52 = vpop.f32.mrb[7].mxu1  ;;  %v1850_v55 = vmax.f32 %v4901_v49, 0.0  ;;  %v4903_v56 = vadd.f32 %v1843_v51, %v339_v14  ;;  %v5343_v14 = vld [vmem:[#allocation8 + $0xe0] ss:$28 sps:$4 sm:$0xff]   ;;  %v5357_v51 = vld [vmem:[#allocation8 + $0x154] ss:$28 sps:$4 sm:$0xff]  }
 0x224   :  { %v1851_v53 = vmax.f32 %v4902_v50, 0.0  ;;  %v4904_v54 = vadd.f32 %v1845_v52, %v343_v15  ;;  %v5346_v15 = vld [vmem:[#allocation8 + $0xe8] ss:$28 sps:$4 sm:$0xff]   ;;  %3813 = vmatpush1.bf16.msra.mxu0 %v5343_v14  ;;  %v5352_v50 = vld [vmem:[#allocation8 + $0x120] ss:$28 sps:$4 sm:$0xff]  }
 0x225   :  { %v1854_v58 = vmax.f32 %v4903_v56, 0.0  ;;  %v5354_v49 = vld [vmem:[#allocation8 + $0x124] ss:$28 sps:$4 sm:$0xff]   ;;  %3814 = vmatprep.subr.bf16.mxu0 %v5351_v48  ;;  %v5360_v52 = vld [vmem:[#allocation8 + $0x15c] ss:$28 sps:$4 sm:$0xff]   ;;  %v6045_v48 = vsub.s32 4, %v5985_v25 }
 0x226   :  { %v1855_v57 = vmax.f32 %v4904_v54, 0.0  ;;  %2066 = vmatprep.mubr.f32.mxu1 %v1851_v53  ;;  %v5355_v53 = vld [vmem:[#allocation8 + $0x150] ss:$28 sps:$4 sm:$0xff]   ;;  %v5358_v54 = vld [vmem:[#allocation8 + $0x158] ss:$28 sps:$4 sm:$0xff]  }
 0x227   :  { %2067 = vmatmul.mubr.f32.vlgmr.msra.gmra.mrb[8].mxu1 %v1850_v55  ;;  %v5363_v55 = vld [vmem:[#allocation8 + $0x18c] ss:$28 sps:$4 sm:$0xff]   ;;  %v5366_v56 = vld [vmem:[#allocation8 + $0x194] ss:$28 sps:$4 sm:$0xff]  }
 0x228   :  { %2071 = vmatprep.mubr.f32.mxu1 %v1855_v57  ;;  %3891 = vmatpush1.bf16.msra.mxu1 %v5322_v31  ;;  %v5361_v57 = vld [vmem:[#allocation8 + $0x188] ss:$28 sps:$4 sm:$0xff]   ;;  %v2140_v14 = vld [vmem:[%s6161_s6 + $0x8] sm:$0x77] }
 0x229   :  { %3892 = vmatprep.subr.bf16.mxu1 %v5330_v34  ;;  %3815 = vmatpush1.bf16.msra.mxu0 %v5349_v17  ;;  %v5402_v34 = vld [vmem:[#allocation8 + $0x2e4] ss:$28 sps:$4 sm:$0xff]   ;;  %v2246_v17 = vrot.slane %v2140_v14, %v5994_v28 }
 0x22a   :  { %3816 = vmatprep.subr.bf16.mxu0 %v5357_v51 }
 0x22b   :  { %2072 = vmatmul.mubr.f32.gmra.mrb[10].mxu1 %v1854_v58  ;;  %v5364_v58 = vld [vmem:[#allocation8 + $0x190] ss:$28 sps:$4 sm:$0xff]  }
 0x22c   :  { %3893 = vmatpush1.bf16.msra.mxu1 %v5328_v36 }
 0x22d   :  { %3894 = vmatprep.subr.bf16.mxu1 %v5336_v38  ;;  %3817 = vmatpush1.bf16.msra.mxu0 %v5355_v53  ;;  %v5408_v38 = vld [vmem:[#allocation8 + $0x31c] ss:$28 sps:$4 sm:$0xff]   ;;  %v2169_v53 = vrot.slane %v2140_v14, %v6045_v48 }
 0x22e   :  { %3818 = vmatprep.subr.bf16.mxu0 %v5363_v55  ;;  %v6057_v55 = vsub.s32 5, %v5985_v25 }
 0x230   :  { %3895 = vmatpush1.bf16.msra.mxu1 %v5334_v40  ;;  %v5406_v40 = vld [vmem:[#allocation8 + $0x318] ss:$28 sps:$4 sm:$0xff]  }
 0x231   :  { %3896 = vmatprep.subr.bf16.mxu1 %v5342_v42  ;;  %3819 = vmatpush1.bf16.msra.mxu0 %v5361_v57  ;;  %v5414_v42 = vld [vmem:[#allocation8 + $0x354] ss:$28 sps:$4 sm:$0xff]  }
 0x234   :  { %3897 = vmatpush1.bf16.msra.mxu1 %v5340_v44  ;;  %v5412_v44 = vld [vmem:[#allocation8 + $0x350] ss:$28 sps:$4 sm:$0xff]  }
 0x235   :  { %3898 = vmatprep.subr.bf16.mxu1 %v5348_v46  ;;  %v5420_v46 = vld [vmem:[#allocation8 + $0x38c] ss:$28 sps:$4 sm:$0xff]  }
 0x238   :  { %3899 = vmatpush1.bf16.msra.mxu1 %v5346_v15  ;;  %v2139_v15 = vld [vmem:[%s6161_s6] sm:$0x77] }
 0x239   :  { %3900 = vmatprep.subr.bf16.mxu1 %v5354_v49  ;;  %v2165_v49 = vrot.slane %v2140_v14, %v5988_v26  ;;  %v2157_v51 = vrot.slane %v2139_v15, %v5988_v26 }
 0x23c   :  { %3901 = vmatpush1.bf16.msra.mxu1 %v5352_v50  ;;  %v2141_v50 = vld [vmem:[%s6162_s7] sm:$0xf] }
 0x23d   :  { %3902 = vmatprep.subr.bf16.mxu1 %v5360_v52  ;;  %v2161_v52 = vrot.slane %v2139_v15, %v6045_v48  ;;  %v2210_v57 = vrot.slane %v2141_v50, %v6003_v47 }
 0x240   :  { %3903 = vmatpush1.bf16.msra.mxu1 %v5358_v54  ;;  %v2185_v54 = vrot.slane %v2165_v49, %v5988_v26 }
 0x241   :  { %3904 = vmatprep.subr.bf16.mxu1 %v5366_v56  ;;  %v6060_v56 = vsub.s32 6, %v5985_v25  ;;  %v2202_v25 = vrot.slane %v2141_v50, %v5988_v26 }
 0x244   :  { %3905 = vmatpush1.bf16.msra.mxu1 %v5364_v58  ;;  %v2266_v58 = vrot.slane %v2246_v17, %v5994_v28 }
 0x2bc   :  { %v4741_v59 = vpop.f32.mrb[4].mxu0 }
 0x2bd   :  { %v4742_v60 = vpop.f32.mrb[5].mxu0 }
 0x2be   :  { %v4743_v61 = vadd.f32 %v4742_v60, %v4741_v59  ;;  %v5369_v59 = vld [vmem:[#allocation8 + $0x1c4] ss:$28 sps:$4 sm:$0xff]   ;;  %v5372_v60 = vld [vmem:[#allocation8 + $0x1cc] ss:$28 sps:$4 sm:$0xff]  }
 0x2bf   :  { %3820 = vmatprep.subr.bf16.mxu0 %v5369_v59  ;;  %3906 = vmatprep.subr.bf16.mxu1 %v5372_v60  ;;  %v2177_v59 = vrot.slane %v2157_v51, %v5988_v26 }
 0x2c0   :  { %v4744_v62 = vpop.f32.mrb[6].mxu0  ;;  %v1994_v5 = vadd.f32 %v4743_v61, %v4482_v2  ;;  %v5367_v61 = vld [vmem:[#allocation8 + $0x1c0] ss:$28 sps:$4 sm:$0xff]  }
 0x2c1   :  { %v4745_v63 = vpop.f32.mrb[7].mxu0  ;;  %3821 = vmatpush1.bf16.msra.mxu0 %v5367_v61  ;;  %v2238_v61 = vrot.slane %v2139_v15, %v5994_v28 }
 0x2c2   :  { %v4746_v1 = vadd.f32 %v4745_v63, %v4744_v62  ;;  %v5370_v62 = vld [vmem:[#allocation8 + $0x1c8] ss:$28 sps:$4 sm:$0xff]   ;;  %v5375_v63 = vld [vmem:[#allocation8 + $0x1fc] ss:$28 sps:$4 sm:$0xff]  }
 0x2c3   :  { %3907 = vmatpush1.bf16.msra.mxu1 %v5370_v62  ;;  %3822 = vmatprep.subr.bf16.mxu0 %v5375_v63  ;;  %v2181_v63 = vrot.slane %v2161_v52, %v5988_v26 }
 0x2c4   :  { %v1999_v10 = vadd.f32 %v4746_v1, %v4482_v2  ;;  %v5378_v1 = vld [vmem:[#allocation8 + $0x204] ss:$28 sps:$4 sm:$0xff]   ;;  %v5373_v2 = vld [vmem:[#allocation8 + $0x1f8] ss:$28 sps:$4 sm:$0xff]  }
 0x2c5   :  { %3908 = vmatprep.subr.bf16.mxu1 %v5378_v1  ;;  %3823 = vmatpush1.bf16.msra.mxu0 %v5373_v2  ;;  %v2189_v1 = vrot.slane %v2169_v53, %v5988_v26 }
 0x2fa   :  { %v4779_v3 = vpop.f32.mrb[8].mxu1 }
 0x2fb   :  { %v4780_v4 = vpop.f32.mrb[9].mxu1 }
 0x2fc   :  { %v4781_v6 = vadd.f32 %v4780_v4, %v4779_v3  ;;  %v5376_v3 = vld [vmem:[#allocation8 + $0x200] ss:$28 sps:$4 sm:$0xff]   ;;  %v5381_v4 = vld [vmem:[#allocation8 + $0x234] ss:$28 sps:$4 sm:$0xff]  }
 0x2fd   :  { %3909 = vmatpush1.bf16.msra.mxu1 %v5376_v3  ;;  %3824 = vmatprep.subr.bf16.mxu0 %v5381_v4  ;;  %v2242_v3 = vrot.slane %v2139_v15, %v6057_v55  ;;  %v2298_v4 = vrot.slane %v2139_v15, %v6003_v47 }
 0x2fe   :  { %v6013_v7 = vadd.f32 %v4781_v6, %v1994_v5  ;;  %v4782_v8 = vpop.f32.mrb[10].mxu1  ;;  %v5384_v5 = vld [vmem:[#allocation8 + $0x23c] ss:$28 sps:$4 sm:$0xff]   ;;  %v5379_v6 = vld [vmem:[#allocation8 + $0x230] ss:$28 sps:$4 sm:$0xff]  }
 0x2ff   :  { %v4783_v9 = vpop.f32.mrb[11].mxu1  ;;  %3910 = vmatprep.subr.bf16.mxu1 %v5384_v5  ;;  %3825 = vmatpush1.bf16.msra.mxu0 %v5379_v6  ;;  %v2302_v5 = vrot.slane %v2139_v15, %v6060_v56  ;;  %v2306_v6 = vrot.slane %v2140_v14, %v6003_v47 }
 0x300   :  { %v2077_v11 = vmul.f32 1.442695, %v6013_v7  ;;  %v4784_v12 = vadd.f32 %v4783_v9, %v4782_v8  ;;  %v5382_v8 = vld [vmem:[#allocation8 + $0x238] ss:$28 sps:$4 sm:$0xff]   ;;  %v2105_v31 = vmul.f32 %v6013_v7, %v6013_v7 }
 0x301   :  { %3911 = vmatpush1.bf16.msra.mxu1 %v5382_v8  ;;  %v2206_v8 = vrot.slane %v2141_v50, %v5994_v28 }
 0x302   :  { %5639 = vpow2.f32 %v2077_v11  ;;  %v6016_v16 = vadd.f32 %v4784_v12, %v1999_v10  ;;  %v5387_v12 = vld [vmem:[#allocation8 + $0x26c] ss:$28 sps:$4 sm:$0xff]  }
 0x303   :  { %3826 = vmatprep.subr.bf16.mxu0 %v5387_v12 }
 0x304   :  { %v2079_v19 = vmul.f32 1.442695, %v6016_v16  ;;  %v2106_v36 = vmul.f32 %v6016_v16, %v6016_v16 }
 0x306   :  { %5641 = vpow2.f32 %v2079_v19  ;;  %v5390_v19 = vld [vmem:[#allocation8 + $0x274] ss:$28 sps:$4 sm:$0xff]  }
 0x307   :  { %3912 = vmatprep.subr.bf16.mxu1 %v5390_v19  ;;  %v2250_v19 = vrot.slane %v2140_v14, %v6057_v55 }
 0x30c   :  { %v6020_v21 = vpop.eup %5639 }
 0x30d   :  { %v2091_v22 = vmul.f32 %v6020_v21, %v2086_v20 }
 0x30f   :  { %2095 = vrot.lane.b32.xlu1 %v2091_v22, %s5831_s5  ;;  %v5385_v22 = vld [vmem:[#allocation8 + $0x268] ss:$28 sps:$4 sm:$0xff]  }
 0x310   :  { %v6024_v24 = vpop.eup %5641  ;;  %3827 = vmatpush1.bf16.msra.mxu0 %v5385_v22  ;;  %v2310_v22 = vrot.slane %v2140_v14, %v6060_v56 }
 0x311   :  { %v2092_v27 = vmul.f32 %v6024_v24, %v2088_v23  ;;  %v5388_v23 = vld [vmem:[#allocation8 + $0x270] ss:$28 sps:$4 sm:$0xff]  }
 0x312   :  { %3913 = vmatpush1.bf16.msra.mxu1 %v5388_v23 }
 0x313   :  { %2097 = vrot.lane.b32.xlu1 %v2092_v27, %s5831_s5  ;;  %v5393_v27 = vld [vmem:[#allocation8 + $0x2a4] ss:$28 sps:$4 sm:$0xff]   ;;  %3914 = vmatprep.subr.bf16.mxu1 %v5396_v29  ;;  %v2262_v29 = vrot.slane %v2242_v3, %v5994_v28 }
 0x314   :  { %3828 = vmatprep.subr.bf16.mxu0 %v5393_v27 }
 0x315   :  { %3829 = vmatpush1.bf16.msra.mxu0 %v5391_v30 }
 0x316   :  { %3915 = vmatpush1.bf16.msra.mxu1 %v5394_v32 }
 0x317   :  { %3916 = vmatprep.subr.bf16.mxu1 %v5402_v34  ;;  %v2322_v34 = vrot.slane %v2302_v5, %v6003_v47 }
 0x31a   :  { %3917 = vmatpush1.bf16.msra.mxu1 %v5400_v35 }
 0x31b   :  { %3918 = vmatprep.subr.bf16.mxu1 %v5408_v38 }
 0x31e   :  { %3919 = vmatpush1.bf16.msra.mxu1 %v5406_v40  ;;  %v2270_v40 = vrot.slane %v2250_v19, %v5994_v28 }
 0x31f   :  { %3920 = vmatprep.subr.bf16.mxu1 %v5414_v42  ;;  %v2330_v42 = vrot.slane %v2310_v22, %v6003_v47 }
 0x322   :  { %3921 = vmatpush1.bf16.msra.mxu1 %v5412_v44 }
 0x323   :  { %3933 = vmatprep.subr.bf16.mxu1 %v5420_v46 }
 0x381   :  { %v2096_v9 = vpop.permute.xlu1 %2095 }
 0x382   :  { %v2101_v10 = vadd.f32 %v2096_v9, %v6013_v7  ;;  %v2214_v9 = vrot.slane %v2141_v50, %v6006_v13 }
 0x384   :  { %2144 = vperm.xlu0 %4967, %v2101_v10   ;;  %2228 = vperm.xlu1 %4968, %v2101_v10  }
 0x385   :  { %v2098_v11 = vpop.permute.xlu1 %2097 }
 0x386   :  { %v2102_v20 = vadd.f32 %v2098_v11, %v6016_v16 }
 0x388   :  { %4970 = vset.pattern.permute.xlu0 %v5830_v18  ;;  %4969 = vset.pattern.permute.xlu1 %v5828_v0  ;;  %v5399_v18 = vld [vmem:[#allocation8 + $0x2dc] ss:$28 sps:$4 sm:$0xff]  }
 0x389   :  { %2232 = vperm.xlu0 %4970, %v2102_v20   ;;  %2149 = vperm.xlu1 %4969, %v2102_v20   ;;  %v5397_v0 = vld [vmem:[#allocation8 + $0x2d8] ss:$28 sps:$4 sm:$0xff]  }
 0x38a   :  { %3830 = vmatprep.subr.bf16.mxu0 %v5399_v18  ;;  %v2318_v18 = vrot.slane %v2298_v4, %v6003_v47 }
 0x38b   :  { %3831 = vmatpush1.bf16.msra.mxu0 %v5397_v0  ;;  %v2326_v0 = vrot.slane %v2306_v6, %v6003_v47 }
 0x38c   :  { %3832 = vmatprep.subr.bf16.mxu0 %v5405_v37 }
 0x38d   :  { %2109 = vrot.lane.b32.xlu0 %v2105_v31, %s5829_s18  ;;  %4971 = vset.pattern.permute.xlu1 %v5832_v33 }
 0x38e   :  { %2288 = vperm.xlu1 %4971, %v2101_v10   ;;  %4972 = vset.pattern.permute.xlu0 %v5832_v33  ;;  %v2103_v33 = vmul.f32 %v6020_v21, %v6020_v21 }
 0x38f   :  { %3833 = vmatpush1.bf16.msra.mxu0 %v5403_v39 }
 0x390   :  { %3834 = vmatprep.subr.bf16.mxu0 %v5411_v41 }
 0x392   :  { %2292 = vperm.xlu1 %4971, %v2102_v20   ;;  %v2258_v20 = vrot.slane %v2238_v61, %v5994_v28 }
 0x393   :  { %3835 = vmatpush1.bf16.msra.mxu0 %v5409_v43 }
 0x394   :  { %3847 = vmatprep.subr.bf16.mxu0 %v5417_v45 }
 0x396   :  { %2111 = vrot.lane.b32.xlu1 %v2106_v36, %s5829_s18 }
 0x403   :  { %v2145_v60 = vpop.permute.xlu0 %2144  ;;  %v2229_v62 = vpop.permute.xlu1 %2228 }
 0x404   :  { %v2192_v2 = vmul.f32 %v2185_v54, %v2145_v60  ;;  %v2273_v11 = vmul.f32 %v2266_v58, %v2229_v62  ;;  %v2190_v12 = vmul.f32 %v2177_v59, %v2145_v60  ;;  %v2191_v23 = vmul.f32 %v2181_v63, %v2145_v60 }
 0x405   :  { %v2193_v27 = vmul.f32 %v2189_v1, %v2145_v60  ;;  %v2271_v41 = vmul.f32 %v2258_v20, %v2229_v62  ;;  %v2272_v45 = vmul.f32 %v2262_v29, %v2229_v62 }
 0x406   :  { %v2221_v10 = vadd.f32 %v2210_v57, %v2192_v2  ;;  %v2219_v39 = vadd.f32 %v2202_v25, %v2190_v12  ;;  %v2220_v43 = vadd.f32 %v2206_v8, %v2191_v23  ;;  %v2104_v23 = vmul.f32 %v6024_v24, %v6024_v24  ;;  %v5415_v24 = vld [vmem:[#allocation8 + $0x380] ss:$28 sps:$4 sm:$0xff]  }
 0x407   :  { %v2222_v44 = vadd.f32 %v2214_v9, %v2193_v27 }
 0x408   :  { %v2281_v30 = vadd.f32 %v2273_v11, %v2221_v10  ;;  %v2233_v31 = vpop.permute.xlu0 %2232  ;;  %v2150_v32 = vpop.permute.xlu1 %2149 }
 0x409   :  { %v2194_v35 = vmul.f32 %v2177_v59, %v2150_v32  ;;  %v2195_v36 = vmul.f32 %v2181_v63, %v2150_v32  ;;  %v2196_v37 = vmul.f32 %v2185_v54, %v2150_v32  ;;  %v2197_v38 = vmul.f32 %v2189_v1, %v2150_v32 }
 0x40a   :  { %v2277_v14 = vmul.f32 %v2266_v58, %v2233_v31  ;;  %v2279_v59 = vadd.f32 %v2271_v41, %v2219_v39  ;;  %v2275_v60 = vmul.f32 %v2258_v20, %v2233_v31  ;;  %v2280_v1 = vadd.f32 %v2272_v45, %v2220_v43 }
 0x40b   :  { %v2225_v21 = vadd.f32 %v2210_v57, %v2196_v37  ;;  %v2223_v15 = vadd.f32 %v2202_v25, %v2194_v35  ;;  %v2224_v49 = vadd.f32 %v2206_v8, %v2195_v36  ;;  %v2226_v51 = vadd.f32 %v2214_v9, %v2197_v38 }
 0x40c   :  { %v2110_v46 = vpop.permute.xlu0 %2109  ;;  %v2276_v2 = vmul.f32 %v2262_v29, %v2233_v31  ;;  %v2278_v3 = vmul.f32 %v2270_v40, %v2233_v31  ;;  %v2274_v57 = vmul.f32 %v2270_v40, %v2229_v62 }
 0x40d   :  { %v2115_v17 = vadd.f32 %v2110_v46, %v2103_v33  ;;  %v2289_v50 = vpop.permute.xlu1 %2288  ;;  %v2285_v63 = vadd.f32 %v2277_v14, %v2225_v21  ;;  %v2283_v25 = vadd.f32 %v2275_v60, %v2223_v15  ;;  %v5423_v21 = vld [vmem:[#allocation8 + $0x3bc] ss:$28 sps:$4 sm:$0xff]   ;;  %v5426_v46 = vld [vmem:[#allocation8 + $0x3c4] ss:$28 sps:$4 sm:$0xff]  }
 0x40e   :  { %v2331_v52 = vmul.f32 %v2318_v18, %v2289_v50  ;;  %v2332_v53 = vmul.f32 %v2322_v34, %v2289_v50  ;;  %v2333_v54 = vmul.f32 %v2326_v0, %v2289_v50  ;;  %v2334_v58 = vmul.f32 %v2330_v42, %v2289_v50  ;;  %v5421_v14 = vld [vmem:[#allocation8 + $0x3b8] ss:$28 sps:$4 sm:$0xff]   ;;  %v5424_v15 = vld [vmem:[#allocation8 + $0x3c0] ss:$28 sps:$4 sm:$0xff]   ;;  %v5427_v50 = vld [vmem:[#allocation8 + $0x3f0] ss:$28 sps:$4 sm:$0xff]  }
 0x40f   :  { %v2117_v61 = vsub.f32 %v2115_v17, %v6013_v7  ;;  %v2284_v9 = vadd.f32 %v2276_v2, %v2224_v49  ;;  %v2286_v11 = vadd.f32 %v2278_v3, %v2226_v51  ;;  %v2282_v7 = vadd.f32 %v2274_v57, %v2222_v44  ;;  %v5429_v49 = vld [vmem:[#allocation8 + $0x3f4] ss:$28 sps:$4 sm:$0xff]   ;;  %v5432_v17 = vld [vmem:[#allocation8 + $0x3fc] ss:$28 sps:$4 sm:$0xff]   ;;  %v5441_v60 = vld [vmem:[#allocation8 + $0x464] ss:$28 sps:$4 sm:$0xff]  }
 0x410   :  { %v2341_v4 = vadd.f32 %v2333_v54, %v2281_v30  ;;  %v2339_v8 = vadd.f32 %v2331_v52, %v2279_v59  ;;  %v2340_v10 = vadd.f32 %v2332_v53, %v2280_v1  ;;  %v5430_v51 = vld [vmem:[#allocation8 + $0x3f8] ss:$28 sps:$4 sm:$0xff]   ;;  %v5435_v52 = vld [vmem:[#allocation8 + $0x42c] ss:$28 sps:$4 sm:$0xff]   ;;  %v5450_v3 = vld [vmem:[#allocation8 + $0x4a4] ss:$28 sps:$4 sm:$0xff]  }
 0x411   :  { %v4483_v5 = vadd.f32 -0.5, %v2117_v61  ;;  %v2293_v6 = vpop.permute.xlu1 %2292  ;;  %v2342_v32 = vadd.f32 %v2334_v58, %v2282_v7  ;;  %v5438_v53 = vld [vmem:[#allocation8 + $0x434] ss:$28 sps:$4 sm:$0xff]   ;;  %v5433_v54 = vld [vmem:[#allocation8 + $0x428] ss:$28 sps:$4 sm:$0xff]  }
 0x412   :  { %v2335_v12 = vmul.f32 %v2318_v18, %v2293_v6  ;;  %v2336_v19 = vmul.f32 %v2322_v34, %v2293_v6  ;;  %v2337_v22 = vmul.f32 %v2326_v0, %v2293_v6  ;;  %v2338_v20 = vmul.f32 %v2330_v42, %v2293_v6  ;;  %v5418_v42 = vld [vmem:[#allocation8 + $0x388] ss:$28 sps:$4 sm:$0xff]   ;;  %v5436_v59 = vld [vmem:[#allocation8 + $0x430] ss:$28 sps:$4 sm:$0xff]   ;;  %v5447_v2 = vld [vmem:[#allocation8 + $0x49c] ss:$28 sps:$4 sm:$0xff]  }
 0x413   :  { %2123 = vrot.lane.b32.xlu0 %v4483_v5, %s5831_s5  ;;  %v2347_v33 = vmax.f32 %v2339_v8, 0.0  ;;  %v2348_v35 = vmax.f32 %v2340_v10, 0.0  ;;  %v2349_v37 = vmax.f32 %v2341_v4, 0.0  ;;  %v2350_v44 = vmax.f32 %v2342_v32, 0.0  ;;  %v5444_v61 = vld [vmem:[#allocation8 + $0x46c] ss:$28 sps:$4 sm:$0xff]  }
 0x414   :  { %v2343_v27 = vadd.f32 %v2335_v12, %v2283_v25  ;;  %v2344_v62 = vadd.f32 %v2336_v19, %v2284_v9  ;;  %v2345_v29 = vadd.f32 %v2337_v22, %v2285_v63  ;;  %v2346_v30 = vadd.f32 %v2338_v20, %v2286_v11  ;;  %v5439_v63 = vld [vmem:[#allocation8 + $0x460] ss:$28 sps:$4 sm:$0xff]   ;;  %v5442_v1 = vld [vmem:[#allocation8 + $0x468] ss:$28 sps:$4 sm:$0xff]   ;;  %v5445_v4 = vld [vmem:[#allocation8 + $0x498] ss:$28 sps:$4 sm:$0xff]  }
 0x415   :  { %v2112_v31 = vpop.permute.xlu1 %2111  ;;  %v5448_v57 = vld [vmem:[#allocation8 + $0x4a0] ss:$28 sps:$4 sm:$0xff]   ;;  %v5453_v5 = vld [vmem:[#allocation8 + $0x4d4] ss:$28 sps:$4 sm:$0xff]   ;;  %v5459_v8 = vld [vmem:[#allocation8 + $0x50c] ss:$28 sps:$4 sm:$0xff]  }
 0x416   :  { %v2116_v36 = vadd.f32 %v2112_v31, %v2104_v23  ;;  %v2351_v18 = vmax.f32 %v2343_v27, 0.0  ;;  %v2352_v34 = vmax.f32 %v2344_v62, 0.0  ;;  %v2353_v0 = vmax.f32 %v2345_v29, 0.0  ;;  %v5456_v58 = vld [vmem:[#allocation8 + $0x4dc] ss:$28 sps:$4 sm:$0xff]  }
 0x417   :  { %v2354_v38 = vmax.f32 %v2346_v30, 0.0  ;;  %v5451_v25 = vld [vmem:[#allocation8 + $0x4d0] ss:$28 sps:$4 sm:$0xff]   ;;  %v5454_v6 = vld [vmem:[#allocation8 + $0x4d8] ss:$28 sps:$4 sm:$0xff]  }
 0x418   :  { %v2118_v39 = vsub.f32 %v2116_v36, %v6016_v16  ;;  %v6091_v40 = vpack.c.bf16 %v2351_v18, %v2347_v33  ;;  %v6093_v41 = vpack.c.bf16 %v2352_v34, %v2348_v35  ;;  %v6095_v43 = vpack.c.bf16 %v2353_v0, %v2349_v37  ;;  %v5462_v10 = vld [vmem:[#allocation8 + $0x514] ss:$28 sps:$4 sm:$0xff]   ;;  %v5457_v9 = vld [vmem:[#allocation8 + $0x508] ss:$28 sps:$4 sm:$0xff]   ;;  %v5463_v22 = vld [vmem:[#allocation8 + $0x540] ss:$28 sps:$4 sm:$0xff]  }
 0x419   :  { %v6101_v16 = vpack.c.bf16 %v2354_v38, %v2350_v44  ;;  %v5460_v11 = vld [vmem:[#allocation8 + $0x510] ss:$28 sps:$4 sm:$0xff]   ;;  %v5465_v12 = vld [vmem:[#allocation8 + $0x544] ss:$28 sps:$4 sm:$0xff]   ;;  %v5471_v7 = vld [vmem:[#allocation8 + $0x57c] ss:$28 sps:$4 sm:$0xff]  }
 0x41a   :  { %v4484_v45 = vadd.f32 -0.5, %v2118_v39  ;;  %3836 = vmatprep.mubr.bf16.mxu0 %v6093_v41  ;;  %3922 = vmatprep.mubr.bf16.mxu1 %v6093_v41  ;;  %v5468_v19 = vld [vmem:[#allocation8 + $0x54c] ss:$28 sps:$4 sm:$0xff]   ;;  %v5474_v23 = vld [vmem:[#allocation8 + $0x584] ss:$28 sps:$4 sm:$0xff]  }
 0x41b   :  { %3837 = vmatmul.mubr.bf16.vlgmr.msra.gmra.mrb[8].mxu0 %v6091_v40  ;;  %3923 = vmatmul.mubr.bf16.vlgmr.msra.gmra.mrb[12].mxu1 %v6091_v40  ;;  %v5466_v20 = vld [vmem:[#allocation8 + $0x548] ss:$28 sps:$4 sm:$0xff]   ;;  %v5469_v27 = vld [vmem:[#allocation8 + $0x578] ss:$28 sps:$4 sm:$0xff]   ;;  %v5472_v62 = vld [vmem:[#allocation8 + $0x580] ss:$28 sps:$4 sm:$0xff]  }
 0x41c   :  { %3848 = vmatpush1.bf16.msra.mxu0 %v5415_v24  ;;  %3934 = vmatpush1.bf16.msra.mxu1 %v5418_v42  ;;  %v5477_v29 = vld [vmem:[#allocation8 + $0x5b4] ss:$28 sps:$4 sm:$0xff]   ;;  %v5480_v30 = vld [vmem:[#allocation8 + $0x5bc] ss:$28 sps:$4 sm:$0xff]   ;;  %v5483_v33 = vld [vmem:[#allocation8 + $0x5ec] ss:$28 sps:$4 sm:$0xff]  }
 0x41d   :  { %3879 = vmatprep.mubr.bf16.mxu0 %v6101_v16  ;;  %3965 = vmatprep.mubr.bf16.mxu1 %v6101_v16  ;;  %v5475_v31 = vld [vmem:[#allocation8 + $0x5b0] ss:$28 sps:$4 sm:$0xff]   ;;  %v5478_v32 = vld [vmem:[#allocation8 + $0x5b8] ss:$28 sps:$4 sm:$0xff]   ;;  %v5481_v36 = vld [vmem:[#allocation8 + $0x5e8] ss:$28 sps:$4 sm:$0xff]  }
 0x41e   :  { %2125 = vrot.lane.b32.xlu1 %v4484_v45, %s5831_s5  ;;  %3849 = vmatprep.subr.bf16.mxu0 %v5423_v21  ;;  %v5486_v35 = vld [vmem:[#allocation8 + $0x5f4] ss:$28 sps:$4 sm:$0xff]   ;;  %v5489_v18 = vld [vmem:[#allocation8 + $0x624] ss:$28 sps:$4 sm:$0xff]   ;;  %v5492_v34 = vld [vmem:[#allocation8 + $0x62c] ss:$28 sps:$4 sm:$0xff]  }
 0x41f   :  { %3935 = vmatprep.subr.bf16.mxu1 %v5426_v46  ;;  %v5484_v37 = vld [vmem:[#allocation8 + $0x5f0] ss:$28 sps:$4 sm:$0xff]   ;;  %v5487_v0 = vld [vmem:[#allocation8 + $0x620] ss:$28 sps:$4 sm:$0xff]   ;;  %v5490_v38 = vld [vmem:[#allocation8 + $0x628] ss:$28 sps:$4 sm:$0xff]  }
 0x420   :  { %3850 = vmatpush1.bf16.msra.mxu0 %v5421_v14  ;;  %3936 = vmatpush1.bf16.msra.mxu1 %v5424_v15  ;;  %v5495_v39 = vld [vmem:[#allocation8 + $0x65c] ss:$28 sps:$4 sm:$0xff]   ;;  %v5498_v24 = vld [vmem:[#allocation8 + $0x664] ss:$28 sps:$4 sm:$0xff]   ;;  %v5501_v45 = vld [vmem:[#allocation8 + $0x694] ss:$28 sps:$4 sm:$0xff]  }
 0x421   :  { %3851 = vmatprep.subr.bf16.mxu0 %v5429_v49  ;;  %3937 = vmatprep.subr.bf16.mxu1 %v5432_v17  ;;  %v5493_v42 = vld [vmem:[#allocation8 + $0x658] ss:$28 sps:$4 sm:$0xff]   ;;  %v5496_v44 = vld [vmem:[#allocation8 + $0x660] ss:$28 sps:$4 sm:$0xff]   ;;  %v5499_v46 = vld [vmem:[#allocation8 + $0x690] ss:$28 sps:$4 sm:$0xff]  }
 0x422   :  { %v5504_v21 = vld [vmem:[#allocation8 + $0x69c] ss:$28 sps:$4 sm:$0xff]   ;;  %v5507_v15 = vld [vmem:[#allocation8 + $0x6cc] ss:$28 sps:$4 sm:$0xff]   ;;  %v5510_v49 = vld [vmem:[#allocation8 + $0x6d4] ss:$28 sps:$4 sm:$0xff]  }
 0x423   :  { %v5502_v14 = vld [vmem:[#allocation8 + $0x698] ss:$28 sps:$4 sm:$0xff]   ;;  %v5505_v17 = vld [vmem:[#allocation8 + $0x6c8] ss:$28 sps:$4 sm:$0xff]  }
 0x424   :  { %3852 = vmatpush1.bf16.msra.mxu0 %v5427_v50  ;;  %3938 = vmatpush1.bf16.msra.mxu1 %v5430_v51  ;;  %v5508_v50 = vld [vmem:[#allocation8 + $0x6d0] ss:$28 sps:$4 sm:$0xff]  }
 0x425   :  { %3853 = vmatprep.subr.bf16.mxu0 %v5435_v52  ;;  %3939 = vmatprep.subr.bf16.mxu1 %v5438_v53  ;;  %v5513_v51 = vld [vmem:[#allocation8 + $0x14] ss:$28 sps:$4 sm:$0xff]  }
 0x426   :  { %v5514_v52 = vld [vmem:[#allocation8 + $0x1d8] ss:$28 sps:$4 sm:$0xff]   ;;  %v5511_v53 = vld [vmem:[#allocation8 + $0x10] ss:$28 sps:$4 sm:$0xff]  }
 0x428   :  { %3854 = vmatpush1.bf16.msra.mxu0 %v5433_v54  ;;  %3940 = vmatpush1.bf16.msra.mxu1 %v5436_v59  ;;  %v5515_v54 = vld [vmem:[#allocation8 + $0x18] ss:$28 sps:$4 sm:$0xff]   ;;  %v5518_v59 = vld [vmem:[#allocation8 + $0x4c] ss:$28 sps:$4 sm:$0xff]  }
 0x429   :  { %3855 = vmatprep.subr.bf16.mxu0 %v5441_v60  ;;  %3941 = vmatprep.subr.bf16.mxu1 %v5444_v61  ;;  %v5519_v60 = vld [vmem:[#allocation8 + $0x210] ss:$28 sps:$4 sm:$0xff]   ;;  %v5516_v61 = vld [vmem:[#allocation8 + $0x48] ss:$28 sps:$4 sm:$0xff]  }
 0x42c   :  { %3856 = vmatpush1.bf16.msra.mxu0 %v5439_v63  ;;  %3942 = vmatpush1.bf16.msra.mxu1 %v5442_v1  ;;  %v5520_v63 = vld [vmem:[#allocation8 + $0x50] ss:$28 sps:$4 sm:$0xff]   ;;  %v5523_v1 = vld [vmem:[#allocation8 + $0x84] ss:$28 sps:$4 sm:$0xff]  }
 0x42d   :  { %3857 = vmatprep.subr.bf16.mxu0 %v5447_v2  ;;  %3943 = vmatprep.subr.bf16.mxu1 %v5450_v3  ;;  %v5524_v2 = vld [vmem:[#allocation8 + $0x248] ss:$28 sps:$4 sm:$0xff]   ;;  %v5521_v3 = vld [vmem:[#allocation8 + $0x80] ss:$28 sps:$4 sm:$0xff]  }
 0x430   :  { %3858 = vmatpush1.bf16.msra.mxu0 %v5445_v4  ;;  %3944 = vmatpush1.bf16.msra.mxu1 %v5448_v57  ;;  %v5525_v4 = vld [vmem:[#allocation8 + $0x88] ss:$28 sps:$4 sm:$0xff]   ;;  %v5528_v57 = vld [vmem:[#allocation8 + $0xbc] ss:$28 sps:$4 sm:$0xff]  }
 0x431   :  { %3859 = vmatprep.subr.bf16.mxu0 %v5453_v5  ;;  %3945 = vmatprep.subr.bf16.mxu1 %v5456_v58  ;;  %v5529_v5 = vld [vmem:[#allocation8 + $0x280] ss:$28 sps:$4 sm:$0xff]   ;;  %v5526_v58 = vld [vmem:[#allocation8 + $0xb8] ss:$28 sps:$4 sm:$0xff]  }
 0x434   :  { %3860 = vmatpush1.bf16.msra.mxu0 %v5451_v25  ;;  %3946 = vmatpush1.bf16.msra.mxu1 %v5454_v6  ;;  %v5530_v25 = vld [vmem:[#allocation8 + $0xc0] ss:$28 sps:$4 sm:$0xff]   ;;  %v5533_v6 = vld [vmem:[#allocation8 + $0xf4] ss:$28 sps:$4 sm:$0xff]  }
 0x435   :  { %3861 = vmatprep.subr.bf16.mxu0 %v5459_v8  ;;  %3947 = vmatprep.subr.bf16.mxu1 %v5462_v10  ;;  %v5531_v8 = vld [vmem:[#allocation8 + $0xf0] ss:$28 sps:$4 sm:$0xff]   ;;  %v5535_v10 = vld [vmem:[#allocation8 + $0xf8] ss:$28 sps:$4 sm:$0xff]  }
 0x438   :  { %3862 = vmatpush1.bf16.msra.mxu0 %v5457_v9  ;;  %3948 = vmatpush1.bf16.msra.mxu1 %v5460_v11  ;;  %v5538_v9 = vld [vmem:[#allocation8 + $0x12c] ss:$28 sps:$4 sm:$0xff]  }
 0x439   :  { %3863 = vmatprep.subr.bf16.mxu0 %v5465_v12  ;;  %3949 = vmatprep.subr.bf16.mxu1 %v5468_v19  ;;  %v5539_v11 = vld [vmem:[#allocation8 + $0x2f0] ss:$28 sps:$4 sm:$0xff]   ;;  %v5536_v12 = vld [vmem:[#allocation8 + $0x128] ss:$28 sps:$4 sm:$0xff]  }
 0x43a   :  { %v5540_v19 = vld [vmem:[#allocation8 + $0x130] ss:$28 sps:$4 sm:$0xff]  }
 0x43c   :  { %3864 = vmatpush1.bf16.msra.mxu0 %v5463_v22  ;;  %3950 = vmatpush1.bf16.msra.mxu1 %v5466_v20  ;;  %v5543_v22 = vld [vmem:[#allocation8 + $0x164] ss:$28 sps:$4 sm:$0xff]  }
 0x43d   :  { %3865 = vmatprep.subr.bf16.mxu0 %v5471_v7  ;;  %3951 = vmatprep.subr.bf16.mxu1 %v5474_v23  ;;  %v5544_v20 = vld [vmem:[#allocation8 + $0x328] ss:$28 sps:$4 sm:$0xff]   ;;  %v5541_v7 = vld [vmem:[#allocation8 + $0x160] ss:$28 sps:$4 sm:$0xff]  }
 0x43e   :  { %v5545_v23 = vld [vmem:[#allocation8 + $0x168] ss:$28 sps:$4 sm:$0xff]  }
 0x440   :  { %3866 = vmatpush1.bf16.msra.mxu0 %v5469_v27  ;;  %3952 = vmatpush1.bf16.msra.mxu1 %v5472_v62  ;;  %v5548_v27 = vld [vmem:[#allocation8 + $0x19c] ss:$28 sps:$4 sm:$0xff]  }
 0x441   :  { %3867 = vmatprep.subr.bf16.mxu0 %v5477_v29  ;;  %3953 = vmatprep.subr.bf16.mxu1 %v5480_v30  ;;  %v5549_v62 = vld [vmem:[#allocation8 + $0x360] ss:$28 sps:$4 sm:$0xff]   ;;  %v5546_v29 = vld [vmem:[#allocation8 + $0x198] ss:$28 sps:$4 sm:$0xff]  }
 0x442   :  { %v5550_v30 = vld [vmem:[#allocation8 + $0x1a0] ss:$28 sps:$4 sm:$0xff]  }
 0x444   :  { %3868 = vmatpush1.bf16.msra.mxu0 %v5475_v31  ;;  %3954 = vmatpush1.bf16.msra.mxu1 %v5478_v32  ;;  %v5553_v31 = vld [vmem:[#allocation8 + $0x1d4] ss:$28 sps:$4 sm:$0xff]  }
 0x445   :  { %3869 = vmatprep.subr.bf16.mxu0 %v5483_v33  ;;  %3955 = vmatprep.subr.bf16.mxu1 %v5486_v35  ;;  %v5554_v32 = vld [vmem:[#allocation8 + $0x558] ss:$28 sps:$4 sm:$0xff]   ;;  %v5551_v33 = vld [vmem:[#allocation8 + $0x1d0] ss:$28 sps:$4 sm:$0xff]  }
 0x446   :  { %v5555_v35 = vld [vmem:[#allocation8 + $0x398] ss:$28 sps:$4 sm:$0xff]  }
 0x448   :  { %3870 = vmatpush1.bf16.msra.mxu0 %v5481_v36  ;;  %3956 = vmatpush1.bf16.msra.mxu1 %v5484_v37  ;;  %v5558_v36 = vld [vmem:[#allocation8 + $0x20c] ss:$28 sps:$4 sm:$0xff]  }
 0x449   :  { %3871 = vmatprep.subr.bf16.mxu0 %v5489_v18  ;;  %3957 = vmatprep.subr.bf16.mxu1 %v5492_v34  ;;  %v5559_v37 = vld [vmem:[#allocation8 + $0x590] ss:$28 sps:$4 sm:$0xff]   ;;  %v5556_v18 = vld [vmem:[#allocation8 + $0x208] ss:$28 sps:$4 sm:$0xff]  }
 0x44a   :  { %v5560_v34 = vld [vmem:[#allocation8 + $0x3d0] ss:$28 sps:$4 sm:$0xff]  }
 0x44c   :  { %3872 = vmatpush1.bf16.msra.mxu0 %v5487_v0  ;;  %3958 = vmatpush1.bf16.msra.mxu1 %v5490_v38  ;;  %v5563_v0 = vld [vmem:[#allocation8 + $0x244] ss:$28 sps:$4 sm:$0xff]  }
 0x44d   :  { %3873 = vmatprep.subr.bf16.mxu0 %v5495_v39  ;;  %3959 = vmatprep.subr.bf16.mxu1 %v5498_v24  ;;  %v5564_v38 = vld [vmem:[#allocation8 + $0x5c8] ss:$28 sps:$4 sm:$0xff]   ;;  %v5561_v39 = vld [vmem:[#allocation8 + $0x240] ss:$28 sps:$4 sm:$0xff]  }
 0x44e   :  { %v5565_v24 = vld [vmem:[#allocation8 + $0x408] ss:$28 sps:$4 sm:$0xff]  }
 0x450   :  { %3874 = vmatpush1.bf16.msra.mxu0 %v5493_v42  ;;  %3960 = vmatpush1.bf16.msra.mxu1 %v5496_v44  ;;  %v5568_v42 = vld [vmem:[#allocation8 + $0x27c] ss:$28 sps:$4 sm:$0xff]  }
 0x451   :  { %3875 = vmatprep.subr.bf16.mxu0 %v5501_v45  ;;  %3961 = vmatprep.subr.bf16.mxu1 %v5504_v21  ;;  %v5569_v44 = vld [vmem:[#allocation8 + $0x600] ss:$28 sps:$4 sm:$0xff]   ;;  %v5566_v21 = vld [vmem:[#allocation8 + $0x278] ss:$28 sps:$4 sm:$0xff]  }
 0x454   :  { %3876 = vmatpush1.bf16.msra.mxu0 %v5499_v46  ;;  %3962 = vmatpush1.bf16.msra.mxu1 %v5502_v14  ;;  %v5570_v14 = vld [vmem:[#allocation8 + $0x440] ss:$28 sps:$4 sm:$0xff]  }
 0x455   :  { %3877 = vmatprep.subr.bf16.mxu0 %v5507_v15  ;;  %3963 = vmatprep.subr.bf16.mxu1 %v5510_v49  ;;  %v5573_v15 = vld [vmem:[#allocation8 + $0x2b4] ss:$28 sps:$4 sm:$0xff]  }
 0x456   :  { %v5574_v49 = vld [vmem:[#allocation8 + $0x638] ss:$28 sps:$4 sm:$0xff]  }
 0x458   :  { %3878 = vmatpush1.bf16.msra.mxu0 %v5505_v17  ;;  %3964 = vmatpush1.bf16.msra.mxu1 %v5508_v50  ;;  %v5571_v17 = vld [vmem:[#allocation8 + $0x2b0] ss:$28 sps:$4 sm:$0xff]   ;;  %v5575_v50 = vld [vmem:[#allocation8 + $0x478] ss:$28 sps:$4 sm:$0xff]  }
 0x459   :  { %3976 = vmatprep.subr.bf16.mxu0 %v5513_v51  ;;  %4785 = vmatprep.subr.bf16.mxu1 %v5514_v52  ;;  %v5578_v51 = vld [vmem:[#allocation8 + $0x2ec] ss:$28 sps:$4 sm:$0xff]  }
 0x45a   :  { %v5579_v52 = vld [vmem:[#allocation8 + $0x670] ss:$28 sps:$4 sm:$0xff]  }
 0x45b   :  { %3880 = vmatmul.mubr.bf16.vlgmr.msra.gmra.mrb[8].mxu0 %v6095_v43  ;;  %3966 = vmatmul.mubr.bf16.vlgmr.msra.gmra.mrb[12].mxu1 %v6095_v43 }
 0x45c   :  { %3977 = vmatpush1.bf16.msra.mxu0 %v5511_v53  ;;  %4008 = vmatprep.mubr.bf16.mxu0 %v6093_v41  ;;  %v5576_v53 = vld [vmem:[#allocation8 + $0x2e8] ss:$28 sps:$4 sm:$0xff]  }
 0x45d   :  { %4786 = vmatpush3.bf16.msra.mxu1 %v5515_v54  ;;  %4094 = vmatprep.mubr.bf16.mxu1 %v6093_v41  ;;  %v5534_v41 = vld [vmem:[#allocation8 + $0x2b8] ss:$28 sps:$4 sm:$0xff]   ;;  %v5580_v54 = vld [vmem:[#allocation8 + $0x4b0] ss:$28 sps:$4 sm:$0xff]  }
 0x45e   :  { %3978 = vmatprep.subr.bf16.mxu0 %v5518_v59  ;;  %4787 = vmatprep.subr.bf16.mxu1 %v5519_v60  ;;  %v5583_v59 = vld [vmem:[#allocation8 + $0x324] ss:$28 sps:$4 sm:$0xff]  }
 0x45f   :  { %v5584_v60 = vld [vmem:[#allocation8 + $0x6a8] ss:$28 sps:$4 sm:$0xff]  }
 0x460   :  { %3979 = vmatpush1.bf16.msra.mxu0 %v5516_v61 }
 0x461   :  { %4788 = vmatpush3.bf16.msra.mxu1 %v5520_v63  ;;  %3980 = vmatprep.subr.bf16.mxu0 %v5523_v1  ;;  %v5581_v63 = vld [vmem:[#allocation8 + $0x320] ss:$28 sps:$4 sm:$0xff]  }
 0x462   :  { %4789 = vmatprep.subr.bf16.mxu1 %v5524_v2  ;;  %v5585_v2 = vld [vmem:[#allocation8 + $0x4e8] ss:$28 sps:$4 sm:$0xff]  }
 0x464   :  { %3981 = vmatpush1.bf16.msra.mxu0 %v5521_v3  ;;  %v5588_v3 = vld [vmem:[#allocation8 + $0x35c] ss:$28 sps:$4 sm:$0xff]  }
 0x465   :  { %4790 = vmatpush3.bf16.msra.mxu1 %v5525_v4  ;;  %3982 = vmatprep.subr.bf16.mxu0 %v5528_v57  ;;  %v5589_v4 = vld [vmem:[#allocation8 + $0x6e0] ss:$28 sps:$4 sm:$0xff]   ;;  %v5586_v57 = vld [vmem:[#allocation8 + $0x358] ss:$28 sps:$4 sm:$0xff]  }
 0x466   :  { %4791 = vmatprep.subr.bf16.mxu1 %v5529_v5  ;;  %v5590_v5 = vld [vmem:[#allocation8 + $0x520] ss:$28 sps:$4 sm:$0xff]  }
 0x468   :  { %3983 = vmatpush1.bf16.msra.mxu0 %v5526_v58  ;;  %v5593_v58 = vld [vmem:[#allocation8 + $0x394] ss:$28 sps:$4 sm:$0xff]  }
 0x469   :  { %4792 = vmatpush3.bf16.msra.mxu1 %v5530_v25  ;;  %3984 = vmatprep.subr.bf16.mxu0 %v5533_v6  ;;  %v5591_v25 = vld [vmem:[#allocation8 + $0x390] ss:$28 sps:$4 sm:$0xff]  }
 0x46a   :  { %4793 = vmatprep.subr.bf16.mxu1 %v5534_v41  ;;  %v5596_v6 = vld [vmem:[#allocation8 + $0x3cc] ss:$28 sps:$4 sm:$0xff]  }
 0x46b   :  { %v5594_v41 = vld [vmem:[#allocation8 + $0x3c8] ss:$28 sps:$4 sm:$0xff]  }
 0x46c   :  { %3985 = vmatpush1.bf16.msra.mxu0 %v5531_v8  ;;  %v5599_v8 = vld [vmem:[#allocation8 + $0x404] ss:$28 sps:$4 sm:$0xff]  }
 0x46d   :  { %4794 = vmatpush3.bf16.msra.mxu1 %v5535_v10  ;;  %3986 = vmatprep.subr.bf16.mxu0 %v5538_v9  ;;  %v5597_v10 = vld [vmem:[#allocation8 + $0x400] ss:$28 sps:$4 sm:$0xff]  }
 0x46e   :  { %4795 = vmatprep.subr.bf16.mxu1 %v5539_v11  ;;  %v5602_v9 = vld [vmem:[#allocation8 + $0x43c] ss:$28 sps:$4 sm:$0xff]  }
 0x46f   :  { %v5600_v11 = vld [vmem:[#allocation8 + $0x438] ss:$28 sps:$4 sm:$0xff]  }
 0x470   :  { %3987 = vmatpush1.bf16.msra.mxu0 %v5536_v12  ;;  %v5605_v12 = vld [vmem:[#allocation8 + $0x474] ss:$28 sps:$4 sm:$0xff]  }
 0x471   :  { %4796 = vmatpush3.bf16.msra.mxu1 %v5540_v19  ;;  %3988 = vmatprep.subr.bf16.mxu0 %v5543_v22  ;;  %v5603_v19 = vld [vmem:[#allocation8 + $0x470] ss:$28 sps:$4 sm:$0xff]   ;;  %v5606_v22 = vld [vmem:[#allocation8 + $0x4a8] ss:$28 sps:$4 sm:$0xff]  }
 0x472   :  { %4797 = vmatprep.subr.bf16.mxu1 %v5544_v20  ;;  %v5611_v20 = vld [vmem:[#allocation8 + $0x4e4] ss:$28 sps:$4 sm:$0xff]  }
 0x474   :  { %3989 = vmatpush1.bf16.msra.mxu0 %v5541_v7  ;;  %v5614_v7 = vld [vmem:[#allocation8 + $0x51c] ss:$28 sps:$4 sm:$0xff]  }
 0x475   :  { %4798 = vmatpush3.bf16.msra.mxu1 %v5545_v23  ;;  %3990 = vmatprep.subr.bf16.mxu0 %v5548_v27  ;;  %v5612_v23 = vld [vmem:[#allocation8 + $0x518] ss:$28 sps:$4 sm:$0xff]  }
 0x476   :  { %4799 = vmatprep.subr.bf16.mxu1 %v5549_v62  ;;  %v5617_v27 = vld [vmem:[#allocation8 + $0x554] ss:$28 sps:$4 sm:$0xff]  }
 0x477   :  { %v5615_v62 = vld [vmem:[#allocation8 + $0x550] ss:$28 sps:$4 sm:$0xff]  }
 0x478   :  { %3991 = vmatpush1.bf16.msra.mxu0 %v5546_v29  ;;  %v5620_v29 = vld [vmem:[#allocation8 + $0x58c] ss:$28 sps:$4 sm:$0xff]  }
 0x479   :  { %4800 = vmatpush3.bf16.msra.mxu1 %v5550_v30  ;;  %3992 = vmatprep.subr.bf16.mxu0 %v5553_v31  ;;  %v5618_v30 = vld [vmem:[#allocation8 + $0x588] ss:$28 sps:$4 sm:$0xff]  }
 0x47a   :  { %4807 = vmatprep.subr.bf16.mxu1 %v5554_v32  ;;  %v5623_v31 = vld [vmem:[#allocation8 + $0x5c4] ss:$28 sps:$4 sm:$0xff]  }
 0x47b   :  { %v5621_v32 = vld [vmem:[#allocation8 + $0x5c0] ss:$28 sps:$4 sm:$0xff]  }
 0x47c   :  { %4095 = vmatmul.mubr.bf16.vlgmr.msra.gmra.mrb[16].mxu1 %v6091_v40  ;;  %3993 = vmatpush1.bf16.msra.mxu0 %v5551_v33  ;;  %v5626_v33 = vld [vmem:[#allocation8 + $0x5fc] ss:$28 sps:$4 sm:$0xff]  }
 0x47d   :  { %4808 = vmatpush3.bf16.msra.mxu1 %v5555_v35  ;;  %4135 = vmatprep.mubr.bf16.mxu1 %v6101_v16  ;;  %v5624_v35 = vld [vmem:[#allocation8 + $0x5f8] ss:$28 sps:$4 sm:$0xff]  }
 0x47e   :  { %3994 = vmatprep.subr.bf16.mxu0 %v5558_v36  ;;  %4809 = vmatprep.subr.bf16.mxu1 %v5559_v37  ;;  %v5629_v36 = vld [vmem:[#allocation8 + $0x634] ss:$28 sps:$4 sm:$0xff]  }
 0x47f   :  { %v5627_v37 = vld [vmem:[#allocation8 + $0x630] ss:$28 sps:$4 sm:$0xff]  }
 0x480   :  { %3995 = vmatpush1.bf16.msra.mxu0 %v5556_v18  ;;  %v5632_v18 = vld [vmem:[#allocation8 + $0x66c] ss:$28 sps:$4 sm:$0xff]  }
 0x481   :  { %4810 = vmatpush3.bf16.msra.mxu1 %v5560_v34  ;;  %3996 = vmatprep.subr.bf16.mxu0 %v5563_v0  ;;  %v5630_v34 = vld [vmem:[#allocation8 + $0x668] ss:$28 sps:$4 sm:$0xff]  }
 0x482   :  { %4811 = vmatprep.subr.bf16.mxu1 %v5564_v38  ;;  %v5635_v0 = vld [vmem:[#allocation8 + $0x6a4] ss:$28 sps:$4 sm:$0xff]  }
 0x483   :  { %v5633_v38 = vld [vmem:[#allocation8 + $0x6a0] ss:$28 sps:$4 sm:$0xff]  }
 0x484   :  { %3997 = vmatpush1.bf16.msra.mxu0 %v5561_v39  ;;  %v5638_v39 = vld [vmem:[#allocation8 + $0x6dc] ss:$28 sps:$4 sm:$0xff]  }
 0x485   :  { %v2124_v45 = vpop.permute.xlu0 %2123  ;;  %4812 = vmatpush3.bf16.msra.mxu1 %v5565_v24  ;;  %3998 = vmatprep.subr.bf16.mxu0 %v5568_v42  ;;  %v5636_v24 = vld [vmem:[#allocation8 + $0x6d8] ss:$28 sps:$4 sm:$0xff]  }
 0x486   :  { %v2130_v46 = vsel %vm2129_vm0, %v2124_v45, 0.0  ;;  %4813 = vmatprep.subr.bf16.mxu1 %v5569_v44  ;;  %v6127_v45 = vld [vmem:[%s6164_s9] sm:$0xff]  ;;  %s5833_s9 = smov [#allocation10]  }
 0x487   :  { %2131 = vadd.xlane.f32.xlu0 %v2130_v46  ;;  %v2624_v46 = vrot.slane %v6127_v45, %v5994_v28 }
 0x488   :  { %3999 = vmatpush1.bf16.msra.mxu0 %v5566_v21  ;;  %v2620_v21 = vrot.slane %v6127_v45, %v5988_v26 }
 0x489   :  { %4814 = vmatpush3.bf16.msra.mxu1 %v5570_v14  ;;  %4000 = vmatprep.subr.bf16.mxu0 %v5573_v15  ;;  %v2632_v14 = vrot.slane %v6127_v45, %v6006_v13 }
 0x48a   :  { %4815 = vmatprep.subr.bf16.mxu1 %v5574_v49 }
 0x48c   :  { %4001 = vmatpush1.bf16.msra.mxu0 %v5571_v17 }
 0x48d   :  { %4816 = vmatpush3.bf16.msra.mxu1 %v5575_v50  ;;  %4002 = vmatprep.subr.bf16.mxu0 %v5578_v51 }
 0x48e   :  { %4817 = vmatprep.subr.bf16.mxu1 %v5579_v52 }
 0x490   :  { %v2126_v61 = vpop.permute.xlu1 %2125  ;;  %4003 = vmatpush1.bf16.msra.mxu0 %v5576_v53 }
 0x491   :  { %4818 = vmatpush3.bf16.msra.mxu1 %v5580_v54  ;;  %v2133_v1 = vsel %vm2129_vm0, %v2126_v61, 0.0  ;;  %4004 = vmatprep.subr.bf16.mxu0 %v5583_v59 }
 0x492   :  { %2134 = vadd.xlane.f32.xlu1 %v2133_v1  ;;  %4819 = vmatprep.subr.bf16.mxu1 %v5584_v60 }
 0x494   :  { %4005 = vmatpush1.bf16.msra.mxu0 %v5581_v63 }
 0x495   :  { %4820 = vmatpush3.bf16.msra.mxu1 %v5585_v2  ;;  %4006 = vmatprep.subr.bf16.mxu0 %v5588_v3 }
 0x496   :  { %4821 = vmatprep.subr.bf16.mxu1 %v5589_v4 }
 0x498   :  { %4007 = vmatpush1.bf16.msra.mxu0 %v5586_v57 }
 0x499   :  { %4822 = vmatpush3.bf16.msra.mxu1 %v5590_v5  ;;  %4019 = vmatprep.subr.bf16.mxu0 %v5593_v58 }
 0x49b   :  { %4009 = vmatmul.mubr.bf16.vlgmr.msra.gmra.mrb[12].mxu0 %v6091_v40  ;;  %v5608_v40 = vld [vmem:[#allocation8 + $0x4ac] ss:$28 sps:$4 sm:$0xff]  }
 0x49c   :  { %4136 = vmatmul.mubr.bf16.vlgmr.msra.gmra.mrb[20].mxu1 %v6095_v43  ;;  %4020 = vmatpush1.bf16.msra.mxu0 %v5591_v25 }
 0x49d   :  { %4051 = vmatprep.mubr.bf16.mxu0 %v6101_v16  ;;  %4021 = vmatprep.subr.bf16.mxu0 %v5596_v6  ;;  %v5609_v16 = vld [vmem:[#allocation8 + $0x4e0] ss:$28 sps:$4 sm:$0xff]  }
 0x4a0   :  { %4022 = vmatpush1.bf16.msra.mxu0 %v5594_v41 }
 0x4a1   :  { %4023 = vmatprep.subr.bf16.mxu0 %v5599_v8 }
 0x4a4   :  { %4024 = vmatpush1.bf16.msra.mxu0 %v5597_v10 }
 0x4a5   :  { %4025 = vmatprep.subr.bf16.mxu0 %v5602_v9 }
 0x4a8   :  { %4026 = vmatpush1.bf16.msra.mxu0 %v5600_v11 }
 0x4a9   :  { %4027 = vmatprep.subr.bf16.mxu0 %v5605_v12 }
 0x4ac   :  { %4028 = vmatpush1.bf16.msra.mxu0 %v5603_v19 }
 0x4ad   :  { %4029 = vmatprep.subr.bf16.mxu0 %v5608_v40 }
 0x4b0   :  { %4030 = vmatpush1.bf16.msra.mxu0 %v5606_v22 }
 0x4b1   :  { %4031 = vmatprep.subr.bf16.mxu0 %v5611_v20 }
 0x4b4   :  { %4032 = vmatpush1.bf16.msra.mxu0 %v5609_v16 }
 0x4b5   :  { %4033 = vmatprep.subr.bf16.mxu0 %v5614_v7 }
 0x4b8   :  { %4034 = vmatpush1.bf16.msra.mxu0 %v5612_v23 }
 0x4b9   :  { %4035 = vmatprep.subr.bf16.mxu0 %v5617_v27 }
 0x4bc   :  { %4036 = vmatpush1.bf16.msra.mxu0 %v5615_v62 }
 0x4bd   :  { %4037 = vmatprep.subr.bf16.mxu0 %v5620_v29 }
 0x4c0   :  { %4038 = vmatpush1.bf16.msra.mxu0 %v5618_v30 }
 0x4c1   :  { %4039 = vmatprep.subr.bf16.mxu0 %v5623_v31 }
 0x4c4   :  { %4040 = vmatpush1.bf16.msra.mxu0 %v5621_v32 }
 0x4c5   :  { %4041 = vmatprep.subr.bf16.mxu0 %v5626_v33 }
 0x4c8   :  { %4042 = vmatpush1.bf16.msra.mxu0 %v5624_v35 }
 0x4c9   :  { %4043 = vmatprep.subr.bf16.mxu0 %v5629_v36 }
 0x4cc   :  { %4044 = vmatpush1.bf16.msra.mxu0 %v5627_v37 }
 0x4cd   :  { %4045 = vmatprep.subr.bf16.mxu0 %v5632_v18 }
 0x4d0   :  { %4046 = vmatpush1.bf16.msra.mxu0 %v5630_v34 }
 0x4d1   :  { %4047 = vmatprep.subr.bf16.mxu0 %v5635_v0 }
 0x4d4   :  { %4048 = vmatpush1.bf16.msra.mxu0 %v5633_v38 }
 0x4d5   :  { %4049 = vmatprep.subr.bf16.mxu0 %v5638_v39 }
 0x4d8   :  { %4050 = vmatpush1.bf16.msra.mxu0 %v5636_v24 }
 0x4db   :  { %4052 = vmatmul.mubr.bf16.vlgmr.msra.gmra.mrb[12].mxu0 %v6095_v43  ;;  %v2628_v43 = vrot.slane %v6127_v45, %v6003_v47 }
 0x514   :  { %v2132_v42 = vpop.xlane.xlu0 %2131 }
 0x515   :  { %2137 = vst.msk [vmem:[%s6166_s11] sm:$0xff] %vm2136_vm1, %v2132_v42 }
 0x51f   :  { %v2135_v44 = vpop.xlane.xlu1 %2134 }
 0x520   :  { %2138 = vst.msk [vmem:[%s6166_s11 + $0x8] sm:$0xff] %vm2136_vm1, %v2135_v44  ;;  %s4233_s11 = sshll.u32 %s5833_s9, 4  ;;  %s4234_s11 = int_to_ptr.vmem [resolvable:$true] %s4233_s11 }
 0x521   :  { %s5788_s27 = scalar_lea.vmem %s4234_s11, 1792  ;;  %p5793_p5 = scmp.lt.s32.totalorder %s4234_s11, %s4234_s11 }
 0x522   :  { %p5789_p4 = scmp.ne.s32.totalorder %s4234_s11, %s5788_s27  ;;  %p5794_p6 = scmp.lt.s32.totalorder %s5788_s27, %s5788_s27 }
 0x524   :  { %p5795_p7 = por %p5794_p6, %p5793_p5 }
 0x526   :  { %p5796_p8 = pnand %p5795_p7, %p5789_p4 }
 0x52e   :  { %v3881_v15 = vpop.f32.mrb[8].mxu0  ;;  %v3967_v49 = vpop.f32.mrb[12].mxu1 }
 0x52f   :  { %v4905_v17 = vadd.f32 %v3881_v15, %v2620_v21  ;;  %v4909_v50 = vadd.f32 %v3967_v49, %v2628_v43  ;;  %v3883_v51 = vpop.f32.mrb[9].mxu0  ;;  %v3969_v52 = vpop.f32.mrb[13].mxu1 }
 0x530   :  { %v4906_v53 = vadd.f32 %v3883_v51, %v2624_v46  ;;  %v4910_v54 = vadd.f32 %v3969_v52, %v2632_v14  ;;  %v3885_v59 = vpop.f32.mrb[10].mxu0  ;;  %v3971_v60 = vpop.f32.mrb[14].mxu1 }
 0x531   :  { %v4144_v26 = vsub.f32 0.0, %v4905_v17  ;;  %v4146_v61 = vsub.f32 0.0, %v4909_v50  ;;  %v4907_v63 = vadd.f32 %v3885_v59, %v2620_v21  ;;  %v4911_v47 = vadd.f32 %v3971_v60, %v2628_v43  ;;  %v3887_v1 = vpop.f32.mrb[11].mxu0  ;;  %v3973_v2 = vpop.f32.mrb[15].mxu1 }
 0x532   :  { %v4145_v28 = vsub.f32 0.0, %v4906_v53  ;;  %v4147_v3 = vsub.f32 0.0, %v4910_v54  ;;  %v4908_v4 = vadd.f32 %v3887_v1, %v2624_v46  ;;  %v4912_v13 = vadd.f32 %v3973_v2, %v2632_v14 }
 0x533   :  { %v4158_v57 = vmul.f32 1.442695, %v4144_v26  ;;  %v4162_v5 = vmul.f32 1.442695, %v4146_v61  ;;  %v4151_v58 = vsub.f32 0.0, %v4907_v63  ;;  %v4153_v25 = vsub.f32 0.0, %v4911_v47 }
 0x534   :  { %v4160_v6 = vmul.f32 1.442695, %v4145_v28  ;;  %v4164_v41 = vmul.f32 1.442695, %v4147_v3  ;;  %v4152_v8 = vsub.f32 0.0, %v4908_v4  ;;  %v4154_v10 = vsub.f32 0.0, %v4912_v13 }
 0x535   :  { %5643 = vpow2.f32 %v4158_v57  ;;  %v4172_v9 = vmul.f32 1.442695, %v4151_v58  ;;  %v4176_v11 = vmul.f32 1.442695, %v4153_v25  ;;  %v2644_v17 = vrot.slane %v6127_v45, %v6060_v56 }
 0x536   :  { %5645 = vpow2.f32 %v4162_v5  ;;  %v4174_v12 = vmul.f32 1.442695, %v4152_v8  ;;  %v4178_v19 = vmul.f32 1.442695, %v4154_v10  ;;  %v2636_v58 = vrot.slane %v6127_v45, %v6045_v48 }
 0x537   :  { %5647 = vpow2.f32 %v4160_v6  ;;  %v2640_v25 = vrot.slane %v6127_v45, %v6057_v55 }
 0x538   :  { %5649 = vpow2.f32 %v4164_v41 }
 0x539   :  { %5651 = vpow2.f32 %v4172_v9 }
 0x53a   :  { %5653 = vpow2.f32 %v4176_v11 }
 0x53b   :  { %5655 = vpow2.f32 %v4174_v12 }
 0x53c   :  { %5657 = vpow2.f32 %v4178_v19 }
 0x53f   :  { %v5644_v40 = vpop.eup %5643 }
 0x540   :  { %v5646_v22 = vpop.eup %5645  ;;  %v4186_v20 = vadd.f32 1.0, %v5644_v40 }
 0x541   :  { %v5648_v16 = vpop.eup %5647  ;;  %v4188_v7 = vadd.f32 1.0, %v5646_v22 }
 0x542   :  { %v5650_v23 = vpop.eup %5649  ;;  %5659 = vrcp.f32 %v4186_v20  ;;  %v4187_v27 = vadd.f32 1.0, %v5648_v16 }
 0x543   :  { %v5652_v62 = vpop.eup %5651  ;;  %5661 = vrcp.f32 %v4188_v7  ;;  %v4189_v29 = vadd.f32 1.0, %v5650_v23 }
 0x544   :  { %v5654_v30 = vpop.eup %5653  ;;  %5663 = vrcp.f32 %v4187_v27  ;;  %v4193_v31 = vadd.f32 1.0, %v5652_v62 }
 0x545   :  { %v5656_v32 = vpop.eup %5655  ;;  %5665 = vrcp.f32 %v4189_v29  ;;  %v4195_v33 = vadd.f32 1.0, %v5654_v30 }
 0x546   :  { %v5658_v35 = vpop.eup %5657  ;;  %5667 = vrcp.f32 %v4193_v31  ;;  %v4194_v36 = vadd.f32 1.0, %v5656_v32 }
 0x547   :  { %5669 = vrcp.f32 %v4195_v33  ;;  %v4196_v37 = vadd.f32 1.0, %v5658_v35 }
 0x548   :  { %5671 = vrcp.f32 %v4194_v36 }
 0x549   :  { %5673 = vrcp.f32 %v4196_v37 }
 0x54c   :  { %v5660_v18 = vpop.eup %5659 }
 0x54d   :  { %v5662_v34 = vpop.eup %5661  ;;  %4214 = vst [vmem:[#allocation10] sm:$0xff] %v5660_v18 }
 0x54e   :  { %v5664_v0 = vpop.eup %5663  ;;  %4216 = vst [vmem:[#allocation10 + $0x10] sm:$0xff] %v5662_v34 }
 0x54f   :  { %v5666_v38 = vpop.eup %5665  ;;  %4215 = vst [vmem:[#allocation10 + $0x8] sm:$0xff] %v5664_v0  ;;  %v4801_v39 = vpop.f32.mrb[16].mxu1 }
 0x550   :  { %v5668_v24 = vpop.eup %5667  ;;  %4217 = vst [vmem:[#allocation10 + $0x18] sm:$0xff] %v5666_v38  ;;  %v4802_v42 = vpop.f32.mrb[17].mxu1 }
 0x551   :  { %v5670_v44 = vpop.eup %5669  ;;  %4221 = vst [vmem:[#allocation10 + $0x38] sm:$0xff] %v5668_v24  ;;  %v4803_v21 = vadd.f32 %v4802_v42, %v4801_v39  ;;  %v4804_v43 = vpop.f32.mrb[18].mxu1 }
 0x552   :  { %v5672_v46 = vpop.eup %5671  ;;  %4223 = vst [vmem:[#allocation10 + $0x48] sm:$0xff] %v5670_v44  ;;  %v4805_v14 = vpop.f32.mrb[19].mxu1 }
 0x553   :  { %v5674_v15 = vpop.eup %5673  ;;  %4222 = vst [vmem:[#allocation10 + $0x40] sm:$0xff] %v5672_v46  ;;  %v4806_v49 = vadd.f32 %v4805_v14, %v4804_v43  ;;  %v4097_v52 = vadd.f32 %v4803_v21, %v2644_v17 }
 0x554   :  { %4224 = vst [vmem:[#allocation10 + $0x50] sm:$0xff] %v5674_v15 }
 0x555   :  { %v4100_v60 = vadd.f32 %v4806_v49, %v2644_v17 }
 0x56f   :  { %v4823_v50 = vpop.f32.mrb[20].mxu1 }
 0x570   :  { %v4824_v51 = vpop.f32.mrb[21].mxu1 }
 0x571   :  { %v4825_v53 = vadd.f32 %v4824_v51, %v4823_v50  ;;  %v4826_v54 = vpop.f32.mrb[22].mxu1 }
 0x572   :  { %v4827_v59 = vpop.f32.mrb[23].mxu1 }
 0x573   :  { %v4138_v26 = vadd.f32 %v4825_v53, %v4097_v52  ;;  %v4828_v61 = vadd.f32 %v4827_v59, %v4826_v54 }
 0x575   :  { %v4150_v63 = vsub.f32 0.0, %v4138_v26  ;;  %v4141_v47 = vadd.f32 %v4828_v61, %v4100_v60 }
 0x577   :  { %v4170_v1 = vmul.f32 1.442695, %v4150_v63  ;;  %v4157_v2 = vsub.f32 0.0, %v4141_v47 }
 0x579   :  { %5675 = vpow2.f32 %v4170_v1  ;;  %v4184_v28 = vmul.f32 1.442695, %v4157_v2 }
 0x57b   :  { %5677 = vpow2.f32 %v4184_v28 }
 0x583   :  { %v5676_v3 = vpop.eup %5675 }
 0x584   :  { %v4192_v4 = vadd.f32 1.0, %v5676_v3 }
 0x585   :  { %v5678_v13 = vpop.eup %5677 }
 0x586   :  { %5679 = vrcp.f32 %v4192_v4  ;;  %v4199_v56 = vadd.f32 1.0, %v5678_v13 }
 0x588   :  { %5681 = vrcp.f32 %v4199_v56 }
 0x590   :  { %v5680_v57 = vpop.eup %5679 }
 0x591   :  { %4220 = vst [vmem:[#allocation10 + $0x30] sm:$0xff] %v5680_v57 }
 0x592   :  { %v5682_v5 = vpop.eup %5681 }
 0x593   :  { %4227 = vst [vmem:[#allocation10 + $0x68] sm:$0xff] %v5682_v5 }
 0x5ae   :  { %v4053_v6 = vpop.f32.mrb[12].mxu0 }
 0x5af   :  { %v4913_v41 = vadd.f32 %v4053_v6, %v2636_v58  ;;  %v4055_v8 = vpop.f32.mrb[13].mxu0 }
 0x5b0   :  { %v4914_v10 = vadd.f32 %v4055_v8, %v2640_v25  ;;  %v4057_v9 = vpop.f32.mrb[14].mxu0 }
 0x5b1   :  { %v4148_v11 = vsub.f32 0.0, %v4913_v41  ;;  %v4915_v12 = vadd.f32 %v4057_v9, %v2636_v58  ;;  %v4059_v19 = vpop.f32.mrb[15].mxu0 }
 0x5b2   :  { %v4149_v40 = vsub.f32 0.0, %v4914_v10  ;;  %v4916_v22 = vadd.f32 %v4059_v19, %v2640_v25 }
 0x5b3   :  { %v4166_v20 = vmul.f32 1.442695, %v4148_v11  ;;  %v4155_v16 = vsub.f32 0.0, %v4915_v12 }
 0x5b4   :  { %v4168_v7 = vmul.f32 1.442695, %v4149_v40  ;;  %v4156_v23 = vsub.f32 0.0, %v4916_v22 }
 0x5b5   :  { %5683 = vpow2.f32 %v4166_v20  ;;  %v4180_v27 = vmul.f32 1.442695, %v4155_v16 }
 0x5b6   :  { %5685 = vpow2.f32 %v4168_v7  ;;  %v4182_v48 = vmul.f32 1.442695, %v4156_v23 }
 0x5b7   :  { %5687 = vpow2.f32 %v4180_v27 }
 0x5b8   :  { %5689 = vpow2.f32 %v4182_v48 }
 0x5bf   :  { %v5684_v55 = vpop.eup %5683 }
 0x5c0   :  { %v5686_v45 = vpop.eup %5685  ;;  %v4190_v62 = vadd.f32 1.0, %v5684_v55 }
 0x5c1   :  { %v5688_v29 = vpop.eup %5687  ;;  %v4191_v30 = vadd.f32 1.0, %v5686_v45 }
 0x5c2   :  { %v5690_v31 = vpop.eup %5689  ;;  %5691 = vrcp.f32 %v4190_v62  ;;  %v4197_v32 = vadd.f32 1.0, %v5688_v29 }
 0x5c3   :  { %5693 = vrcp.f32 %v4191_v30  ;;  %v4198_v33 = vadd.f32 1.0, %v5690_v31 }
 0x5c4   :  { %5695 = vrcp.f32 %v4197_v32 }
 0x5c5   :  { %5697 = vrcp.f32 %v4198_v33 }
 0x5cc   :  { %v5692_v35 = vpop.eup %5691 }
 0x5cd   :  { %v5694_v36 = vpop.eup %5693  ;;  %4218 = vst [vmem:[#allocation10 + $0x20] sm:$0xff] %v5692_v35 }
 0x5ce   :  { %v5696_v37 = vpop.eup %5695  ;;  %4219 = vst [vmem:[#allocation10 + $0x28] sm:$0xff] %v5694_v36 }
 0x5cf   :  { %v5698_v18 = vpop.eup %5697  ;;  %4225 = vst [vmem:[#allocation10 + $0x58] sm:$0xff] %v5696_v37 }
 0x5d0   :  { %4226 = vst [vmem:[#allocation10 + $0x60] sm:$0xff] %v5698_v18 }
 0x5d1   :  { %5799 = shalt.err (!%p5796_p8)
}
 0x5d2   :  { %s5800_s30 = scalar_lea.hbm %s6165_s10, 1792 }
 0x5d3   :  { %p5801_p9 = scmp.ne.s32.totalorder %s6165_s10, %s5800_s30  ;;  %p5804_p10 = scmp.lt.u32.totalorder %s5800_s30, %s6165_s10 }
 0x5d5   :  { %p5806_p11 = pnand %p5804_p10, %p5801_p9 }
 0x5d7   :  { %5809 = shalt.err (!%p5806_p11)
}
 0x5d8   :  { %s5834_s18 = smov 896   ;;  %s5835_s12 = smov 56  }
 0x5d9   :  { %4239 = dma.vmem_to_hbm [thread:$0]  %s4234_s11, 1792, %s6165_s10, [#allocation4], %s5834_s18, %s5834_s18, %s5835_s12  }
 0x5da   :  { %5816 = dma.done.wait [#allocation4], 1792  }
 0x5db   :  { %5817 = vsyncadd [#allocation4], 4294965504 }
 0x5dc   :  { %4247 = vsyncpa [#allocation3], 1 }
 0x5dd   :  { %4248 = vsyncpa [#allocation6], 1 }
 0x5de   :  { %4249 = vsyncpa [#allocation9], 1 }
 0x5df   :  { %4250 = vsyncpa [#allocation4], 1 }

// kernel: tpu_custom_call.1
= control target key start
LH: loop header
LB: loop body
LE: loop exit
PB: predicated region body
PF: predicated region fallthrough
CT: control target
= control target key end

     0   :  { %17 = vsyncpa [#allocation3], 0  ;;  %s6155_s0 = inlined_call_operand.hbm [shape: bf16[16,896], index: 0, kind: input, shape index: {}]   ;;  %s6156_s1 = inlined_call_operand.vmem [shape: f32[16,3], index: 1, kind: input, shape index: {}]   ;;  %s6157_s2 = inlined_call_operand.hbm [shape: bf16[896,512], index: 2, kind: input, shape index: {}]   ;;  %s6158_s3 = inlined_call_operand.vmem [shape: f32[1,512], index: 3, kind: input, shape index: {}]   ;;  %s6159_s4 = inlined_call_operand.hbm [shape: f32[512,128], index: 4, kind: input, shape index: {}]   ;;  %s6160_s5 = inlined_call_operand.vmem [shape: f32[1,128], index: 5, kind: input, shape index: {}]   ;;  %s6161_s6 = inlined_call_operand.vmem [shape: f32[3,512], index: 6, kind: input, shape index: {}]   ;;  %s6162_s7 = inlined_call_operand.vmem [shape: f32[1,512], index: 7, kind: input, shape index: {}]   ;;  %s6163_s8 = inlined_call_operand.hbm [shape: bf16[512,896], index: 8, kind: input, shape index: {}]   ;;  %s6164_s9 = inlined_call_operand.vmem [shape: f32[1,896], index: 9, kind: input, shape index: {}]   ;;  %s6165_s10 = inlined_call_operand.hbm [shape: f32[16,896], index: 10, kind: output, shape index: {0}]   ;;  %s6166_s11 = inlined_call_operand.vmem [shape: f32[16,1], index: 11, kind: output, shape index: {1}]  }
   0x1   :  { %18 = vsyncpa [#allocation6], 0 }
   0x2   :  { %19 = vsyncpa [#allocation9], 0 }
   0x3   :  { %20 = vsyncpa [#allocation4], 0  ;;  %s5818_s17 = smov [#allocation5]   ;;  %s5700_s21 = scalar_lea.hbm %s6157_s2, 28672 }
   0x4   :  { %s40_s18 = sshll.u32 %s5818_s17, 4  ;;  %p5701_p0 = scmp.ne.s32.totalorder %s6157_s2, %s5700_s21  ;;  %s41_s18 = int_to_ptr.vmem [resolvable:$true] %s40_s18 }
   0x5   :  { %p5704_p1 = scmp.lt.u32.totalorder %s5700_s21, %s6157_s2 }
   0x7   :  { %p5706_p2 = pnand %p5704_p1, %p5701_p0 }
   0x9   :  { %5709 = shalt.err (!%p5706_p2)
}
   0xa   :  { %s5710_s26 = scalar_lea.vmem %s41_s18, 28672  ;;  %p5715_p4 = scmp.lt.s32.totalorder %s41_s18, %s41_s18 }
   0xb   :  { %p5711_p3 = scmp.ne.s32.totalorder %s41_s18, %s5710_s26  ;;  %p5716_p5 = scmp.lt.s32.totalorder %s5710_s26, %s5710_s26 }
   0xd   :  { %p5717_p6 = por %p5716_p5, %p5715_p4 }
   0xf   :  { %p5718_p7 = pnand %p5717_p6, %p5711_p3 }
  0x11   :  { %5721 = shalt.err (!%p5718_p7)
}
  0x12   :  { %s5819_s27 = smov 256   ;;  %s5820_s28 = smov 16  }
  0x13   :  { %46 = dma.hbm_to_vmem [thread:$0]  %s6157_s2, 28672, %s41_s18, [#allocation6], %s5819_s27, %s5819_s27, %s5820_s28  }
  0x14   :  { %s5821_s12 = smov [#allocation2]   ;;  %s5722_s16 = scalar_lea.hbm %s6155_s0, 896 }
  0x15   :  { %s26_s13 = sshll.u32 %s5821_s12, 4  ;;  %p5723_p8 = scmp.ne.s32.totalorder %s6155_s0, %s5722_s16  ;;  %s27_s13 = int_to_ptr.vmem [resolvable:$true] %s26_s13 }
  0x16   :  { %p5726_p9 = scmp.lt.u32.totalorder %s5722_s16, %s6155_s0 }
  0x18   :  { %p5728_p10 = pnand %p5726_p9, %p5723_p8 }
  0x1a   :  { %5731 = shalt.err (!%p5728_p10)
}
  0x1b   :  { %s5732_s22 = scalar_lea.vmem %s27_s13, 896  ;;  %p5737_p12 = scmp.lt.s32.totalorder %s27_s13, %s27_s13 }
  0x1c   :  { %p5733_p11 = scmp.ne.s32.totalorder %s27_s13, %s5732_s22  ;;  %p5738_p13 = scmp.lt.s32.totalorder %s5732_s22, %s5732_s22 }
  0x1e   :  { %p5739_p0 = por %p5738_p13, %p5737_p12 }
  0x20   :  { %p5740_p1 = pnand %p5739_p0, %p5733_p11 }
  0x22   :  { %5743 = shalt.err (!%p5740_p1)
}
  0x23   :  { %s5822_s2 = smov 448   ;;  %s5823_s18 = smov 28  }
  0x24   :  { %32 = dma.hbm_to_vmem [thread:$0]  %s6155_s0, 896, %s27_s13, [#allocation3], %s5822_s2, %s5822_s2, %s5823_s18  }
  0x25   :  { %s5824_s25 = smov [#allocation7]   ;;  %s5744_s29 = scalar_lea.hbm %s6159_s4, 8192 }
  0x26   :  { %s54_s26 = sshll.u32 %s5824_s25, 4  ;;  %p5745_p2 = scmp.ne.s32.totalorder %s6159_s4, %s5744_s29  ;;  %s55_s26 = int_to_ptr.vmem [resolvable:$true] %s54_s26 }
  0x27   :  { %p5748_p3 = scmp.lt.u32.totalorder %s5744_s29, %s6159_s4 }
  0x29   :  { %p5750_p4 = pnand %p5748_p3, %p5745_p2 }
  0x2b   :  { %5753 = shalt.err (!%p5750_p4)
}
  0x2c   :  { %s5754_s16 = scalar_lea.vmem %s55_s26, 8192  ;;  %p5759_p6 = scmp.lt.s32.totalorder %s55_s26, %s55_s26 }
  0x2d   :  { %p5755_p5 = scmp.ne.s32.totalorder %s55_s26, %s5754_s16  ;;  %p5760_p7 = scmp.lt.s32.totalorder %s5754_s16, %s5754_s16 }
  0x2f   :  { %p5761_p8 = por %p5760_p7, %p5759_p6 }
  0x31   :  { %p5762_p9 = pnand %p5761_p8, %p5755_p5 }
  0x33   :  { %5765 = shalt.err (!%p5762_p9)
}
  0x34   :  { %s5825_s0 = smov 128   ;;  %s5826_s13 = smov 8  }
  0x35   :  { %60 = dma.hbm_to_vmem [thread:$0]  %s6159_s4, 8192, %s55_s26, [#allocation6], %s5825_s0, %s5825_s0, %s5826_s13  }
  0x36   :  { %s5827_s20 = smov [#allocation8]   ;;  %s5766_s24 = scalar_lea.hbm %s6163_s8, 28672 }
  0x37   :  { %s72_s21 = sshll.u32 %s5827_s20, 4  ;;  %p5767_p10 = scmp.ne.s32.totalorder %s6163_s8, %s5766_s24  ;;  %s73_s21 = int_to_ptr.vmem [resolvable:$true] %s72_s21 }
  0x38   :  { %p5770_p11 = scmp.lt.u32.totalorder %s5766_s24, %s6163_s8 }
  0x3a   :  { %p5772_p12 = pnand %p5770_p11, %p5767_p10 }
  0x3c   :  { %5775 = shalt.err (!%p5772_p12)
}
  0x3d   :  { %s5776_s30 = scalar_lea.vmem %s73_s21, 28672  ;;  %p5781_p0 = scmp.lt.s32.totalorder %s73_s21, %s73_s21 }
  0x3e   :  { %p5777_p13 = scmp.ne.s32.totalorder %s73_s21, %s5776_s30  ;;  %p5782_p1 = scmp.lt.s32.totalorder %s5776_s30, %s5776_s30 }
  0x40   :  { %p5783_p2 = por %p5782_p1, %p5781_p0 }
  0x42   :  { %p5784_p3 = pnand %p5783_p2, %p5777_p13 }
  0x44   :  { %5787 = shalt.err (!%p5784_p3)
}
  0x45   :  { %78 = dma.hbm_to_vmem [thread:$0]  %s6163_s8, 28672, %s73_s21, [#allocation9], %s5822_s2, %s5822_s2, %s5823_s18  }
  0x46   :  { %5810 = dma.done.wait [#allocation3], 896  }
  0x47   :  { %5811 = vsyncadd [#allocation3], 4294966400 }
  0x48   :  { %5812 = dma.done.wait [#allocation6], 36864  }
  0x49   :  { %5813 = vsyncadd [#allocation6], 4294930432 }
  0x4a   :  { %5814 = dma.done.wait [#allocation9], 28672  }
  0x4b   :  { %5815 = vsyncadd [#allocation9], 4294938624  ;;  %v5828_v0 = vmov 0   ;;  %v4973_v1 = vld [vmem:[#allocation5 + $0x4] ss:$16 sps:$4 sm:$0xff]   ;;  %s5829_s18 = smov 3  }
  0x4c   :  { %1665 = vmatprep.mubr.bf16.mxu1 %v5828_v0  ;;  %4967 = vset.pattern.permute.xlu0 %v5828_v0  ;;  %v4975_v2 = vld [vmem:[#allocation5 + $0x604] ss:$16 sps:$4 sm:$0xff]   ;;  %v4977_v3 = vld [vmem:[#allocation5] ss:$16 sps:$4 sm:$0xff]   ;;  %v5026_v34 = vld [vmem:[#allocation5 + $0xc] ss:$16 sps:$4 sm:$0xff]  }
  0x4d   :  { %1504 = vmatprep.subr.bf16.mxu0 %v4973_v1  ;;  %v4978_v4 = vld [vmem:[#allocation5 + $0x600] ss:$16 sps:$4 sm:$0xff]   ;;  %1633 = vmatprep.subr.bf16.mxu1 %v4975_v2  ;;  %v4979_v5 = vld [vmem:[#allocation5 + $0x24] ss:$16 sps:$4 sm:$0xff]   ;;  %v5024_v36 = vld [vmem:[#allocation5 + $0x8] ss:$16 sps:$4 sm:$0xff]  }
  0x4e   :  { %1505 = vmatpush1.bf16.msra.mxu0 %v4977_v3  ;;  %1634 = vmatpush1.bf16.msra.mxu1 %v4978_v4  ;;  %v4981_v6 = vld [vmem:[#allocation5 + $0x624] ss:$16 sps:$4 sm:$0xff]   ;;  %v4983_v7 = vld [vmem:[#allocation5 + $0x20] ss:$16 sps:$4 sm:$0xff]   ;;  %v5032_v39 = vld [vmem:[#allocation5 + $0x2c] ss:$16 sps:$4 sm:$0xff]  }
  0x4f   :  { %1506 = vmatprep.subr.bf16.mxu0 %v4979_v5  ;;  %v4984_v8 = vld [vmem:[#allocation5 + $0x620] ss:$16 sps:$4 sm:$0xff]   ;;  %1635 = vmatprep.subr.bf16.mxu1 %v4981_v6  ;;  %v4985_v9 = vld [vmem:[#allocation5 + $0x44] ss:$16 sps:$4 sm:$0xff]   ;;  %v5030_v40 = vld [vmem:[#allocation5 + $0x28] ss:$16 sps:$4 sm:$0xff]  }
  0x50   :  { %v4987_v10 = vld [vmem:[#allocation5 + $0x644] ss:$16 sps:$4 sm:$0xff]   ;;  %v4989_v11 = vld [vmem:[#allocation5 + $0x40] ss:$16 sps:$4 sm:$0xff]   ;;  %v5038_v43 = vld [vmem:[#allocation5 + $0x4c] ss:$16 sps:$4 sm:$0xff]  }
  0x51   :  { %v4990_v12 = vld [vmem:[#allocation5 + $0x640] ss:$16 sps:$4 sm:$0xff]   ;;  %v4991_v13 = vld [vmem:[#allocation5 + $0x64] ss:$16 sps:$4 sm:$0xff]   ;;  %v5036_v44 = vld [vmem:[#allocation5 + $0x48] ss:$16 sps:$4 sm:$0xff]  }
  0x52   :  { %1507 = vmatpush1.bf16.msra.mxu0 %v4983_v7  ;;  %1636 = vmatpush1.bf16.msra.mxu1 %v4984_v8  ;;  %v4993_v14 = vld [vmem:[#allocation5 + $0x664] ss:$16 sps:$4 sm:$0xff]   ;;  %v4995_v15 = vld [vmem:[#allocation5 + $0x60] ss:$16 sps:$4 sm:$0xff]   ;;  %v5044_v47 = vld [vmem:[#allocation5 + $0x6c] ss:$16 sps:$4 sm:$0xff]  }
  0x53   :  { %1508 = vmatprep.subr.bf16.mxu0 %v4985_v9  ;;  %1637 = vmatprep.subr.bf16.mxu1 %v4987_v10  ;;  %v4996_v16 = vld [vmem:[#allocation5 + $0x660] ss:$16 sps:$4 sm:$0xff]   ;;  %v4997_v17 = vld [vmem:[#allocation5 + $0x84] ss:$16 sps:$4 sm:$0xff]   ;;  %v5042_v48 = vld [vmem:[#allocation5 + $0x68] ss:$16 sps:$4 sm:$0xff]  }
  0x54   :  { %v4999_v18 = vld [vmem:[#allocation5 + $0x684] ss:$16 sps:$4 sm:$0xff]   ;;  %v5001_v19 = vld [vmem:[#allocation5 + $0x80] ss:$16 sps:$4 sm:$0xff]   ;;  %v5072_v51 = vld [vmem:[#allocation2 + $0x4] ss:$28 sps:$4 sm:$0xff]  }
  0x55   :  { %v5002_v20 = vld [vmem:[#allocation5 + $0x680] ss:$16 sps:$4 sm:$0xff]   ;;  %v5003_v21 = vld [vmem:[#allocation5 + $0xa4] ss:$16 sps:$4 sm:$0xff]   ;;  %v5050_v52 = vld [vmem:[#allocation5 + $0x8c] ss:$16 sps:$4 sm:$0xff]   ;;  %1536 = vmatprep.mubr.bf16.mxu0 %v5072_v51 }
  0x56   :  { %1509 = vmatpush1.bf16.msra.mxu0 %v4989_v11  ;;  %1638 = vmatpush1.bf16.msra.mxu1 %v4990_v12  ;;  %v5005_v22 = vld [vmem:[#allocation5 + $0x6a4] ss:$16 sps:$4 sm:$0xff]   ;;  %v5007_v23 = vld [vmem:[#allocation5 + $0xa0] ss:$16 sps:$4 sm:$0xff]   ;;  %v5048_v53 = vld [vmem:[#allocation5 + $0x88] ss:$16 sps:$4 sm:$0xff]  }
  0x57   :  { %1510 = vmatprep.subr.bf16.mxu0 %v4991_v13  ;;  %1639 = vmatprep.subr.bf16.mxu1 %v4993_v14  ;;  %v5008_v24 = vld [vmem:[#allocation5 + $0x6a0] ss:$16 sps:$4 sm:$0xff]   ;;  %v5009_v25 = vld [vmem:[#allocation5 + $0xc4] ss:$16 sps:$4 sm:$0xff]   ;;  %v5056_v56 = vld [vmem:[#allocation5 + $0xac] ss:$16 sps:$4 sm:$0xff]  }
  0x58   :  { %v5011_v26 = vld [vmem:[#allocation5 + $0x6c4] ss:$16 sps:$4 sm:$0xff]   ;;  %v5013_v27 = vld [vmem:[#allocation5 + $0xc0] ss:$16 sps:$4 sm:$0xff]   ;;  %v5054_v57 = vld [vmem:[#allocation5 + $0xa8] ss:$16 sps:$4 sm:$0xff]  }
  0x59   :  { %v5014_v28 = vld [vmem:[#allocation5 + $0x6c0] ss:$16 sps:$4 sm:$0xff]   ;;  %v5015_v29 = vld [vmem:[#allocation5 + $0xe4] ss:$16 sps:$4 sm:$0xff]   ;;  %v5062_v60 = vld [vmem:[#allocation5 + $0xcc] ss:$16 sps:$4 sm:$0xff]  }
  0x5a   :  { %1511 = vmatpush1.bf16.msra.mxu0 %v4995_v15  ;;  %1640 = vmatpush1.bf16.msra.mxu1 %v4996_v16  ;;  %v5017_v30 = vld [vmem:[#allocation5 + $0x6e4] ss:$16 sps:$4 sm:$0xff]   ;;  %v5019_v31 = vld [vmem:[#allocation5 + $0xe0] ss:$16 sps:$4 sm:$0xff]   ;;  %v5060_v61 = vld [vmem:[#allocation5 + $0xc8] ss:$16 sps:$4 sm:$0xff]  }
  0x5b   :  { %1512 = vmatprep.subr.bf16.mxu0 %v4997_v17  ;;  %1641 = vmatprep.subr.bf16.mxu1 %v4999_v18  ;;  %v5020_v32 = vld [vmem:[#allocation5 + $0x6e0] ss:$16 sps:$4 sm:$0xff]   ;;  %v5021_v33 = vld [vmem:[#allocation5 + $0x104] ss:$16 sps:$4 sm:$0xff]   ;;  %v5068_v1 = vld [vmem:[#allocation5 + $0xec] ss:$16 sps:$4 sm:$0xff]  }
  0x5c   :  { %v5023_v35 = vld [vmem:[#allocation2 + $0x18] ss:$28 sps:$4 sm:$0xff]   ;;  %v5028_v38 = vld [vmem:[#allocation5 + $0x124] ss:$16 sps:$4 sm:$0xff]   ;;  %v5066_v2 = vld [vmem:[#allocation5 + $0xe8] ss:$16 sps:$4 sm:$0xff]  }
  0x5d   :  { %v5027_v37 = vld [vmem:[#allocation5 + $0x100] ss:$16 sps:$4 sm:$0xff]   ;;  %v5034_v42 = vld [vmem:[#allocation5 + $0x144] ss:$16 sps:$4 sm:$0xff]   ;;  %v5078_v5 = vld [vmem:[#allocation5 + $0x10c] ss:$16 sps:$4 sm:$0xff]  }
  0x5e   :  { %1513 = vmatpush1.bf16.msra.mxu0 %v5001_v19  ;;  %1642 = vmatpush1.bf16.msra.mxu1 %v5002_v20  ;;  %v5033_v41 = vld [vmem:[#allocation5 + $0x120] ss:$16 sps:$4 sm:$0xff]   ;;  %v5040_v46 = vld [vmem:[#allocation5 + $0x164] ss:$16 sps:$4 sm:$0xff]   ;;  %v5076_v8 = vld [vmem:[#allocation5 + $0x108] ss:$16 sps:$4 sm:$0xff]  }
  0x5f   :  { %1514 = vmatprep.subr.bf16.mxu0 %v5003_v21  ;;  %1643 = vmatprep.subr.bf16.mxu1 %v5005_v22  ;;  %v5039_v45 = vld [vmem:[#allocation5 + $0x140] ss:$16 sps:$4 sm:$0xff]   ;;  %v5046_v50 = vld [vmem:[#allocation5 + $0x184] ss:$16 sps:$4 sm:$0xff]   ;;  %v5084_v10 = vld [vmem:[#allocation5 + $0x12c] ss:$16 sps:$4 sm:$0xff]  }
  0x60   :  { %v5045_v49 = vld [vmem:[#allocation5 + $0x160] ss:$16 sps:$4 sm:$0xff]   ;;  %v5052_v55 = vld [vmem:[#allocation5 + $0x1a4] ss:$16 sps:$4 sm:$0xff]   ;;  %v5082_v12 = vld [vmem:[#allocation5 + $0x128] ss:$16 sps:$4 sm:$0xff]  }
  0x61   :  { %v5051_v54 = vld [vmem:[#allocation5 + $0x180] ss:$16 sps:$4 sm:$0xff]   ;;  %v5058_v59 = vld [vmem:[#allocation5 + $0x1c4] ss:$16 sps:$4 sm:$0xff]   ;;  %v5090_v14 = vld [vmem:[#allocation5 + $0x14c] ss:$16 sps:$4 sm:$0xff]  }
  0x62   :  { %1515 = vmatpush1.bf16.msra.mxu0 %v5007_v23  ;;  %1644 = vmatpush1.bf16.msra.mxu1 %v5008_v24  ;;  %v5057_v58 = vld [vmem:[#allocation5 + $0x1a0] ss:$16 sps:$4 sm:$0xff]   ;;  %v5064_v63 = vld [vmem:[#allocation5 + $0x1e4] ss:$16 sps:$4 sm:$0xff]   ;;  %v5088_v16 = vld [vmem:[#allocation5 + $0x148] ss:$16 sps:$4 sm:$0xff]  }
  0x63   :  { %1516 = vmatprep.subr.bf16.mxu0 %v5009_v25  ;;  %1645 = vmatprep.subr.bf16.mxu1 %v5011_v26  ;;  %v5063_v62 = vld [vmem:[#allocation5 + $0x1c0] ss:$16 sps:$4 sm:$0xff]   ;;  %v5075_v4 = vld [vmem:[#allocation5 + $0x204] ss:$16 sps:$4 sm:$0xff]   ;;  %v5096_v18 = vld [vmem:[#allocation5 + $0x16c] ss:$16 sps:$4 sm:$0xff]  }
  0x64   :  { %v5069_v3 = vld [vmem:[#allocation5 + $0x1e0] ss:$16 sps:$4 sm:$0xff]   ;;  %v5952_v6 = vld [vmem:[#allocation2] ss:$28 sps:$4 sm:$0xff]   ;;  %v5102_v22 = vld [vmem:[#allocation5 + $0x18c] ss:$16 sps:$4 sm:$0xff]  }
  0x65   :  { %v5073_v7 = vld [vmem:[#allocation5 + $0x200] ss:$16 sps:$4 sm:$0xff]   ;;  %v5081_v9 = vld [vmem:[#allocation5 + $0x224] ss:$16 sps:$4 sm:$0xff]   ;;  %v5094_v20 = vld [vmem:[#allocation5 + $0x168] ss:$16 sps:$4 sm:$0xff]  }
  0x66   :  { %1517 = vmatpush1.bf16.msra.mxu0 %v5013_v27  ;;  %1646 = vmatpush1.bf16.msra.mxu1 %v5014_v28  ;;  %v5079_v11 = vld [vmem:[#allocation5 + $0x220] ss:$16 sps:$4 sm:$0xff]   ;;  %v5087_v13 = vld [vmem:[#allocation5 + $0x244] ss:$16 sps:$4 sm:$0xff]   ;;  %v5100_v24 = vld [vmem:[#allocation5 + $0x188] ss:$16 sps:$4 sm:$0xff]  }
  0x67   :  { %1518 = vmatprep.subr.bf16.mxu0 %v5015_v29  ;;  %1647 = vmatprep.subr.bf16.mxu1 %v5017_v30  ;;  %v5085_v15 = vld [vmem:[#allocation5 + $0x240] ss:$16 sps:$4 sm:$0xff]   ;;  %v5093_v17 = vld [vmem:[#allocation5 + $0x264] ss:$16 sps:$4 sm:$0xff]   ;;  %v5108_v26 = vld [vmem:[#allocation5 + $0x1ac] ss:$16 sps:$4 sm:$0xff]  }
  0x68   :  { %v5091_v19 = vld [vmem:[#allocation5 + $0x260] ss:$16 sps:$4 sm:$0xff]   ;;  %v5099_v21 = vld [vmem:[#allocation5 + $0x284] ss:$16 sps:$4 sm:$0xff]   ;;  %v5106_v28 = vld [vmem:[#allocation5 + $0x1a8] ss:$16 sps:$4 sm:$0xff]  }
  0x69   :  { %v5097_v23 = vld [vmem:[#allocation5 + $0x280] ss:$16 sps:$4 sm:$0xff]   ;;  %v5105_v25 = vld [vmem:[#allocation5 + $0x2a4] ss:$16 sps:$4 sm:$0xff]   ;;  %v5114_v30 = vld [vmem:[#allocation5 + $0x1cc] ss:$16 sps:$4 sm:$0xff]  }
  0x6a   :  { %1519 = vmatpush1.bf16.msra.mxu0 %v5019_v31  ;;  %1648 = vmatpush1.bf16.msra.mxu1 %v5020_v32  ;;  %v5103_v27 = vld [vmem:[#allocation5 + $0x2a0] ss:$16 sps:$4 sm:$0xff]   ;;  %v5111_v29 = vld [vmem:[#allocation5 + $0x2c4] ss:$16 sps:$4 sm:$0xff]   ;;  %v5112_v32 = vld [vmem:[#allocation5 + $0x1c8] ss:$16 sps:$4 sm:$0xff]  }
  0x6b   :  { %1520 = vmatprep.subr.bf16.mxu0 %v5021_v33  ;;  %1676 = vmatprep.subr.bf16.mxu1 %v5026_v34  ;;  %v5109_v31 = vld [vmem:[#allocation5 + $0x2c0] ss:$16 sps:$4 sm:$0xff]   ;;  %v5117_v33 = vld [vmem:[#allocation5 + $0x2e4] ss:$16 sps:$4 sm:$0xff]   ;;  %vm2129_vm0 = vcmask 23552   ;;  %vm2136_vm1 = vcmask 7168  }
  0x6c   :  { %v5171_v34 = vld [vmem:[#allocation2 + $0xc] ss:$28 sps:$4 sm:$0xff]  }
  0x6d   :  { %1666 = vmatmul.mubr.bf16.vlgmr.msra.gmra.mrb[0].mxu1 %v5023_v35  ;;  %v5120_v35 = vld [vmem:[#allocation5 + $0x1ec] ss:$16 sps:$4 sm:$0xff]  }
  0x6e   :  { %1521 = vmatpush1.bf16.msra.mxu0 %v5027_v37  ;;  %1677 = vmatpush1.bf16.msra.mxu1 %v5024_v36  ;;  %v5115_v36 = vld [vmem:[#allocation5 + $0x2e0] ss:$16 sps:$4 sm:$0xff]   ;;  %v5118_v37 = vld [vmem:[#allocation5 + $0x1e8] ss:$16 sps:$4 sm:$0xff]  }
  0x6f   :  { %1522 = vmatprep.subr.bf16.mxu0 %v5028_v38  ;;  %1678 = vmatprep.subr.bf16.mxu1 %v5032_v39  ;;  %v5123_v38 = vld [vmem:[#allocation5 + $0x304] ss:$16 sps:$4 sm:$0xff]   ;;  %v5126_v39 = vld [vmem:[#allocation5 + $0x20c] ss:$16 sps:$4 sm:$0xff]  }
  0x70   :  { %1708 = vmatprep.mubr.bf16.mxu1 %v5072_v51  ;;  %v5144_v51 = vld [vmem:[#allocation5 + $0x26c] ss:$16 sps:$4 sm:$0xff]  }
  0x72   :  { %1523 = vmatpush1.bf16.msra.mxu0 %v5033_v41  ;;  %1679 = vmatpush1.bf16.msra.mxu1 %v5030_v40  ;;  %v5121_v40 = vld [vmem:[#allocation5 + $0x300] ss:$16 sps:$4 sm:$0xff]   ;;  %v5124_v41 = vld [vmem:[#allocation5 + $0x208] ss:$16 sps:$4 sm:$0xff]  }
  0x73   :  { %1524 = vmatprep.subr.bf16.mxu0 %v5034_v42  ;;  %1680 = vmatprep.subr.bf16.mxu1 %v5038_v43  ;;  %v5129_v42 = vld [vmem:[#allocation5 + $0x324] ss:$16 sps:$4 sm:$0xff]   ;;  %v5132_v43 = vld [vmem:[#allocation5 + $0x22c] ss:$16 sps:$4 sm:$0xff]  }
  0x76   :  { %1525 = vmatpush1.bf16.msra.mxu0 %v5039_v45  ;;  %1681 = vmatpush1.bf16.msra.mxu1 %v5036_v44  ;;  %v5127_v44 = vld [vmem:[#allocation5 + $0x320] ss:$16 sps:$4 sm:$0xff]   ;;  %v5130_v45 = vld [vmem:[#allocation5 + $0x228] ss:$16 sps:$4 sm:$0xff]  }
  0x77   :  { %1526 = vmatprep.subr.bf16.mxu0 %v5040_v46  ;;  %1682 = vmatprep.subr.bf16.mxu1 %v5044_v47  ;;  %v5135_v46 = vld [vmem:[#allocation5 + $0x344] ss:$16 sps:$4 sm:$0xff]   ;;  %v5138_v47 = vld [vmem:[#allocation5 + $0x24c] ss:$16 sps:$4 sm:$0xff]  }
  0x7a   :  { %1527 = vmatpush1.bf16.msra.mxu0 %v5045_v49  ;;  %1683 = vmatpush1.bf16.msra.mxu1 %v5042_v48  ;;  %v5133_v48 = vld [vmem:[#allocation5 + $0x340] ss:$16 sps:$4 sm:$0xff]   ;;  %v5136_v49 = vld [vmem:[#allocation5 + $0x248] ss:$16 sps:$4 sm:$0xff]  }
  0x7b   :  { %1528 = vmatprep.subr.bf16.mxu0 %v5046_v50  ;;  %1684 = vmatprep.subr.bf16.mxu1 %v5050_v52  ;;  %v5141_v50 = vld [vmem:[#allocation5 + $0x364] ss:$16 sps:$4 sm:$0xff]   ;;  %v5139_v52 = vld [vmem:[#allocation5 + $0x360] ss:$16 sps:$4 sm:$0xff]  }
  0x7e   :  { %1529 = vmatpush1.bf16.msra.mxu0 %v5051_v54  ;;  %1685 = vmatpush1.bf16.msra.mxu1 %v5048_v53  ;;  %v5142_v53 = vld [vmem:[#allocation5 + $0x268] ss:$16 sps:$4 sm:$0xff]   ;;  %v5147_v54 = vld [vmem:[#allocation5 + $0x384] ss:$16 sps:$4 sm:$0xff]  }
  0x7f   :  { %1530 = vmatprep.subr.bf16.mxu0 %v5052_v55  ;;  %1686 = vmatprep.subr.bf16.mxu1 %v5056_v56  ;;  %v5150_v55 = vld [vmem:[#allocation5 + $0x28c] ss:$16 sps:$4 sm:$0xff]   ;;  %v5145_v56 = vld [vmem:[#allocation5 + $0x380] ss:$16 sps:$4 sm:$0xff]  }
  0x82   :  { %1531 = vmatpush1.bf16.msra.mxu0 %v5057_v58  ;;  %1687 = vmatpush1.bf16.msra.mxu1 %v5054_v57  ;;  %v5148_v57 = vld [vmem:[#allocation5 + $0x288] ss:$16 sps:$4 sm:$0xff]   ;;  %v5153_v58 = vld [vmem:[#allocation5 + $0x3a4] ss:$16 sps:$4 sm:$0xff]  }
  0x83   :  { %1532 = vmatprep.subr.bf16.mxu0 %v5058_v59  ;;  %1688 = vmatprep.subr.bf16.mxu1 %v5062_v60  ;;  %v5156_v59 = vld [vmem:[#allocation5 + $0x2ac] ss:$16 sps:$4 sm:$0xff]   ;;  %v5151_v60 = vld [vmem:[#allocation5 + $0x3a0] ss:$16 sps:$4 sm:$0xff]  }
  0x86   :  { %1533 = vmatpush1.bf16.msra.mxu0 %v5063_v62  ;;  %1689 = vmatpush1.bf16.msra.mxu1 %v5060_v61  ;;  %v5154_v61 = vld [vmem:[#allocation5 + $0x2a8] ss:$16 sps:$4 sm:$0xff]   ;;  %v5159_v62 = vld [vmem:[#allocation5 + $0x3c4] ss:$16 sps:$4 sm:$0xff]  }
  0x87   :  { %1534 = vmatprep.subr.bf16.mxu0 %v5064_v63  ;;  %1690 = vmatprep.subr.bf16.mxu1 %v5068_v1  ;;  %v5162_v63 = vld [vmem:[#allocation5 + $0x2cc] ss:$16 sps:$4 sm:$0xff]   ;;  %v5157_v1 = vld [vmem:[#allocation5 + $0x3c0] ss:$16 sps:$4 sm:$0xff]  }
  0x8a   :  { %1535 = vmatpush1.bf16.msra.mxu0 %v5069_v3  ;;  %1691 = vmatpush1.bf16.msra.mxu1 %v5066_v2  ;;  %v5160_v2 = vld [vmem:[#allocation5 + $0x2c8] ss:$16 sps:$4 sm:$0xff]   ;;  %v5165_v3 = vld [vmem:[#allocation5 + $0x3e4] ss:$16 sps:$4 sm:$0xff]  }
  0x8b   :  { %1547 = vmatprep.subr.bf16.mxu0 %v5075_v4  ;;  %1692 = vmatprep.subr.bf16.mxu1 %v5078_v5  ;;  %v5168_v4 = vld [vmem:[#allocation5 + $0x2ec] ss:$16 sps:$4 sm:$0xff]   ;;  %v5163_v5 = vld [vmem:[#allocation5 + $0x3e0] ss:$16 sps:$4 sm:$0xff]  }
  0x8d   :  { %1537 = vmatmul.mubr.bf16.vlgmr.msra.gmra.mrb[0].mxu0 %v5952_v6 }
  0x8e   :  { %1548 = vmatpush1.bf16.msra.mxu0 %v5073_v7  ;;  %1693 = vmatpush1.bf16.msra.mxu1 %v5076_v8  ;;  %v5174_v7 = vld [vmem:[#allocation5 + $0x404] ss:$16 sps:$4 sm:$0xff]   ;;  %v5177_v8 = vld [vmem:[#allocation5 + $0x30c] ss:$16 sps:$4 sm:$0xff]  }
  0x8f   :  { %1549 = vmatprep.subr.bf16.mxu0 %v5081_v9  ;;  %1694 = vmatprep.subr.bf16.mxu1 %v5084_v10  ;;  %v5956_v9 = vld [vmem:[#allocation2 + $0x8] ss:$28 sps:$4 sm:$0xff]  }
  0x90   :  { %1579 = vmatprep.mubr.bf16.mxu0 %v5171_v34  ;;  %v5172_v10 = vld [vmem:[#allocation5 + $0x400] ss:$16 sps:$4 sm:$0xff]  }
  0x92   :  { %1550 = vmatpush1.bf16.msra.mxu0 %v5079_v11  ;;  %1695 = vmatpush1.bf16.msra.mxu1 %v5082_v12  ;;  %v5175_v11 = vld [vmem:[#allocation5 + $0x308] ss:$16 sps:$4 sm:$0xff]   ;;  %v5180_v12 = vld [vmem:[#allocation5 + $0x424] ss:$16 sps:$4 sm:$0xff]  }
  0x93   :  { %1551 = vmatprep.subr.bf16.mxu0 %v5087_v13  ;;  %1696 = vmatprep.subr.bf16.mxu1 %v5090_v14  ;;  %v5183_v13 = vld [vmem:[#allocation5 + $0x32c] ss:$16 sps:$4 sm:$0xff]   ;;  %v5178_v14 = vld [vmem:[#allocation5 + $0x420] ss:$16 sps:$4 sm:$0xff]  }
  0x96   :  { %1552 = vmatpush1.bf16.msra.mxu0 %v5085_v15  ;;  %1697 = vmatpush1.bf16.msra.mxu1 %v5088_v16  ;;  %v5181_v15 = vld [vmem:[#allocation5 + $0x328] ss:$16 sps:$4 sm:$0xff]   ;;  %v5186_v16 = vld [vmem:[#allocation5 + $0x444] ss:$16 sps:$4 sm:$0xff]  }
  0x97   :  { %1553 = vmatprep.subr.bf16.mxu0 %v5093_v17  ;;  %1698 = vmatprep.subr.bf16.mxu1 %v5096_v18  ;;  %v5959_v17 = vld [vmem:[#allocation2 + $0x14] ss:$28 sps:$4 sm:$0xff]  }
  0x98   :  { %v5189_v18 = vld [vmem:[#allocation5 + $0x34c] ss:$16 sps:$4 sm:$0xff]  }
  0x9a   :  { %1554 = vmatpush1.bf16.msra.mxu0 %v5091_v19  ;;  %1699 = vmatpush1.bf16.msra.mxu1 %v5094_v20  ;;  %v5184_v19 = vld [vmem:[#allocation5 + $0x440] ss:$16 sps:$4 sm:$0xff]   ;;  %v5187_v20 = vld [vmem:[#allocation5 + $0x348] ss:$16 sps:$4 sm:$0xff]  }
  0x9b   :  { %1555 = vmatprep.subr.bf16.mxu0 %v5099_v21  ;;  %1700 = vmatprep.subr.bf16.mxu1 %v5102_v22  ;;  %v5192_v21 = vld [vmem:[#allocation5 + $0x464] ss:$16 sps:$4 sm:$0xff]   ;;  %v5195_v22 = vld [vmem:[#allocation5 + $0x36c] ss:$16 sps:$4 sm:$0xff]  }
  0x9e   :  { %1556 = vmatpush1.bf16.msra.mxu0 %v5097_v23  ;;  %1701 = vmatpush1.bf16.msra.mxu1 %v5100_v24  ;;  %v5190_v23 = vld [vmem:[#allocation5 + $0x460] ss:$16 sps:$4 sm:$0xff]   ;;  %v5193_v24 = vld [vmem:[#allocation5 + $0x368] ss:$16 sps:$4 sm:$0xff]  }
  0x9f   :  { %1557 = vmatprep.subr.bf16.mxu0 %v5105_v25  ;;  %1702 = vmatprep.subr.bf16.mxu1 %v5108_v26  ;;  %v5198_v25 = vld [vmem:[#allocation5 + $0x484] ss:$16 sps:$4 sm:$0xff]   ;;  %v5201_v26 = vld [vmem:[#allocation5 + $0x38c] ss:$16 sps:$4 sm:$0xff]  }
  0xa2   :  { %1558 = vmatpush1.bf16.msra.mxu0 %v5103_v27  ;;  %1703 = vmatpush1.bf16.msra.mxu1 %v5106_v28  ;;  %v5196_v27 = vld [vmem:[#allocation5 + $0x480] ss:$16 sps:$4 sm:$0xff]   ;;  %v5199_v28 = vld [vmem:[#allocation5 + $0x388] ss:$16 sps:$4 sm:$0xff]  }
  0xa3   :  { %1559 = vmatprep.subr.bf16.mxu0 %v5111_v29  ;;  %1704 = vmatprep.subr.bf16.mxu1 %v5114_v30  ;;  %v5204_v29 = vld [vmem:[#allocation5 + $0x4a4] ss:$16 sps:$4 sm:$0xff]   ;;  %v5207_v30 = vld [vmem:[#allocation5 + $0x3ac] ss:$16 sps:$4 sm:$0xff]  }
  0xa6   :  { %1560 = vmatpush1.bf16.msra.mxu0 %v5109_v31  ;;  %1705 = vmatpush1.bf16.msra.mxu1 %v5112_v32  ;;  %v5202_v31 = vld [vmem:[#allocation5 + $0x4a0] ss:$16 sps:$4 sm:$0xff]   ;;  %v5205_v32 = vld [vmem:[#allocation5 + $0x3a8] ss:$16 sps:$4 sm:$0xff]  }
  0xa7   :  { %1561 = vmatprep.subr.bf16.mxu0 %v5117_v33  ;;  %1706 = vmatprep.subr.bf16.mxu1 %v5120_v35  ;;  %v5210_v33 = vld [vmem:[#allocation5 + $0x4c4] ss:$16 sps:$4 sm:$0xff]   ;;  %v5208_v35 = vld [vmem:[#allocation5 + $0x4c0] ss:$16 sps:$4 sm:$0xff]  }
  0xaa   :  { %1562 = vmatpush1.bf16.msra.mxu0 %v5115_v36  ;;  %1707 = vmatpush1.bf16.msra.mxu1 %v5118_v37  ;;  %v5211_v36 = vld [vmem:[#allocation5 + $0x3c8] ss:$16 sps:$4 sm:$0xff]   ;;  %v5216_v37 = vld [vmem:[#allocation5 + $0x4e4] ss:$16 sps:$4 sm:$0xff]  }
  0xab   :  { %1563 = vmatprep.subr.bf16.mxu0 %v5123_v38  ;;  %1719 = vmatprep.subr.bf16.mxu1 %v5126_v39  ;;  %v5219_v38 = vld [vmem:[#allocation5 + $0x3ec] ss:$16 sps:$4 sm:$0xff]   ;;  %v5214_v39 = vld [vmem:[#allocation5 + $0x4e0] ss:$16 sps:$4 sm:$0xff]  }
  0xad   :  { %1709 = vmatmul.mubr.bf16.vlgmr.msra.gmra.mrb[4].mxu1 %v5952_v6  ;;  %v5166_v6 = vld [vmem:[#allocation5 + $0x2e8] ss:$16 sps:$4 sm:$0xff]  }
  0xae   :  { %1564 = vmatpush1.bf16.msra.mxu0 %v5121_v40  ;;  %1720 = vmatpush1.bf16.msra.mxu1 %v5124_v41  ;;  %v5217_v40 = vld [vmem:[#allocation5 + $0x3e8] ss:$16 sps:$4 sm:$0xff]   ;;  %v5222_v41 = vld [vmem:[#allocation5 + $0x504] ss:$16 sps:$4 sm:$0xff]  }
  0xaf   :  { %1565 = vmatprep.subr.bf16.mxu0 %v5129_v42  ;;  %1721 = vmatprep.subr.bf16.mxu1 %v5132_v43  ;;  %v5225_v42 = vld [vmem:[#allocation5 + $0x40c] ss:$16 sps:$4 sm:$0xff]   ;;  %v5220_v43 = vld [vmem:[#allocation5 + $0x500] ss:$16 sps:$4 sm:$0xff]  }
  0xb0   :  { %1751 = vmatprep.mubr.bf16.mxu1 %v5171_v34  ;;  %v5213_v34 = vld [vmem:[#allocation5 + $0x3cc] ss:$16 sps:$4 sm:$0xff]  }
  0xb2   :  { %1566 = vmatpush1.bf16.msra.mxu0 %v5127_v44  ;;  %1722 = vmatpush1.bf16.msra.mxu1 %v5130_v45  ;;  %v5223_v44 = vld [vmem:[#allocation5 + $0x408] ss:$16 sps:$4 sm:$0xff]   ;;  %v5228_v45 = vld [vmem:[#allocation5 + $0x524] ss:$16 sps:$4 sm:$0xff]  }
  0xb3   :  { %1567 = vmatprep.subr.bf16.mxu0 %v5135_v46  ;;  %1723 = vmatprep.subr.bf16.mxu1 %v5138_v47  ;;  %v5231_v46 = vld [vmem:[#allocation5 + $0x42c] ss:$16 sps:$4 sm:$0xff]   ;;  %v5226_v47 = vld [vmem:[#allocation5 + $0x520] ss:$16 sps:$4 sm:$0xff]  }
  0xb6   :  { %1568 = vmatpush1.bf16.msra.mxu0 %v5133_v48  ;;  %1724 = vmatpush1.bf16.msra.mxu1 %v5136_v49  ;;  %v5229_v48 = vld [vmem:[#allocation5 + $0x428] ss:$16 sps:$4 sm:$0xff]   ;;  %v5234_v49 = vld [vmem:[#allocation5 + $0x544] ss:$16 sps:$4 sm:$0xff]  }
  0xb7   :  { %1569 = vmatprep.subr.bf16.mxu0 %v5141_v50  ;;  %1725 = vmatprep.subr.bf16.mxu1 %v5144_v51  ;;  %v5237_v50 = vld [vmem:[#allocation5 + $0x44c] ss:$16 sps:$4 sm:$0xff]   ;;  %v5232_v51 = vld [vmem:[#allocation5 + $0x540] ss:$16 sps:$4 sm:$0xff]  }
  0xba   :  { %1570 = vmatpush1.bf16.msra.mxu0 %v5139_v52  ;;  %1726 = vmatpush1.bf16.msra.mxu1 %v5142_v53  ;;  %v5235_v52 = vld [vmem:[#allocation5 + $0x448] ss:$16 sps:$4 sm:$0xff]   ;;  %v5240_v53 = vld [vmem:[#allocation5 + $0x564] ss:$16 sps:$4 sm:$0xff]  }
  0xbb   :  { %1571 = vmatprep.subr.bf16.mxu0 %v5147_v54  ;;  %1727 = vmatprep.subr.bf16.mxu1 %v5150_v55  ;;  %v5243_v54 = vld [vmem:[#allocation5 + $0x46c] ss:$16 sps:$4 sm:$0xff]   ;;  %v5238_v55 = vld [vmem:[#allocation5 + $0x560] ss:$16 sps:$4 sm:$0xff]  }
  0xbe   :  { %1572 = vmatpush1.bf16.msra.mxu0 %v5145_v56  ;;  %1728 = vmatpush1.bf16.msra.mxu1 %v5148_v57  ;;  %v5241_v56 = vld [vmem:[#allocation5 + $0x468] ss:$16 sps:$4 sm:$0xff]   ;;  %v5246_v57 = vld [vmem:[#allocation5 + $0x584] ss:$16 sps:$4 sm:$0xff]  }
  0xbf   :  { %1573 = vmatprep.subr.bf16.mxu0 %v5153_v58  ;;  %1729 = vmatprep.subr.bf16.mxu1 %v5156_v59  ;;  %v5249_v58 = vld [vmem:[#allocation5 + $0x48c] ss:$16 sps:$4 sm:$0xff]   ;;  %v5244_v59 = vld [vmem:[#allocation5 + $0x580] ss:$16 sps:$4 sm:$0xff]  }
  0xc2   :  { %1574 = vmatpush1.bf16.msra.mxu0 %v5151_v60  ;;  %1730 = vmatpush1.bf16.msra.mxu1 %v5154_v61  ;;  %v5247_v60 = vld [vmem:[#allocation5 + $0x488] ss:$16 sps:$4 sm:$0xff]   ;;  %v5252_v61 = vld [vmem:[#allocation5 + $0x5a4] ss:$16 sps:$4 sm:$0xff]  }
  0xc3   :  { %1575 = vmatprep.subr.bf16.mxu0 %v5159_v62  ;;  %1731 = vmatprep.subr.bf16.mxu1 %v5162_v63  ;;  %v5255_v62 = vld [vmem:[#allocation5 + $0x4ac] ss:$16 sps:$4 sm:$0xff]   ;;  %v5250_v63 = vld [vmem:[#allocation5 + $0x5a0] ss:$16 sps:$4 sm:$0xff]  }
  0xc6   :  { %1576 = vmatpush1.bf16.msra.mxu0 %v5157_v1  ;;  %1732 = vmatpush1.bf16.msra.mxu1 %v5160_v2  ;;  %v5253_v1 = vld [vmem:[#allocation5 + $0x4a8] ss:$16 sps:$4 sm:$0xff]   ;;  %v5258_v2 = vld [vmem:[#allocation5 + $0x5c4] ss:$16 sps:$4 sm:$0xff]  }
  0xc7   :  { %1577 = vmatprep.subr.bf16.mxu0 %v5165_v3  ;;  %1733 = vmatprep.subr.bf16.mxu1 %v5168_v4  ;;  %v5261_v3 = vld [vmem:[#allocation5 + $0x4cc] ss:$16 sps:$4 sm:$0xff]   ;;  %v5256_v4 = vld [vmem:[#allocation5 + $0x5c0] ss:$16 sps:$4 sm:$0xff]  }
  0xca   :  { %1578 = vmatpush1.bf16.msra.mxu0 %v5163_v5  ;;  %1734 = vmatpush1.bf16.msra.mxu1 %v5166_v6  ;;  %v5259_v5 = vld [vmem:[#allocation5 + $0x4c8] ss:$16 sps:$4 sm:$0xff]   ;;  %v5264_v6 = vld [vmem:[#allocation5 + $0x5e4] ss:$16 sps:$4 sm:$0xff]  }
  0xcb   :  { %1590 = vmatprep.subr.bf16.mxu0 %v5174_v7  ;;  %1735 = vmatprep.subr.bf16.mxu1 %v5177_v8  ;;  %v5267_v7 = vld [vmem:[#allocation5 + $0x4ec] ss:$16 sps:$4 sm:$0xff]   ;;  %v1872_v8 = vld [vmem:[#allocation7 + $0x80] sm:$0xff] }
  0xcd   :  { %1580 = vmatmul.mubr.bf16.vlgmr.msra.gmra.mrb[0].mxu0 %v5956_v9 }
  0xce   :  { %1591 = vmatpush1.bf16.msra.mxu0 %v5172_v10  ;;  %1736 = vmatpush1.bf16.msra.mxu1 %v5175_v11  ;;  %v5262_v10 = vld [vmem:[#allocation5 + $0x5e0] ss:$16 sps:$4 sm:$0xff]   ;;  %v5265_v11 = vld [vmem:[#allocation5 + $0x4e8] ss:$16 sps:$4 sm:$0xff]  }
  0xcf   :  { %1592 = vmatprep.subr.bf16.mxu0 %v5180_v12  ;;  %1737 = vmatprep.subr.bf16.mxu1 %v5183_v13  ;;  %v5273_v12 = vld [vmem:[#allocation5 + $0x50c] ss:$16 sps:$4 sm:$0xff]   ;;  %v1856_v13 = vld [vmem:[#allocation7] sm:$0xff] }
  0xd0   :  { %1622 = vmatprep.mubr.bf16.mxu0 %v5959_v17 }
  0xd2   :  { %1593 = vmatpush1.bf16.msra.mxu0 %v5178_v14  ;;  %1738 = vmatpush1.bf16.msra.mxu1 %v5181_v15  ;;  %v1857_v14 = vld [vmem:[#allocation7 + $0x8] sm:$0xff]  ;;  %v1874_v15 = vld [vmem:[#allocation7 + $0x90] sm:$0xff] }
  0xd3   :  { %1594 = vmatprep.subr.bf16.mxu0 %v5186_v16  ;;  %1739 = vmatprep.subr.bf16.mxu1 %v5189_v18  ;;  %v1875_v16 = vld [vmem:[#allocation7 + $0x98] sm:$0xff] }
  0xd6   :  { %1595 = vmatpush1.bf16.msra.mxu0 %v5184_v19  ;;  %1740 = vmatpush1.bf16.msra.mxu1 %v5187_v20  ;;  %v5271_v19 = vld [vmem:[#allocation5 + $0x508] ss:$16 sps:$4 sm:$0xff]   ;;  %v5276_v20 = vld [vmem:[#allocation5 + $0x52c] ss:$16 sps:$4 sm:$0xff]  }
  0xd7   :  { %1596 = vmatprep.subr.bf16.mxu0 %v5192_v21  ;;  %1741 = vmatprep.subr.bf16.mxu1 %v5195_v22  ;;  %v1858_v21 = vld [vmem:[#allocation7 + $0x10] sm:$0xff]  ;;  %v1859_v22 = vld [vmem:[#allocation7 + $0x18] sm:$0xff] }
  0xda   :  { %1597 = vmatpush1.bf16.msra.mxu0 %v5190_v23  ;;  %1742 = vmatpush1.bf16.msra.mxu1 %v5193_v24  ;;  %v4831_v23 = vpack.c.bf16 %v1857_v14, %v1856_v13  ;;  %v1876_v24 = vld [vmem:[#allocation7 + $0xa0] sm:$0xff] }
  0xdb   :  { %1598 = vmatprep.subr.bf16.mxu0 %v5198_v25  ;;  %1743 = vmatprep.subr.bf16.mxu1 %v5201_v26  ;;  %v1877_v25 = vld [vmem:[#allocation7 + $0xa8] sm:$0xff]  ;;  %v4833_v26 = vpack.c.bf16 %v1875_v16, %v1874_v15 }
  0xdc   :  { %v5313_v16 = vld [vmem:[#allocation5 + $0x6c8] ss:$16 sps:$4 sm:$0xff]  }
  0xde   :  { %1599 = vmatpush1.bf16.msra.mxu0 %v5196_v27  ;;  %1744 = vmatpush1.bf16.msra.mxu1 %v5199_v28  ;;  %v5274_v27 = vld [vmem:[#allocation5 + $0x528] ss:$16 sps:$4 sm:$0xff]   ;;  %v5279_v28 = vld [vmem:[#allocation5 + $0x54c] ss:$16 sps:$4 sm:$0xff]  }
  0xdf   :  { %1600 = vmatprep.subr.bf16.mxu0 %v5204_v29  ;;  %1745 = vmatprep.subr.bf16.mxu1 %v5207_v30  ;;  %v1860_v29 = vld [vmem:[#allocation7 + $0x20] sm:$0xff]  ;;  %v1861_v30 = vld [vmem:[#allocation7 + $0x28] sm:$0xff] }
  0xe2   :  { %1601 = vmatpush1.bf16.msra.mxu0 %v5202_v31  ;;  %1746 = vmatpush1.bf16.msra.mxu1 %v5205_v32  ;;  %v4835_v31 = vpack.c.bf16 %v1859_v22, %v1858_v21  ;;  %v1878_v32 = vld [vmem:[#allocation7 + $0xb0] sm:$0xff]  ;;  %v1884_v21 = vld [vmem:[#allocation7 + $0xe0] sm:$0xff]  ;;  %v1885_v22 = vld [vmem:[#allocation7 + $0xe8] sm:$0xff] }
  0xe3   :  { %1602 = vmatprep.subr.bf16.mxu0 %v5210_v33  ;;  %1747 = vmatprep.subr.bf16.mxu1 %v5213_v34  ;;  %v1879_v33 = vld [vmem:[#allocation7 + $0xb8] sm:$0xff]  ;;  %v4837_v34 = vpack.c.bf16 %v1877_v25, %v1876_v24  ;;  %v1868_v24 = vld [vmem:[#allocation7 + $0x60] sm:$0xff]  ;;  %v1869_v25 = vld [vmem:[#allocation7 + $0x68] sm:$0xff] }
  0xe6   :  { %1603 = vmatpush1.bf16.msra.mxu0 %v5208_v35  ;;  %1748 = vmatpush1.bf16.msra.mxu1 %v5211_v36  ;;  %v5277_v35 = vld [vmem:[#allocation5 + $0x548] ss:$16 sps:$4 sm:$0xff]   ;;  %v5282_v36 = vld [vmem:[#allocation5 + $0x56c] ss:$16 sps:$4 sm:$0xff]  }
  0xe7   :  { %1604 = vmatprep.subr.bf16.mxu0 %v5216_v37  ;;  %1749 = vmatprep.subr.bf16.mxu1 %v5219_v38  ;;  %v1862_v37 = vld [vmem:[#allocation7 + $0x30] sm:$0xff]  ;;  %v1863_v38 = vld [vmem:[#allocation7 + $0x38] sm:$0xff] }
  0xea   :  { %1605 = vmatpush1.bf16.msra.mxu0 %v5214_v39  ;;  %1750 = vmatpush1.bf16.msra.mxu1 %v5217_v40  ;;  %v4839_v39 = vpack.c.bf16 %v1861_v30, %v1860_v29  ;;  %v1880_v40 = vld [vmem:[#allocation7 + $0xc0] sm:$0xff]  ;;  %v1870_v30 = vld [vmem:[#allocation7 + $0x70] sm:$0xff] }
  0xeb   :  { %1606 = vmatprep.subr.bf16.mxu0 %v5222_v41  ;;  %1762 = vmatprep.subr.bf16.mxu1 %v5225_v42  ;;  %v1881_v41 = vld [vmem:[#allocation7 + $0xc8] sm:$0xff]  ;;  %v4841_v42 = vpack.c.bf16 %v1879_v33, %v1878_v32  ;;  %v1904_v33 = vld [vmem:[#allocation7 + $0x180] sm:$0xff] }
  0xed   :  { %1752 = vmatmul.mubr.bf16.vlgmr.msra.gmra.mrb[4].mxu1 %v5956_v9  ;;  %v1873_v9 = vld [vmem:[#allocation7 + $0x88] sm:$0xff] }
  0xee   :  { %1607 = vmatpush1.bf16.msra.mxu0 %v5220_v43  ;;  %1763 = vmatpush1.bf16.msra.mxu1 %v5223_v44  ;;  %v4829_v18 = vpack.c.bf16 %v1873_v9, %v1872_v8  ;;  %v5280_v43 = vld [vmem:[#allocation5 + $0x568] ss:$16 sps:$4 sm:$0xff]   ;;  %v5285_v44 = vld [vmem:[#allocation5 + $0x58c] ss:$16 sps:$4 sm:$0xff]  }
  0xef   :  { %1608 = vmatprep.subr.bf16.mxu0 %v5228_v45  ;;  %1764 = vmatprep.subr.bf16.mxu1 %v5231_v46  ;;  %v1864_v45 = vld [vmem:[#allocation7 + $0x40] sm:$0xff]  ;;  %v1865_v46 = vld [vmem:[#allocation7 + $0x48] sm:$0xff] }
  0xf0   :  { %1794 = vmatprep.mubr.bf16.mxu1 %v5959_v17  ;;  %v5964_v17 = vld [vmem:[#allocation2 + $0x10] ss:$28 sps:$4 sm:$0xff]   ;;  %v5309_v8 = vld [vmem:[#allocation5 + $0x68c] ss:$16 sps:$4 sm:$0xff]  }
  0xf1   :  { %v5307_v9 = vld [vmem:[#allocation5 + $0x688] ss:$16 sps:$4 sm:$0xff]  }
  0xf2   :  { %1609 = vmatpush1.bf16.msra.mxu0 %v5226_v47  ;;  %1765 = vmatpush1.bf16.msra.mxu1 %v5229_v48  ;;  %v4843_v47 = vpack.c.bf16 %v1863_v38, %v1862_v37  ;;  %v1882_v48 = vld [vmem:[#allocation7 + $0xd0] sm:$0xff]  ;;  %v1889_v37 = vld [vmem:[#allocation7 + $0x108] sm:$0xff] }
  0xf3   :  { %1610 = vmatprep.subr.bf16.mxu0 %v5234_v49  ;;  %1766 = vmatprep.subr.bf16.mxu1 %v5237_v50  ;;  %v1883_v49 = vld [vmem:[#allocation7 + $0xd8] sm:$0xff]  ;;  %v4845_v50 = vpack.c.bf16 %v1881_v41, %v1880_v40  ;;  %v1906_v38 = vld [vmem:[#allocation7 + $0x190] sm:$0xff] }
  0xf6   :  { %1611 = vmatpush1.bf16.msra.mxu0 %v5232_v51  ;;  %1767 = vmatpush1.bf16.msra.mxu1 %v5235_v52  ;;  %v5283_v51 = vld [vmem:[#allocation5 + $0x588] ss:$16 sps:$4 sm:$0xff]   ;;  %v5288_v52 = vld [vmem:[#allocation5 + $0x5ac] ss:$16 sps:$4 sm:$0xff]  }
  0xf7   :  { %1612 = vmatprep.subr.bf16.mxu0 %v5240_v53  ;;  %1768 = vmatprep.subr.bf16.mxu1 %v5243_v54  ;;  %v1866_v53 = vld [vmem:[#allocation7 + $0x50] sm:$0xff]  ;;  %v1867_v54 = vld [vmem:[#allocation7 + $0x58] sm:$0xff] }
  0xfa   :  { %1613 = vmatpush1.bf16.msra.mxu0 %v5238_v55  ;;  %1769 = vmatpush1.bf16.msra.mxu1 %v5241_v56  ;;  %v4847_v55 = vpack.c.bf16 %v1865_v46, %v1864_v45  ;;  %v4849_v56 = vpack.c.bf16 %v1883_v49, %v1882_v48  ;;  %v1909_v45 = vld [vmem:[#allocation7 + $0x1a8] sm:$0xff]  ;;  %v1892_v48 = vld [vmem:[#allocation7 + $0x120] sm:$0xff] }
  0xfb   :  { %1614 = vmatprep.subr.bf16.mxu0 %v5246_v57  ;;  %1770 = vmatprep.subr.bf16.mxu1 %v5249_v58  ;;  %v5286_v57 = vld [vmem:[#allocation5 + $0x5a8] ss:$16 sps:$4 sm:$0xff]   ;;  %v5291_v58 = vld [vmem:[#allocation5 + $0x5cc] ss:$16 sps:$4 sm:$0xff]  }
  0xfc   :  { %v1893_v49 = vld [vmem:[#allocation7 + $0x128] sm:$0xff] }
  0xfe   :  { %1615 = vmatpush1.bf16.msra.mxu0 %v5244_v59  ;;  %1771 = vmatpush1.bf16.msra.mxu1 %v5247_v60  ;;  %v4851_v59 = vpack.c.bf16 %v1867_v54, %v1866_v53  ;;  %v5289_v60 = vld [vmem:[#allocation5 + $0x5c8] ss:$16 sps:$4 sm:$0xff]   ;;  %v1894_v54 = vld [vmem:[#allocation7 + $0x130] sm:$0xff] }
  0xff   :  { %1616 = vmatprep.subr.bf16.mxu0 %v5252_v61  ;;  %1772 = vmatprep.subr.bf16.mxu1 %v5255_v62  ;;  %v5294_v61 = vld [vmem:[#allocation5 + $0x5ec] ss:$16 sps:$4 sm:$0xff]   ;;  %v5292_v62 = vld [vmem:[#allocation5 + $0x5e8] ss:$16 sps:$4 sm:$0xff]  }
 0x102   :  { %1617 = vmatpush1.bf16.msra.mxu0 %v5250_v63  ;;  %1773 = vmatpush1.bf16.msra.mxu1 %v5253_v1  ;;  %v5297_v63 = vld [vmem:[#allocation5 + $0x60c] ss:$16 sps:$4 sm:$0xff]   ;;  %v5295_v1 = vld [vmem:[#allocation5 + $0x608] ss:$16 sps:$4 sm:$0xff]  }
 0x103   :  { %1618 = vmatprep.subr.bf16.mxu0 %v5258_v2  ;;  %1774 = vmatprep.subr.bf16.mxu1 %v5261_v3  ;;  %v5300_v2 = vld [vmem:[#allocation5 + $0x62c] ss:$16 sps:$4 sm:$0xff]   ;;  %v5298_v3 = vld [vmem:[#allocation5 + $0x628] ss:$16 sps:$4 sm:$0xff]  }
 0x106   :  { %1619 = vmatpush1.bf16.msra.mxu0 %v5256_v4  ;;  %1775 = vmatpush1.bf16.msra.mxu1 %v5259_v5  ;;  %v5303_v4 = vld [vmem:[#allocation5 + $0x64c] ss:$16 sps:$4 sm:$0xff]   ;;  %v5301_v5 = vld [vmem:[#allocation5 + $0x648] ss:$16 sps:$4 sm:$0xff]  }
 0x107   :  { %1620 = vmatprep.subr.bf16.mxu0 %v5264_v6  ;;  %1776 = vmatprep.subr.bf16.mxu1 %v5267_v7  ;;  %v5306_v6 = vld [vmem:[#allocation5 + $0x66c] ss:$16 sps:$4 sm:$0xff]   ;;  %v5304_v7 = vld [vmem:[#allocation5 + $0x668] ss:$16 sps:$4 sm:$0xff]  }
 0x10a   :  { %1621 = vmatpush1.bf16.msra.mxu0 %v5262_v10  ;;  %1777 = vmatpush1.bf16.msra.mxu1 %v5265_v11  ;;  %v5312_v10 = vld [vmem:[#allocation5 + $0x6ac] ss:$16 sps:$4 sm:$0xff]   ;;  %v5310_v11 = vld [vmem:[#allocation5 + $0x6a8] ss:$16 sps:$4 sm:$0xff]  }
 0x10b   :  { %1778 = vmatprep.subr.bf16.mxu1 %v5273_v12  ;;  %4830 = vmatprep.subr.bf16.mxu0 %v4829_v18  ;;  %v5315_v12 = vld [vmem:[#allocation5 + $0x6cc] ss:$16 sps:$4 sm:$0xff]  }
 0x10c   :  { %v5318_v18 = vld [vmem:[#allocation5 + $0x6ec] ss:$16 sps:$4 sm:$0xff]  }
 0x10d   :  { %1623 = vmatmul.mubr.bf16.vlgmr.msra.gmra.mrb[0].mxu0 %v5964_v17 }
 0x10e   :  { %1779 = vmatpush1.bf16.msra.mxu1 %v5271_v19  ;;  %4832 = vmatpush3.bf16.msra.mxu0 %v4831_v23  ;;  %v5316_v19 = vld [vmem:[#allocation5 + $0x6e8] ss:$16 sps:$4 sm:$0xff]   ;;  %v4853_v23 = vpack.c.bf16 %v1885_v22, %v1884_v21 }
 0x10f   :  { %1780 = vmatprep.subr.bf16.mxu1 %v5276_v20  ;;  %4834 = vmatprep.subr.bf16.mxu0 %v4833_v26  ;;  %v5699_v20 = vld [vmem:[#allocation2 + $0x18] ss:$28 sps:$4 sm:$0xff]   ;;  %v4855_v26 = vpack.c.bf16 %v1869_v25, %v1868_v24  ;;  %v2081_v22 = vld [vmem:[%s6156_s1] sm:$0xff]  ;;  %v328_v24 = vlaneseq }
 0x110   :  { %2085 = vrot.lane.b32.xlu0 %v2081_v22, %s5829_s18 }
 0x111   :  { %v5985_v25 = vshrl.u32 %v328_v24, 7 }
 0x112   :  { %1781 = vmatpush1.bf16.msra.mxu1 %v5274_v27  ;;  %4836 = vmatpush3.bf16.msra.mxu0 %v4835_v31  ;;  %v1886_v27 = vld [vmem:[#allocation7 + $0xf0] sm:$0xff]  ;;  %v1871_v31 = vld [vmem:[#allocation7 + $0x78] sm:$0xff] }
 0x113   :  { %1782 = vmatprep.subr.bf16.mxu1 %v5279_v28  ;;  %4838 = vmatprep.subr.bf16.mxu0 %v4837_v34  ;;  %v1887_v28 = vld [vmem:[#allocation7 + $0xf8] sm:$0xff]  ;;  %v4859_v32 = vpack.c.bf16 %v1871_v31, %v1870_v30  ;;  %v1905_v34 = vld [vmem:[#allocation7 + $0x188] sm:$0xff] }
 0x114   :  { %v4857_v29 = vpack.c.bf16 %v1887_v28, %v1886_v27  ;;  %v326_v27 = vld [vmem:[%s6158_s3] sm:$0xf]  ;;  %v5994_v28 = vsub.s32 1, %v5985_v25 }
 0x116   :  { %1783 = vmatpush1.bf16.msra.mxu1 %v5277_v35  ;;  %4840 = vmatpush3.bf16.msra.mxu0 %v4839_v39  ;;  %v1888_v35 = vld [vmem:[#allocation7 + $0x100] sm:$0xff]  ;;  %v1907_v39 = vld [vmem:[#allocation7 + $0x198] sm:$0xff]  ;;  %v335_v30 = vrot.slane %v326_v27, %v5994_v28 }
 0x117   :  { %1784 = vmatprep.subr.bf16.mxu1 %v5282_v36  ;;  %4842 = vmatprep.subr.bf16.mxu0 %v4841_v42  ;;  %v4861_v36 = vpack.c.bf16 %v1905_v34, %v1904_v33  ;;  %v4863_v40 = vpack.c.bf16 %v1889_v37, %v1888_v35  ;;  %v4865_v41 = vpack.c.bf16 %v1907_v39, %v1906_v38  ;;  %v1890_v42 = vld [vmem:[#allocation7 + $0x110] sm:$0xff] }
 0x11a   :  { %1785 = vmatpush1.bf16.msra.mxu1 %v5280_v43  ;;  %4844 = vmatpush3.bf16.msra.mxu0 %v4843_v47  ;;  %v1891_v43 = vld [vmem:[#allocation7 + $0x118] sm:$0xff] }
 0x11b   :  { %1786 = vmatprep.subr.bf16.mxu1 %v5285_v44  ;;  %4846 = vmatprep.subr.bf16.mxu0 %v4845_v50  ;;  %v1908_v44 = vld [vmem:[#allocation7 + $0x1a0] sm:$0xff]  ;;  %v4867_v46 = vpack.c.bf16 %v1891_v43, %v1890_v42  ;;  %v1910_v50 = vld [vmem:[#allocation7 + $0x1b0] sm:$0xff] }
 0x11c   :  { %v4869_v47 = vpack.c.bf16 %v1909_v45, %v1908_v44 }
 0x11e   :  { %1787 = vmatpush1.bf16.msra.mxu1 %v5283_v51  ;;  %4848 = vmatpush3.bf16.msra.mxu0 %v4847_v55  ;;  %v1911_v51 = vld [vmem:[#allocation7 + $0x1b8] sm:$0xff] }
 0x11f   :  { %1788 = vmatprep.subr.bf16.mxu1 %v5288_v52  ;;  %4850 = vmatprep.subr.bf16.mxu0 %v4849_v56  ;;  %v4871_v52 = vpack.c.bf16 %v1893_v49, %v1892_v48  ;;  %v4873_v53 = vpack.c.bf16 %v1911_v51, %v1910_v50  ;;  %v1895_v55 = vld [vmem:[#allocation7 + $0x138] sm:$0xff]  ;;  %v1912_v56 = vld [vmem:[#allocation7 + $0x1c0] sm:$0xff] }
 0x122   :  { %1789 = vmatpush1.bf16.msra.mxu1 %v5286_v57  ;;  %4852 = vmatpush3.bf16.msra.mxu0 %v4851_v59  ;;  %v1913_v57 = vld [vmem:[#allocation7 + $0x1c8] sm:$0xff] }
 0x123   :  { %1790 = vmatprep.subr.bf16.mxu1 %v5291_v58  ;;  %4854 = vmatprep.subr.bf16.mxu0 %v4853_v23  ;;  %v4875_v58 = vpack.c.bf16 %v1895_v55, %v1894_v54  ;;  %v4877_v59 = vpack.c.bf16 %v1913_v57, %v1912_v56  ;;  %v2082_v23 = vld [vmem:[%s6156_s1 + $0x8] sm:$0xff] }
 0x124   :  { %2087 = vrot.lane.b32.xlu0 %v2082_v23, %s5829_s18 }
 0x126   :  { %1791 = vmatpush1.bf16.msra.mxu1 %v5289_v60  ;;  %4856 = vmatpush3.bf16.msra.mxu0 %v4855_v26  ;;  %v1896_v60 = vld [vmem:[#allocation7 + $0x140] sm:$0xff]  ;;  %v5988_v26 = vsub.s32 0, %v5985_v25 }
 0x127   :  { %1792 = vmatprep.subr.bf16.mxu1 %v5294_v61  ;;  %4858 = vmatprep.subr.bf16.mxu0 %v4857_v29  ;;  %v1897_v61 = vld [vmem:[#allocation7 + $0x148] sm:$0xff] }
 0x128   :  { %v331_v29 = vrot.slane %v326_v27, %v5988_v26 }
 0x12a   :  { %1793 = vmatpush1.bf16.msra.mxu1 %v5292_v62  ;;  %4860 = vmatpush3.bf16.msra.mxu0 %v4859_v32  ;;  %v1914_v62 = vld [vmem:[#allocation7 + $0x1d0] sm:$0xff] }
 0x12b   :  { %1805 = vmatprep.subr.bf16.mxu1 %v5297_v63  ;;  %v1915_v63 = vld [vmem:[#allocation7 + $0x1d8] sm:$0xff] }
 0x12d   :  { %1795 = vmatmul.mubr.bf16.vlgmr.msra.gmra.mrb[4].mxu1 %v5964_v17 }
 0x12e   :  { %1806 = vmatpush1.bf16.msra.mxu1 %v5295_v1  ;;  %1837 = vmatprep.mubr.bf16.mxu1 %v5828_v0  ;;  %v4879_v1 = vpack.c.bf16 %v1897_v61, %v1896_v60 }
 0x12f   :  { %1807 = vmatprep.subr.bf16.mxu1 %v5300_v2  ;;  %v4881_v2 = vpack.c.bf16 %v1915_v63, %v1914_v62 }
 0x132   :  { %1808 = vmatpush1.bf16.msra.mxu1 %v5298_v3  ;;  %v1898_v3 = vld [vmem:[#allocation7 + $0x150] sm:$0xff] }
 0x133   :  { %1809 = vmatprep.subr.bf16.mxu1 %v5303_v4  ;;  %v1899_v4 = vld [vmem:[#allocation7 + $0x158] sm:$0xff] }
 0x136   :  { %1810 = vmatpush1.bf16.msra.mxu1 %v5301_v5  ;;  %v1916_v5 = vld [vmem:[#allocation7 + $0x1e0] sm:$0xff] }
 0x137   :  { %1811 = vmatprep.subr.bf16.mxu1 %v5306_v6  ;;  %v1917_v6 = vld [vmem:[#allocation7 + $0x1e8] sm:$0xff] }
 0x13a   :  { %1812 = vmatpush1.bf16.msra.mxu1 %v5304_v7  ;;  %v4883_v7 = vpack.c.bf16 %v1899_v4, %v1898_v3 }
 0x13b   :  { %1813 = vmatprep.subr.bf16.mxu1 %v5309_v8  ;;  %v4885_v8 = vpack.c.bf16 %v1917_v6, %v1916_v5 }
 0x13e   :  { %1814 = vmatpush1.bf16.msra.mxu1 %v5307_v9  ;;  %v1900_v9 = vld [vmem:[#allocation7 + $0x160] sm:$0xff] }
 0x13f   :  { %1815 = vmatprep.subr.bf16.mxu1 %v5312_v10  ;;  %v1901_v10 = vld [vmem:[#allocation7 + $0x168] sm:$0xff] }
 0x140   :  { %v5969_v13 = vpop.f32.mrb[0].mxu1 }
 0x141   :  { %v5971_v14 = vpop.f32.mrb[1].mxu1 }
 0x142   :  { %v5973_v15 = vpop.f32.mrb[2].mxu1  ;;  %1816 = vmatpush1.bf16.msra.mxu1 %v5310_v11  ;;  %v4887_v11 = vpack.c.bf16 %v1901_v10, %v1900_v9 }
 0x143   :  { %v5975_v17 = vpop.f32.mrb[3].mxu1  ;;  %1817 = vmatprep.subr.bf16.mxu1 %v5315_v12  ;;  %v1918_v12 = vld [vmem:[#allocation7 + $0x1f0] sm:$0xff] }
 0x146   :  { %1818 = vmatpush1.bf16.msra.mxu1 %v5313_v16  ;;  %v1919_v16 = vld [vmem:[#allocation7 + $0x1f8] sm:$0xff] }
 0x147   :  { %1819 = vmatprep.subr.bf16.mxu1 %v5318_v18  ;;  %v4889_v18 = vpack.c.bf16 %v1919_v16, %v1918_v12 }
 0x14a   :  { %1820 = vmatpush1.bf16.msra.mxu1 %v5316_v19  ;;  %v1902_v19 = vld [vmem:[#allocation7 + $0x170] sm:$0xff] }
 0x14b   :  { %4862 = vmatprep.subr.bf16.mxu1 %v4861_v36 }
 0x14d   :  { %1838 = vmatmul.mubr.bf16.vlgmr.msra.gmra.mrb[4].mxu1 %v5699_v20  ;;  %v1903_v20 = vld [vmem:[#allocation7 + $0x178] sm:$0xff] }
 0x14e   :  { %4864 = vmatpush3.bf16.msra.mxu1 %v4863_v40  ;;  %v4891_v21 = vpack.c.bf16 %v1903_v20, %v1902_v19 }
 0x14f   :  { %4866 = vmatprep.subr.bf16.mxu1 %v4865_v41 }
 0x152   :  { %4868 = vmatpush3.bf16.msra.mxu1 %v4867_v46 }
 0x153   :  { %4870 = vmatprep.subr.bf16.mxu1 %v4869_v47  ;;  %v6003_v47 = vsub.s32 2, %v5985_v25 }
 0x156   :  { %4872 = vmatpush3.bf16.msra.mxu1 %v4871_v52 }
 0x157   :  { %4874 = vmatprep.subr.bf16.mxu1 %v4873_v53 }
 0x15a   :  { %4876 = vmatpush3.bf16.msra.mxu1 %v4875_v58 }
 0x15b   :  { %4878 = vmatprep.subr.bf16.mxu1 %v4877_v59 }
 0x15e   :  { %4880 = vmatpush3.bf16.msra.mxu1 %v4879_v1 }
 0x15f   :  { %4882 = vmatprep.subr.bf16.mxu1 %v4881_v2  ;;  %v4482_v2 = vld [vmem:[%s6160_s5] ss:$0 sm:$0xff]  ;;  %s5831_s5 = smov 125  }
 0x162   :  { %4884 = vmatpush3.bf16.msra.mxu1 %v4883_v7 }
 0x163   :  { %4886 = vmatprep.subr.bf16.mxu1 %v4885_v8 }
 0x166   :  { %4888 = vmatpush3.bf16.msra.mxu1 %v4887_v11 }
 0x167   :  { %4890 = vmatprep.subr.bf16.mxu1 %v4889_v18  ;;  %v5830_v18 = vmov 1  }
 0x168   :  { %4968 = vset.pattern.permute.xlu1 %v5830_v18 }
 0x16a   :  { %4892 = vmatpush3.bf16.msra.mxu1 %v4891_v21 }
 0x182   :  { %v2086_v20 = vpop.permute.xlu0 %2085 }
 0x196   :  { %v2088_v23 = vpop.permute.xlu0 %2087 }
 0x1e0   :  { %v1624_v31 = vpop.f32.mrb[0].mxu0 }
 0x1e1   :  { %v4893_v32 = vadd.f32 %v1624_v31, %v331_v29  ;;  %v1626_v33 = vpop.f32.mrb[1].mxu0  ;;  %v5322_v31 = vld [vmem:[#allocation8 + $0x8] ss:$28 sps:$4 sm:$0xff]  }
 0x1e2   :  { %v4895_v34 = vadd.f32 %v1626_v33, %v335_v30  ;;  %v1628_v35 = vpop.f32.mrb[2].mxu0  ;;  %v5327_v33 = vld [vmem:[#allocation8 + $0x3c] ss:$28 sps:$4 sm:$0xff]  }
 0x1e3   :  { %v4894_v36 = vadd.f32 %v4893_v32, %v5969_v13  ;;  %v4897_v37 = vadd.f32 %v1628_v35, %v331_v29  ;;  %v1630_v38 = vpop.f32.mrb[3].mxu0  ;;  %v6006_v13 = vsub.s32 3, %v5985_v25  ;;  %v5319_v29 = vld [vmem:[#allocation8] ss:$28 sps:$4 sm:$0xff]   ;;  %v5324_v32 = vld [vmem:[#allocation8 + $0xc] ss:$28 sps:$4 sm:$0xff]  }
 0x1e4   :  { %v4896_v39 = vadd.f32 %v4895_v34, %v5971_v14  ;;  %v4899_v40 = vadd.f32 %v1630_v38, %v335_v30  ;;  %v339_v14 = vrot.slane %v326_v27, %v6003_v47  ;;  %v5321_v30 = vld [vmem:[#allocation8 + $0x4] ss:$28 sps:$4 sm:$0xff]   ;;  %3890 = vmatprep.subr.bf16.mxu1 %v5324_v32  ;;  %v5325_v35 = vld [vmem:[#allocation8 + $0x38] ss:$28 sps:$4 sm:$0xff]  }
 0x1e5   :  { %v4898_v41 = vadd.f32 %v4897_v37, %v5973_v15  ;;  %v1848_v44 = vmax.f32 %v4894_v36, 0.0  ;;  %v343_v15 = vrot.slane %v326_v27, %v6006_v13  ;;  %3804 = vmatprep.subr.bf16.mxu0 %v5321_v30  ;;  %v5330_v34 = vld [vmem:[#allocation8 + $0x44] ss:$28 sps:$4 sm:$0xff]   ;;  %v5333_v37 = vld [vmem:[#allocation8 + $0x74] ss:$28 sps:$4 sm:$0xff]  }
 0x1e6   :  { %v1849_v42 = vmax.f32 %v4896_v39, 0.0  ;;  %v4900_v43 = vadd.f32 %v4899_v40, %v5975_v17  ;;  %v5328_v36 = vld [vmem:[#allocation8 + $0x40] ss:$28 sps:$4 sm:$0xff]   ;;  %v5331_v39 = vld [vmem:[#allocation8 + $0x70] ss:$28 sps:$4 sm:$0xff]  }
 0x1e7   :  { %v1852_v46 = vmax.f32 %v4898_v41, 0.0  ;;  %v5336_v38 = vld [vmem:[#allocation8 + $0x7c] ss:$28 sps:$4 sm:$0xff]   ;;  %v5339_v41 = vld [vmem:[#allocation8 + $0xac] ss:$28 sps:$4 sm:$0xff]  }
 0x1e8   :  { %v1853_v45 = vmax.f32 %v4900_v43, 0.0  ;;  %1991 = vmatprep.mubr.f32.mxu0 %v1849_v42  ;;  %v5334_v40 = vld [vmem:[#allocation8 + $0x78] ss:$28 sps:$4 sm:$0xff]   ;;  %v5337_v43 = vld [vmem:[#allocation8 + $0xa8] ss:$28 sps:$4 sm:$0xff]  }
 0x1e9   :  { %1992 = vmatmul.mubr.f32.vlgmr.msra.gmra.mrb[4].mxu0 %v1848_v44  ;;  %v5342_v42 = vld [vmem:[#allocation8 + $0xb4] ss:$28 sps:$4 sm:$0xff]   ;;  %v5391_v30 = vld [vmem:[#allocation8 + $0x2a0] ss:$28 sps:$4 sm:$0xff]   ;;  %v5394_v32 = vld [vmem:[#allocation8 + $0x2a8] ss:$28 sps:$4 sm:$0xff]  }
 0x1ea   :  { %1996 = vmatprep.mubr.f32.mxu0 %v1853_v45  ;;  %3805 = vmatpush1.bf16.msra.mxu0 %v5319_v29  ;;  %v5340_v44 = vld [vmem:[#allocation8 + $0xb0] ss:$28 sps:$4 sm:$0xff]   ;;  %v5345_v45 = vld [vmem:[#allocation8 + $0xe4] ss:$28 sps:$4 sm:$0xff]  }
 0x1eb   :  { %3806 = vmatprep.subr.bf16.mxu0 %v5327_v33  ;;  %v5396_v29 = vld [vmem:[#allocation8 + $0x2ac] ss:$28 sps:$4 sm:$0xff]   ;;  %v5832_v33 = vmov 2  }
 0x1ed   :  { %1997 = vmatmul.mubr.f32.gmra.mrb[6].mxu0 %v1852_v46  ;;  %v5348_v46 = vld [vmem:[#allocation8 + $0xec] ss:$28 sps:$4 sm:$0xff]  }
 0x1ee   :  { %3807 = vmatpush1.bf16.msra.mxu0 %v5325_v35  ;;  %v5400_v35 = vld [vmem:[#allocation8 + $0x2e0] ss:$28 sps:$4 sm:$0xff]  }
 0x1ef   :  { %3808 = vmatprep.subr.bf16.mxu0 %v5333_v37  ;;  %v5405_v37 = vld [vmem:[#allocation8 + $0x314] ss:$28 sps:$4 sm:$0xff]  }
 0x1f2   :  { %3809 = vmatpush1.bf16.msra.mxu0 %v5331_v39  ;;  %v5403_v39 = vld [vmem:[#allocation8 + $0x310] ss:$28 sps:$4 sm:$0xff]  }
 0x1f3   :  { %3810 = vmatprep.subr.bf16.mxu0 %v5339_v41  ;;  %v5411_v41 = vld [vmem:[#allocation8 + $0x34c] ss:$28 sps:$4 sm:$0xff]  }
 0x1f6   :  { %3811 = vmatpush1.bf16.msra.mxu0 %v5337_v43  ;;  %v5409_v43 = vld [vmem:[#allocation8 + $0x348] ss:$28 sps:$4 sm:$0xff]  }
 0x1f7   :  { %3812 = vmatprep.subr.bf16.mxu0 %v5345_v45  ;;  %v5417_v45 = vld [vmem:[#allocation8 + $0x384] ss:$28 sps:$4 sm:$0xff]  }
 0x220   :  { %v1839_v48 = vpop.f32.mrb[4].mxu1 }
 0x221   :  { %v4901_v49 = vadd.f32 %v1839_v48, %v339_v14  ;;  %v1841_v17 = vpop.f32.mrb[5].mxu1  ;;  %v5351_v48 = vld [vmem:[#allocation8 + $0x11c] ss:$28 sps:$4 sm:$0xff]  }
 0x222   :  { %v4902_v50 = vadd.f32 %v1841_v17, %v343_v15  ;;  %v1843_v51 = vpop.f32.mrb[6].mxu1  ;;  %v5349_v17 = vld [vmem:[#allocation8 + $0x118] ss:$28 sps:$4 sm:$0xff]  }
 0x223   :  { %v1845_v52 = vpop.f32.mrb[7].mxu1  ;;  %v1850_v55 = vmax.f32 %v4901_v49, 0.0  ;;  %v4903_v56 = vadd.f32 %v1843_v51, %v339_v14  ;;  %v5343_v14 = vld [vmem:[#allocation8 + $0xe0] ss:$28 sps:$4 sm:$0xff]   ;;  %v5357_v51 = vld [vmem:[#allocation8 + $0x154] ss:$28 sps:$4 sm:$0xff]  }
 0x224   :  { %v1851_v53 = vmax.f32 %v4902_v50, 0.0  ;;  %v4904_v54 = vadd.f32 %v1845_v52, %v343_v15  ;;  %v5346_v15 = vld [vmem:[#allocation8 + $0xe8] ss:$28 sps:$4 sm:$0xff]   ;;  %3813 = vmatpush1.bf16.msra.mxu0 %v5343_v14  ;;  %v5352_v50 = vld [vmem:[#allocation8 + $0x120] ss:$28 sps:$4 sm:$0xff]  }
 0x225   :  { %v1854_v58 = vmax.f32 %v4903_v56, 0.0  ;;  %v5354_v49 = vld [vmem:[#allocation8 + $0x124] ss:$28 sps:$4 sm:$0xff]   ;;  %3814 = vmatprep.subr.bf16.mxu0 %v5351_v48  ;;  %v5360_v52 = vld [vmem:[#allocation8 + $0x15c] ss:$28 sps:$4 sm:$0xff]   ;;  %v6045_v48 = vsub.s32 4, %v5985_v25 }
 0x226   :  { %v1855_v57 = vmax.f32 %v4904_v54, 0.0  ;;  %2066 = vmatprep.mubr.f32.mxu1 %v1851_v53  ;;  %v5355_v53 = vld [vmem:[#allocation8 + $0x150] ss:$28 sps:$4 sm:$0xff]   ;;  %v5358_v54 = vld [vmem:[#allocation8 + $0x158] ss:$28 sps:$4 sm:$0xff]  }
 0x227   :  { %2067 = vmatmul.mubr.f32.vlgmr.msra.gmra.mrb[8].mxu1 %v1850_v55  ;;  %v5363_v55 = vld [vmem:[#allocation8 + $0x18c] ss:$28 sps:$4 sm:$0xff]   ;;  %v5366_v56 = vld [vmem:[#allocation8 + $0x194] ss:$28 sps:$4 sm:$0xff]  }
 0x228   :  { %2071 = vmatprep.mubr.f32.mxu1 %v1855_v57  ;;  %3891 = vmatpush1.bf16.msra.mxu1 %v5322_v31  ;;  %v5361_v57 = vld [vmem:[#allocation8 + $0x188] ss:$28 sps:$4 sm:$0xff]   ;;  %v2140_v14 = vld [vmem:[%s6161_s6 + $0x8] sm:$0x77] }
 0x229   :  { %3892 = vmatprep.subr.bf16.mxu1 %v5330_v34  ;;  %3815 = vmatpush1.bf16.msra.mxu0 %v5349_v17  ;;  %v5402_v34 = vld [vmem:[#allocation8 + $0x2e4] ss:$28 sps:$4 sm:$0xff]   ;;  %v2246_v17 = vrot.slane %v2140_v14, %v5994_v28 }
 0x22a   :  { %3816 = vmatprep.subr.bf16.mxu0 %v5357_v51 }
 0x22b   :  { %2072 = vmatmul.mubr.f32.gmra.mrb[10].mxu1 %v1854_v58  ;;  %v5364_v58 = vld [vmem:[#allocation8 + $0x190] ss:$28 sps:$4 sm:$0xff]  }
 0x22c   :  { %3893 = vmatpush1.bf16.msra.mxu1 %v5328_v36 }
 0x22d   :  { %3894 = vmatprep.subr.bf16.mxu1 %v5336_v38  ;;  %3817 = vmatpush1.bf16.msra.mxu0 %v5355_v53  ;;  %v5408_v38 = vld [vmem:[#allocation8 + $0x31c] ss:$28 sps:$4 sm:$0xff]   ;;  %v2169_v53 = vrot.slane %v2140_v14, %v6045_v48 }
 0x22e   :  { %3818 = vmatprep.subr.bf16.mxu0 %v5363_v55  ;;  %v6057_v55 = vsub.s32 5, %v5985_v25 }
 0x230   :  { %3895 = vmatpush1.bf16.msra.mxu1 %v5334_v40  ;;  %v5406_v40 = vld [vmem:[#allocation8 + $0x318] ss:$28 sps:$4 sm:$0xff]  }
 0x231   :  { %3896 = vmatprep.subr.bf16.mxu1 %v5342_v42  ;;  %3819 = vmatpush1.bf16.msra.mxu0 %v5361_v57  ;;  %v5414_v42 = vld [vmem:[#allocation8 + $0x354] ss:$28 sps:$4 sm:$0xff]  }
 0x234   :  { %3897 = vmatpush1.bf16.msra.mxu1 %v5340_v44  ;;  %v5412_v44 = vld [vmem:[#allocation8 + $0x350] ss:$28 sps:$4 sm:$0xff]  }
 0x235   :  { %3898 = vmatprep.subr.bf16.mxu1 %v5348_v46  ;;  %v5420_v46 = vld [vmem:[#allocation8 + $0x38c] ss:$28 sps:$4 sm:$0xff]  }
 0x238   :  { %3899 = vmatpush1.bf16.msra.mxu1 %v5346_v15  ;;  %v2139_v15 = vld [vmem:[%s6161_s6] sm:$0x77] }
 0x239   :  { %3900 = vmatprep.subr.bf16.mxu1 %v5354_v49  ;;  %v2165_v49 = vrot.slane %v2140_v14, %v5988_v26  ;;  %v2157_v51 = vrot.slane %v2139_v15, %v5988_v26 }
 0x23c   :  { %3901 = vmatpush1.bf16.msra.mxu1 %v5352_v50  ;;  %v2141_v50 = vld [vmem:[%s6162_s7] sm:$0xf] }
 0x23d   :  { %3902 = vmatprep.subr.bf16.mxu1 %v5360_v52  ;;  %v2161_v52 = vrot.slane %v2139_v15, %v6045_v48  ;;  %v2210_v57 = vrot.slane %v2141_v50, %v6003_v47 }
 0x240   :  { %3903 = vmatpush1.bf16.msra.mxu1 %v5358_v54  ;;  %v2185_v54 = vrot.slane %v2165_v49, %v5988_v26 }
 0x241   :  { %3904 = vmatprep.subr.bf16.mxu1 %v5366_v56  ;;  %v6060_v56 = vsub.s32 6, %v5985_v25  ;;  %v2202_v25 = vrot.slane %v2141_v50, %v5988_v26 }
 0x244   :  { %3905 = vmatpush1.bf16.msra.mxu1 %v5364_v58  ;;  %v2266_v58 = vrot.slane %v2246_v17, %v5994_v28 }
 0x2bc   :  { %v4741_v59 = vpop.f32.mrb[4].mxu0 }
 0x2bd   :  { %v4742_v60 = vpop.f32.mrb[5].mxu0 }
 0x2be   :  { %v4743_v61 = vadd.f32 %v4742_v60, %v4741_v59  ;;  %v5369_v59 = vld [vmem:[#allocation8 + $0x1c4] ss:$28 sps:$4 sm:$0xff]   ;;  %v5372_v60 = vld [vmem:[#allocation8 + $0x1cc] ss:$28 sps:$4 sm:$0xff]  }
 0x2bf   :  { %3820 = vmatprep.subr.bf16.mxu0 %v5369_v59  ;;  %3906 = vmatprep.subr.bf16.mxu1 %v5372_v60  ;;  %v2177_v59 = vrot.slane %v2157_v51, %v5988_v26 }
 0x2c0   :  { %v4744_v62 = vpop.f32.mrb[6].mxu0  ;;  %v1994_v5 = vadd.f32 %v4743_v61, %v4482_v2  ;;  %v5367_v61 = vld [vmem:[#allocation8 + $0x1c0] ss:$28 sps:$4 sm:$0xff]  }
 0x2c1   :  { %v4745_v63 = vpop.f32.mrb[7].mxu0  ;;  %3821 = vmatpush1.bf16.msra.mxu0 %v5367_v61  ;;  %v2238_v61 = vrot.slane %v2139_v15, %v5994_v28 }
 0x2c2   :  { %v4746_v1 = vadd.f32 %v4745_v63, %v4744_v62  ;;  %v5370_v62 = vld [vmem:[#allocation8 + $0x1c8] ss:$28 sps:$4 sm:$0xff]   ;;  %v5375_v63 = vld [vmem:[#allocation8 + $0x1fc] ss:$28 sps:$4 sm:$0xff]  }
 0x2c3   :  { %3907 = vmatpush1.bf16.msra.mxu1 %v5370_v62  ;;  %3822 = vmatprep.subr.bf16.mxu0 %v5375_v63  ;;  %v2181_v63 = vrot.slane %v2161_v52, %v5988_v26 }
 0x2c4   :  { %v1999_v10 = vadd.f32 %v4746_v1, %v4482_v2  ;;  %v5378_v1 = vld [vmem:[#allocation8 + $0x204] ss:$28 sps:$4 sm:$0xff]   ;;  %v5373_v2 = vld [vmem:[#allocation8 + $0x1f8] ss:$28 sps:$4 sm:$0xff]  }
 0x2c5   :  { %3908 = vmatprep.subr.bf16.mxu1 %v5378_v1  ;;  %3823 = vmatpush1.bf16.msra.mxu0 %v5373_v2  ;;  %v2189_v1 = vrot.slane %v2169_v53, %v5988_v26 }
 0x2fa   :  { %v4779_v3 = vpop.f32.mrb[8].mxu1 }
 0x2fb   :  { %v4780_v4 = vpop.f32.mrb[9].mxu1 }
 0x2fc   :  { %v4781_v6 = vadd.f32 %v4780_v4, %v4779_v3  ;;  %v5376_v3 = vld [vmem:[#allocation8 + $0x200] ss:$28 sps:$4 sm:$0xff]   ;;  %v5381_v4 = vld [vmem:[#allocation8 + $0x234] ss:$28 sps:$4 sm:$0xff]  }
 0x2fd   :  { %3909 = vmatpush1.bf16.msra.mxu1 %v5376_v3  ;;  %3824 = vmatprep.subr.bf16.mxu0 %v5381_v4  ;;  %v2242_v3 = vrot.slane %v2139_v15, %v6057_v55  ;;  %v2298_v4 = vrot.slane %v2139_v15, %v6003_v47 }
 0x2fe   :  { %v6013_v7 = vadd.f32 %v4781_v6, %v1994_v5  ;;  %v4782_v8 = vpop.f32.mrb[10].mxu1  ;;  %v5384_v5 = vld [vmem:[#allocation8 + $0x23c] ss:$28 sps:$4 sm:$0xff]   ;;  %v5379_v6 = vld [vmem:[#allocation8 + $0x230] ss:$28 sps:$4 sm:$0xff]  }
 0x2ff   :  { %v4783_v9 = vpop.f32.mrb[11].mxu1  ;;  %3910 = vmatprep.subr.bf16.mxu1 %v5384_v5  ;;  %3825 = vmatpush1.bf16.msra.mxu0 %v5379_v6  ;;  %v2302_v5 = vrot.slane %v2139_v15, %v6060_v56  ;;  %v2306_v6 = vrot.slane %v2140_v14, %v6003_v47 }
 0x300   :  { %v2077_v11 = vmul.f32 1.442695, %v6013_v7  ;;  %v4784_v12 = vadd.f32 %v4783_v9, %v4782_v8  ;;  %v5382_v8 = vld [vmem:[#allocation8 + $0x238] ss:$28 sps:$4 sm:$0xff]   ;;  %v2105_v31 = vmul.f32 %v6013_v7, %v6013_v7 }
 0x301   :  { %3911 = vmatpush1.bf16.msra.mxu1 %v5382_v8  ;;  %v2206_v8 = vrot.slane %v2141_v50, %v5994_v28 }
 0x302   :  { %5639 = vpow2.f32 %v2077_v11  ;;  %v6016_v16 = vadd.f32 %v4784_v12, %v1999_v10  ;;  %v5387_v12 = vld [vmem:[#allocation8 + $0x26c] ss:$28 sps:$4 sm:$0xff]  }
 0x303   :  { %3826 = vmatprep.subr.bf16.mxu0 %v5387_v12 }
 0x304   :  { %v2079_v19 = vmul.f32 1.442695, %v6016_v16  ;;  %v2106_v36 = vmul.f32 %v6016_v16, %v6016_v16 }
 0x306   :  { %5641 = vpow2.f32 %v2079_v19  ;;  %v5390_v19 = vld [vmem:[#allocation8 + $0x274] ss:$28 sps:$4 sm:$0xff]  }
 0x307   :  { %3912 = vmatprep.subr.bf16.mxu1 %v5390_v19  ;;  %v2250_v19 = vrot.slane %v2140_v14, %v6057_v55 }
 0x30c   :  { %v6020_v21 = vpop.eup %5639 }
 0x30d   :  { %v2091_v22 = vmul.f32 %v6020_v21, %v2086_v20 }
 0x30f   :  { %2095 = vrot.lane.b32.xlu1 %v2091_v22, %s5831_s5  ;;  %v5385_v22 = vld [vmem:[#allocation8 + $0x268] ss:$28 sps:$4 sm:$0xff]  }
 0x310   :  { %v6024_v24 = vpop.eup %5641  ;;  %3827 = vmatpush1.bf16.msra.mxu0 %v5385_v22  ;;  %v2310_v22 = vrot.slane %v2140_v14, %v6060_v56 }
 0x311   :  { %v2092_v27 = vmul.f32 %v6024_v24, %v2088_v23  ;;  %v5388_v23 = vld [vmem:[#allocation8 + $0x270] ss:$28 sps:$4 sm:$0xff]  }
 0x312   :  { %3913 = vmatpush1.bf16.msra.mxu1 %v5388_v23 }
 0x313   :  { %2097 = vrot.lane.b32.xlu1 %v2092_v27, %s5831_s5  ;;  %v5393_v27 = vld [vmem:[#allocation8 + $0x2a4] ss:$28 sps:$4 sm:$0xff]   ;;  %3914 = vmatprep.subr.bf16.mxu1 %v5396_v29  ;;  %v2262_v29 = vrot.slane %v2242_v3, %v5994_v28 }
 0x314   :  { %3828 = vmatprep.subr.bf16.mxu0 %v5393_v27 }
 0x315   :  { %3829 = vmatpush1.bf16.msra.mxu0 %v5391_v30 }
 0x316   :  { %3915 = vmatpush1.bf16.msra.mxu1 %v5394_v32 }
 0x317   :  { %3916 = vmatprep.subr.bf16.mxu1 %v5402_v34  ;;  %v2322_v34 = vrot.slane %v2302_v5, %v6003_v47 }
 0x31a   :  { %3917 = vmatpush1.bf16.msra.mxu1 %v5400_v35 }
 0x31b   :  { %3918 = vmatprep.subr.bf16.mxu1 %v5408_v38 }
 0x31e   :  { %3919 = vmatpush1.bf16.msra.mxu1 %v5406_v40  ;;  %v2270_v40 = vrot.slane %v2250_v19, %v5994_v28 }
 0x31f   :  { %3920 = vmatprep.subr.bf16.mxu1 %v5414_v42  ;;  %v2330_v42 = vrot.slane %v2310_v22, %v6003_v47 }
 0x322   :  { %3921 = vmatpush1.bf16.msra.mxu1 %v5412_v44 }
 0x323   :  { %3933 = vmatprep.subr.bf16.mxu1 %v5420_v46 }
 0x381   :  { %v2096_v9 = vpop.permute.xlu1 %2095 }
 0x382   :  { %v2101_v10 = vadd.f32 %v2096_v9, %v6013_v7  ;;  %v2214_v9 = vrot.slane %v2141_v50, %v6006_v13 }
 0x384   :  { %2144 = vperm.xlu0 %4967, %v2101_v10   ;;  %2228 = vperm.xlu1 %4968, %v2101_v10  }
 0x385   :  { %v2098_v11 = vpop.permute.xlu1 %2097 }
 0x386   :  { %v2102_v20 = vadd.f32 %v2098_v11, %v6016_v16 }
 0x388   :  { %4970 = vset.pattern.permute.xlu0 %v5830_v18  ;;  %4969 = vset.pattern.permute.xlu1 %v5828_v0  ;;  %v5399_v18 = vld [vmem:[#allocation8 + $0x2dc] ss:$28 sps:$4 sm:$0xff]  }
 0x389   :  { %2232 = vperm.xlu0 %4970, %v2102_v20   ;;  %2149 = vperm.xlu1 %4969, %v2102_v20   ;;  %v5397_v0 = vld [vmem:[#allocation8 + $0x2d8] ss:$28 sps:$4 sm:$0xff]  }
 0x38a   :  { %3830 = vmatprep.subr.bf16.mxu0 %v5399_v18  ;;  %v2318_v18 = vrot.slane %v2298_v4, %v6003_v47 }
 0x38b   :  { %3831 = vmatpush1.bf16.msra.mxu0 %v5397_v0  ;;  %v2326_v0 = vrot.slane %v2306_v6, %v6003_v47 }
 0x38c   :  { %3832 = vmatprep.subr.bf16.mxu0 %v5405_v37 }
 0x38d   :  { %2109 = vrot.lane.b32.xlu0 %v2105_v31, %s5829_s18  ;;  %4971 = vset.pattern.permute.xlu1 %v5832_v33 }
 0x38e   :  { %2288 = vperm.xlu1 %4971, %v2101_v10   ;;  %4972 = vset.pattern.permute.xlu0 %v5832_v33  ;;  %v2103_v33 = vmul.f32 %v6020_v21, %v6020_v21 }
 0x38f   :  { %3833 = vmatpush1.bf16.msra.mxu0 %v5403_v39 }
 0x390   :  { %3834 = vmatprep.subr.bf16.mxu0 %v5411_v41 }
 0x392   :  { %2292 = vperm.xlu1 %4971, %v2102_v20   ;;  %v2258_v20 = vrot.slane %v2238_v61, %v5994_v28 }
 0x393   :  { %3835 = vmatpush1.bf16.msra.mxu0 %v5409_v43 }
 0x394   :  { %3847 = vmatprep.subr.bf16.mxu0 %v5417_v45 }
 0x396   :  { %2111 = vrot.lane.b32.xlu1 %v2106_v36, %s5829_s18 }
 0x403   :  { %v2145_v60 = vpop.permute.xlu0 %2144  ;;  %v2229_v62 = vpop.permute.xlu1 %2228 }
 0x404   :  { %v2192_v2 = vmul.f32 %v2185_v54, %v2145_v60  ;;  %v2273_v11 = vmul.f32 %v2266_v58, %v2229_v62  ;;  %v2190_v12 = vmul.f32 %v2177_v59, %v2145_v60  ;;  %v2191_v23 = vmul.f32 %v2181_v63, %v2145_v60 }
 0x405   :  { %v2193_v27 = vmul.f32 %v2189_v1, %v2145_v60  ;;  %v2271_v41 = vmul.f32 %v2258_v20, %v2229_v62  ;;  %v2272_v45 = vmul.f32 %v2262_v29, %v2229_v62 }
 0x406   :  { %v2221_v10 = vadd.f32 %v2210_v57, %v2192_v2  ;;  %v2219_v39 = vadd.f32 %v2202_v25, %v2190_v12  ;;  %v2220_v43 = vadd.f32 %v2206_v8, %v2191_v23  ;;  %v2104_v23 = vmul.f32 %v6024_v24, %v6024_v24  ;;  %v5415_v24 = vld [vmem:[#allocation8 + $0x380] ss:$28 sps:$4 sm:$0xff]  }
 0x407   :  { %v2222_v44 = vadd.f32 %v2214_v9, %v2193_v27 }
 0x408   :  { %v2281_v30 = vadd.f32 %v2273_v11, %v2221_v10  ;;  %v2233_v31 = vpop.permute.xlu0 %2232  ;;  %v2150_v32 = vpop.permute.xlu1 %2149 }
 0x409   :  { %v2194_v35 = vmul.f32 %v2177_v59, %v2150_v32  ;;  %v2195_v36 = vmul.f32 %v2181_v63, %v2150_v32  ;;  %v2196_v37 = vmul.f32 %v2185_v54, %v2150_v32  ;;  %v2197_v38 = vmul.f32 %v2189_v1, %v2150_v32 }
 0x40a   :  { %v2277_v14 = vmul.f32 %v2266_v58, %v2233_v31  ;;  %v2279_v59 = vadd.f32 %v2271_v41, %v2219_v39  ;;  %v2275_v60 = vmul.f32 %v2258_v20, %v2233_v31  ;;  %v2280_v1 = vadd.f32 %v2272_v45, %v2220_v43 }
 0x40b   :  { %v2225_v21 = vadd.f32 %v2210_v57, %v2196_v37  ;;  %v2223_v15 = vadd.f32 %v2202_v25, %v2194_v35  ;;  %v2224_v49 = vadd.f32 %v2206_v8, %v2195_v36  ;;  %v2226_v51 = vadd.f32 %v2214_v9, %v2197_v38 }
 0x40c   :  { %v2110_v46 = vpop.permute.xlu0 %2109  ;;  %v2276_v2 = vmul.f32 %v2262_v29, %v2233_v31  ;;  %v2278_v3 = vmul.f32 %v2270_v40, %v2233_v31  ;;  %v2274_v57 = vmul.f32 %v2270_v40, %v2229_v62 }
 0x40d   :  { %v2115_v17 = vadd.f32 %v2110_v46, %v2103_v33  ;;  %v2289_v50 = vpop.permute.xlu1 %2288  ;;  %v2285_v63 = vadd.f32 %v2277_v14, %v2225_v21  ;;  %v2283_v25 = vadd.f32 %v2275_v60, %v2223_v15  ;;  %v5423_v21 = vld [vmem:[#allocation8 + $0x3bc] ss:$28 sps:$4 sm:$0xff]   ;;  %v5426_v46 = vld [vmem:[#allocation8 + $0x3c4] ss:$28 sps:$4 sm:$0xff]  }
 0x40e   :  { %v2331_v52 = vmul.f32 %v2318_v18, %v2289_v50  ;;  %v2332_v53 = vmul.f32 %v2322_v34, %v2289_v50  ;;  %v2333_v54 = vmul.f32 %v2326_v0, %v2289_v50  ;;  %v2334_v58 = vmul.f32 %v2330_v42, %v2289_v50  ;;  %v5421_v14 = vld [vmem:[#allocation8 + $0x3b8] ss:$28 sps:$4 sm:$0xff]   ;;  %v5424_v15 = vld [vmem:[#allocation8 + $0x3c0] ss:$28 sps:$4 sm:$0xff]   ;;  %v5427_v50 = vld [vmem:[#allocation8 + $0x3f0] ss:$28 sps:$4 sm:$0xff]  }
 0x40f   :  { %v2117_v61 = vsub.f32 %v2115_v17, %v6013_v7  ;;  %v2284_v9 = vadd.f32 %v2276_v2, %v2224_v49  ;;  %v2286_v11 = vadd.f32 %v2278_v3, %v2226_v51  ;;  %v2282_v7 = vadd.f32 %v2274_v57, %v2222_v44  ;;  %v5429_v49 = vld [vmem:[#allocation8 + $0x3f4] ss:$28 sps:$4 sm:$0xff]   ;;  %v5432_v17 = vld [vmem:[#allocation8 + $0x3fc] ss:$28 sps:$4 sm:$0xff]   ;;  %v5441_v60 = vld [vmem:[#allocation8 + $0x464] ss:$28 sps:$4 sm:$0xff]  }
 0x410   :  { %v2341_v4 = vadd.f32 %v2333_v54, %v2281_v30  ;;  %v2339_v8 = vadd.f32 %v2331_v52, %v2279_v59  ;;  %v2340_v10 = vadd.f32 %v2332_v53, %v2280_v1  ;;  %v5430_v51 = vld [vmem:[#allocation8 + $0x3f8] ss:$28 sps:$4 sm:$0xff]   ;;  %v5435_v52 = vld [vmem:[#allocation8 + $0x42c] ss:$28 sps:$4 sm:$0xff]   ;;  %v5450_v3 = vld [vmem:[#allocation8 + $0x4a4] ss:$28 sps:$4 sm:$0xff]  }
 0x411   :  { %v4483_v5 = vadd.f32 -0.5, %v2117_v61  ;;  %v2293_v6 = vpop.permute.xlu1 %2292  ;;  %v2342_v32 = vadd.f32 %v2334_v58, %v2282_v7  ;;  %v5438_v53 = vld [vmem:[#allocation8 + $0x434] ss:$28 sps:$4 sm:$0xff]   ;;  %v5433_v54 = vld [vmem:[#allocation8 + $0x428] ss:$28 sps:$4 sm:$0xff]  }
 0x412   :  { %v2335_v12 = vmul.f32 %v2318_v18, %v2293_v6  ;;  %v2336_v19 = vmul.f32 %v2322_v34, %v2293_v6  ;;  %v2337_v22 = vmul.f32 %v2326_v0, %v2293_v6  ;;  %v2338_v20 = vmul.f32 %v2330_v42, %v2293_v6  ;;  %v5418_v42 = vld [vmem:[#allocation8 + $0x388] ss:$28 sps:$4 sm:$0xff]   ;;  %v5436_v59 = vld [vmem:[#allocation8 + $0x430] ss:$28 sps:$4 sm:$0xff]   ;;  %v5447_v2 = vld [vmem:[#allocation8 + $0x49c] ss:$28 sps:$4 sm:$0xff]  }
 0x413   :  { %2123 = vrot.lane.b32.xlu0 %v4483_v5, %s5831_s5  ;;  %v2347_v33 = vmax.f32 %v2339_v8, 0.0  ;;  %v2348_v35 = vmax.f32 %v2340_v10, 0.0  ;;  %v2349_v37 = vmax.f32 %v2341_v4, 0.0  ;;  %v2350_v44 = vmax.f32 %v2342_v32, 0.0  ;;  %v5444_v61 = vld [vmem:[#allocation8 + $0x46c] ss:$28 sps:$4 sm:$0xff]  }
 0x414   :  { %v2343_v27 = vadd.f32 %v2335_v12, %v2283_v25  ;;  %v2344_v62 = vadd.f32 %v2336_v19, %v2284_v9  ;;  %v2345_v29 = vadd.f32 %v2337_v22, %v2285_v63  ;;  %v2346_v30 = vadd.f32 %v2338_v20, %v2286_v11  ;;  %v5439_v63 = vld [vmem:[#allocation8 + $0x460] ss:$28 sps:$4 sm:$0xff]   ;;  %v5442_v1 = vld [vmem:[#allocation8 + $0x468] ss:$28 sps:$4 sm:$0xff]   ;;  %v5445_v4 = vld [vmem:[#allocation8 + $0x498] ss:$28 sps:$4 sm:$0xff]  }
 0x415   :  { %v2112_v31 = vpop.permute.xlu1 %2111  ;;  %v5448_v57 = vld [vmem:[#allocation8 + $0x4a0] ss:$28 sps:$4 sm:$0xff]   ;;  %v5453_v5 = vld [vmem:[#allocation8 + $0x4d4] ss:$28 sps:$4 sm:$0xff]   ;;  %v5459_v8 = vld [vmem:[#allocation8 + $0x50c] ss:$28 sps:$4 sm:$0xff]  }
 0x416   :  { %v2116_v36 = vadd.f32 %v2112_v31, %v2104_v23  ;;  %v2351_v18 = vmax.f32 %v2343_v27, 0.0  ;;  %v2352_v34 = vmax.f32 %v2344_v62, 0.0  ;;  %v2353_v0 = vmax.f32 %v2345_v29, 0.0  ;;  %v5456_v58 = vld [vmem:[#allocation8 + $0x4dc] ss:$28 sps:$4 sm:$0xff]  }
 0x417   :  { %v2354_v38 = vmax.f32 %v2346_v30, 0.0  ;;  %v5451_v25 = vld [vmem:[#allocation8 + $0x4d0] ss:$28 sps:$4 sm:$0xff]   ;;  %v5454_v6 = vld [vmem:[#allocation8 + $0x4d8] ss:$28 sps:$4 sm:$0xff]  }
 0x418   :  { %v2118_v39 = vsub.f32 %v2116_v36, %v6016_v16  ;;  %v6091_v40 = vpack.c.bf16 %v2351_v18, %v2347_v33  ;;  %v6093_v41 = vpack.c.bf16 %v2352_v34, %v2348_v35  ;;  %v6095_v43 = vpack.c.bf16 %v2353_v0, %v2349_v37  ;;  %v5462_v10 = vld [vmem:[#allocation8 + $0x514] ss:$28 sps:$4 sm:$0xff]   ;;  %v5457_v9 = vld [vmem:[#allocation8 + $0x508] ss:$28 sps:$4 sm:$0xff]   ;;  %v5463_v22 = vld [vmem:[#allocation8 + $0x540] ss:$28 sps:$4 sm:$0xff]  }
 0x419   :  { %v6101_v16 = vpack.c.bf16 %v2354_v38, %v2350_v44  ;;  %v5460_v11 = vld [vmem:[#allocation8 + $0x510] ss:$28 sps:$4 sm:$0xff]   ;;  %v5465_v12 = vld [vmem:[#allocation8 + $0x544] ss:$28 sps:$4 sm:$0xff]   ;;  %v5471_v7 = vld [vmem:[#allocation8 + $0x57c] ss:$28 sps:$4 sm:$0xff]  }
 0x41a   :  { %v4484_v45 = vadd.f32 -0.5, %v2118_v39  ;;  %3836 = vmatprep.mubr.bf16.mxu0 %v6093_v41  ;;  %3922 = vmatprep.mubr.bf16.mxu1 %v6093_v41  ;;  %v5468_v19 = vld [vmem:[#allocation8 + $0x54c] ss:$28 sps:$4 sm:$0xff]   ;;  %v5474_v23 = vld [vmem:[#allocation8 + $0x584] ss:$28 sps:$4 sm:$0xff]  }
 0x41b   :  { %3837 = vmatmul.mubr.bf16.vlgmr.msra.gmra.mrb[8].mxu0 %v6091_v40  ;;  %3923 = vmatmul.mubr.bf16.vlgmr.msra.gmra.mrb[12].mxu1 %v6091_v40  ;;  %v5466_v20 = vld [vmem:[#allocation8 + $0x548] ss:$28 sps:$4 sm:$0xff]   ;;  %v5469_v27 = vld [vmem:[#allocation8 + $0x578] ss:$28 sps:$4 sm:$0xff]   ;;  %v5472_v62 = vld [vmem:[#allocation8 + $0x580] ss:$28 sps:$4 sm:$0xff]  }
 0x41c   :  { %3848 = vmatpush1.bf16.msra.mxu0 %v5415_v24  ;;  %3934 = vmatpush1.bf16.msra.mxu1 %v5418_v42  ;;  %v5477_v29 = vld [vmem:[#allocation8 + $0x5b4] ss:$28 sps:$4 sm:$0xff]   ;;  %v5480_v30 = vld [vmem:[#allocation8 + $0x5bc] ss:$28 sps:$4 sm:$0xff]   ;;  %v5483_v33 = vld [vmem:[#allocation8 + $0x5ec] ss:$28 sps:$4 sm:$0xff]  }
 0x41d   :  { %3879 = vmatprep.mubr.bf16.mxu0 %v6101_v16  ;;  %3965 = vmatprep.mubr.bf16.mxu1 %v6101_v16  ;;  %v5475_v31 = vld [vmem:[#allocation8 + $0x5b0] ss:$28 sps:$4 sm:$0xff]   ;;  %v5478_v32 = vld [vmem:[#allocation8 + $0x5b8] ss:$28 sps:$4 sm:$0xff]   ;;  %v5481_v36 = vld [vmem:[#allocation8 + $0x5e8] ss:$28 sps:$4 sm:$0xff]  }
 0x41e   :  { %2125 = vrot.lane.b32.xlu1 %v4484_v45, %s5831_s5  ;;  %3849 = vmatprep.subr.bf16.mxu0 %v5423_v21  ;;  %v5486_v35 = vld [vmem:[#allocation8 + $0x5f4] ss:$28 sps:$4 sm:$0xff]   ;;  %v5489_v18 = vld [vmem:[#allocation8 + $0x624] ss:$28 sps:$4 sm:$0xff]   ;;  %v5492_v34 = vld [vmem:[#allocation8 + $0x62c] ss:$28 sps:$4 sm:$0xff]  }
 0x41f   :  { %3935 = vmatprep.subr.bf16.mxu1 %v5426_v46  ;;  %v5484_v37 = vld [vmem:[#allocation8 + $0x5f0] ss:$28 sps:$4 sm:$0xff]   ;;  %v5487_v0 = vld [vmem:[#allocation8 + $0x620] ss:$28 sps:$4 sm:$0xff]   ;;  %v5490_v38 = vld [vmem:[#allocation8 + $0x628] ss:$28 sps:$4 sm:$0xff]  }
 0x420   :  { %3850 = vmatpush1.bf16.msra.mxu0 %v5421_v14  ;;  %3936 = vmatpush1.bf16.msra.mxu1 %v5424_v15  ;;  %v5495_v39 = vld [vmem:[#allocation8 + $0x65c] ss:$28 sps:$4 sm:$0xff]   ;;  %v5498_v24 = vld [vmem:[#allocation8 + $0x664] ss:$28 sps:$4 sm:$0xff]   ;;  %v5501_v45 = vld [vmem:[#allocation8 + $0x694] ss:$28 sps:$4 sm:$0xff]  }
 0x421   :  { %3851 = vmatprep.subr.bf16.mxu0 %v5429_v49  ;;  %3937 = vmatprep.subr.bf16.mxu1 %v5432_v17  ;;  %v5493_v42 = vld [vmem:[#allocation8 + $0x658] ss:$28 sps:$4 sm:$0xff]   ;;  %v5496_v44 = vld [vmem:[#allocation8 + $0x660] ss:$28 sps:$4 sm:$0xff]   ;;  %v5499_v46 = vld [vmem:[#allocation8 + $0x690] ss:$28 sps:$4 sm:$0xff]  }
 0x422   :  { %v5504_v21 = vld [vmem:[#allocation8 + $0x69c] ss:$28 sps:$4 sm:$0xff]   ;;  %v5507_v15 = vld [vmem:[#allocation8 + $0x6cc] ss:$28 sps:$4 sm:$0xff]   ;;  %v5510_v49 = vld [vmem:[#allocation8 + $0x6d4] ss:$28 sps:$4 sm:$0xff]  }
 0x423   :  { %v5502_v14 = vld [vmem:[#allocation8 + $0x698] ss:$28 sps:$4 sm:$0xff]   ;;  %v5505_v17 = vld [vmem:[#allocation8 + $0x6c8] ss:$28 sps:$4 sm:$0xff]  }
 0x424   :  { %3852 = vmatpush1.bf16.msra.mxu0 %v5427_v50  ;;  %3938 = vmatpush1.bf16.msra.mxu1 %v5430_v51  ;;  %v5508_v50 = vld [vmem:[#allocation8 + $0x6d0] ss:$28 sps:$4 sm:$0xff]  }
 0x425   :  { %3853 = vmatprep.subr.bf16.mxu0 %v5435_v52  ;;  %3939 = vmatprep.subr.bf16.mxu1 %v5438_v53  ;;  %v5513_v51 = vld [vmem:[#allocation8 + $0x14] ss:$28 sps:$4 sm:$0xff]  }
 0x426   :  { %v5514_v52 = vld [vmem:[#allocation8 + $0x1d8] ss:$28 sps:$4 sm:$0xff]   ;;  %v5511_v53 = vld [vmem:[#allocation8 + $0x10] ss:$28 sps:$4 sm:$0xff]  }
 0x428   :  { %3854 = vmatpush1.bf16.msra.mxu0 %v5433_v54  ;;  %3940 = vmatpush1.bf16.msra.mxu1 %v5436_v59  ;;  %v5515_v54 = vld [vmem:[#allocation8 + $0x18] ss:$28 sps:$4 sm:$0xff]   ;;  %v5518_v59 = vld [vmem:[#allocation8 + $0x4c] ss:$28 sps:$4 sm:$0xff]  }
 0x429   :  { %3855 = vmatprep.subr.bf16.mxu0 %v5441_v60  ;;  %3941 = vmatprep.subr.bf16.mxu1 %v5444_v61  ;;  %v5519_v60 = vld [vmem:[#allocation8 + $0x210] ss:$28 sps:$4 sm:$0xff]   ;;  %v5516_v61 = vld [vmem:[#allocation8 + $0x48] ss:$28 sps:$4 sm:$0xff]  }
 0x42c   :  { %3856 = vmatpush1.bf16.msra.mxu0 %v5439_v63  ;;  %3942 = vmatpush1.bf16.msra.mxu1 %v5442_v1  ;;  %v5520_v63 = vld [vmem:[#allocation8 + $0x50] ss:$28 sps:$4 sm:$0xff]   ;;  %v5523_v1 = vld [vmem:[#allocation8 + $0x84] ss:$28 sps:$4 sm:$0xff]  }
 0x42d   :  { %3857 = vmatprep.subr.bf16.mxu0 %v5447_v2  ;;  %3943 = vmatprep.subr.bf16.mxu1 %v5450_v3  ;;  %v5524_v2 = vld [vmem:[#allocation8 + $0x248] ss:$28 sps:$4 sm:$0xff]   ;;  %v5521_v3 = vld [vmem:[#allocation8 + $0x80] ss:$28 sps:$4 sm:$0xff]  }
 0x430   :  { %3858 = vmatpush1.bf16.msra.mxu0 %v5445_v4  ;;  %3944 = vmatpush1.bf16.msra.mxu1 %v5448_v57  ;;  %v5525_v4 = vld [vmem:[#allocation8 + $0x88] ss:$28 sps:$4 sm:$0xff]   ;;  %v5528_v57 = vld [vmem:[#allocation8 + $0xbc] ss:$28 sps:$4 sm:$0xff]  }
 0x431   :  { %3859 = vmatprep.subr.bf16.mxu0 %v5453_v5  ;;  %3945 = vmatprep.subr.bf16.mxu1 %v5456_v58  ;;  %v5529_v5 = vld [vmem:[#allocation8 + $0x280] ss:$28 sps:$4 sm:$0xff]   ;;  %v5526_v58 = vld [vmem:[#allocation8 + $0xb8] ss:$28 sps:$4 sm:$0xff]  }
 0x434   :  { %3860 = vmatpush1.bf16.msra.mxu0 %v5451_v25  ;;  %3946 = vmatpush1.bf16.msra.mxu1 %v5454_v6  ;;  %v5530_v25 = vld [vmem:[#allocation8 + $0xc0] ss:$28 sps:$4 sm:$0xff]   ;;  %v5533_v6 = vld [vmem:[#allocation8 + $0xf4] ss:$28 sps:$4 sm:$0xff]  }
 0x435   :  { %3861 = vmatprep.subr.bf16.mxu0 %v5459_v8  ;;  %3947 = vmatprep.subr.bf16.mxu1 %v5462_v10  ;;  %v5531_v8 = vld [vmem:[#allocation8 + $0xf0] ss:$28 sps:$4 sm:$0xff]   ;;  %v5535_v10 = vld [vmem:[#allocation8 + $0xf8] ss:$28 sps:$4 sm:$0xff]  }
 0x438   :  { %3862 = vmatpush1.bf16.msra.mxu0 %v5457_v9  ;;  %3948 = vmatpush1.bf16.msra.mxu1 %v5460_v11  ;;  %v5538_v9 = vld [vmem:[#allocation8 + $0x12c] ss:$28 sps:$4 sm:$0xff]  }
 0x439   :  { %3863 = vmatprep.subr.bf16.mxu0 %v5465_v12  ;;  %3949 = vmatprep.subr.bf16.mxu1 %v5468_v19  ;;  %v5539_v11 = vld [vmem:[#allocation8 + $0x2f0] ss:$28 sps:$4 sm:$0xff]   ;;  %v5536_v12 = vld [vmem:[#allocation8 + $0x128] ss:$28 sps:$4 sm:$0xff]  }
 0x43a   :  { %v5540_v19 = vld [vmem:[#allocation8 + $0x130] ss:$28 sps:$4 sm:$0xff]  }
 0x43c   :  { %3864 = vmatpush1.bf16.msra.mxu0 %v5463_v22  ;;  %3950 = vmatpush1.bf16.msra.mxu1 %v5466_v20  ;;  %v5543_v22 = vld [vmem:[#allocation8 + $0x164] ss:$28 sps:$4 sm:$0xff]  }
 0x43d   :  { %3865 = vmatprep.subr.bf16.mxu0 %v5471_v7  ;;  %3951 = vmatprep.subr.bf16.mxu1 %v5474_v23  ;;  %v5544_v20 = vld [vmem:[#allocation8 + $0x328] ss:$28 sps:$4 sm:$0xff]   ;;  %v5541_v7 = vld [vmem:[#allocation8 + $0x160] ss:$28 sps:$4 sm:$0xff]  }
 0x43e   :  { %v5545_v23 = vld [vmem:[#allocation8 + $0x168] ss:$28 sps:$4 sm:$0xff]  }
 0x440   :  { %3866 = vmatpush1.bf16.msra.mxu0 %v5469_v27  ;;  %3952 = vmatpush1.bf16.msra.mxu1 %v5472_v62  ;;  %v5548_v27 = vld [vmem:[#allocation8 + $0x19c] ss:$28 sps:$4 sm:$0xff]  }
 0x441   :  { %3867 = vmatprep.subr.bf16.mxu0 %v5477_v29  ;;  %3953 = vmatprep.subr.bf16.mxu1 %v5480_v30  ;;  %v5549_v62 = vld [vmem:[#allocation8 + $0x360] ss:$28 sps:$4 sm:$0xff]   ;;  %v5546_v29 = vld [vmem:[#allocation8 + $0x198] ss:$28 sps:$4 sm:$0xff]  }
 0x442   :  { %v5550_v30 = vld [vmem:[#allocation8 + $0x1a0] ss:$28 sps:$4 sm:$0xff]  }
 0x444   :  { %3868 = vmatpush1.bf16.msra.mxu0 %v5475_v31  ;;  %3954 = vmatpush1.bf16.msra.mxu1 %v5478_v32  ;;  %v5553_v31 = vld [vmem:[#allocation8 + $0x1d4] ss:$28 sps:$4 sm:$0xff]  }
 0x445   :  { %3869 = vmatprep.subr.bf16.mxu0 %v5483_v33  ;;  %3955 = vmatprep.subr.bf16.mxu1 %v5486_v35  ;;  %v5554_v32 = vld [vmem:[#allocation8 + $0x558] ss:$28 sps:$4 sm:$0xff]   ;;  %v5551_v33 = vld [vmem:[#allocation8 + $0x1d0] ss:$28 sps:$4 sm:$0xff]  }
 0x446   :  { %v5555_v35 = vld [vmem:[#allocation8 + $0x398] ss:$28 sps:$4 sm:$0xff]  }
 0x448   :  { %3870 = vmatpush1.bf16.msra.mxu0 %v5481_v36  ;;  %3956 = vmatpush1.bf16.msra.mxu1 %v5484_v37  ;;  %v5558_v36 = vld [vmem:[#allocation8 + $0x20c] ss:$28 sps:$4 sm:$0xff]  }
 0x449   :  { %3871 = vmatprep.subr.bf16.mxu0 %v5489_v18  ;;  %3957 = vmatprep.subr.bf16.mxu1 %v5492_v34  ;;  %v5559_v37 = vld [vmem:[#allocation8 + $0x590] ss:$28 sps:$4 sm:$0xff]   ;;  %v5556_v18 = vld [vmem:[#allocation8 + $0x208] ss:$28 sps:$4 sm:$0xff]  }
 0x44a   :  { %v5560_v34 = vld [vmem:[#allocation8 + $0x3d0] ss:$28 sps:$4 sm:$0xff]  }
 0x44c   :  { %3872 = vmatpush1.bf16.msra.mxu0 %v5487_v0  ;;  %3958 = vmatpush1.bf16.msra.mxu1 %v5490_v38  ;;  %v5563_v0 = vld [vmem:[#allocation8 + $0x244] ss:$28 sps:$4 sm:$0xff]  }
 0x44d   :  { %3873 = vmatprep.subr.bf16.mxu0 %v5495_v39  ;;  %3959 = vmatprep.subr.bf16.mxu1 %v5498_v24  ;;  %v5564_v38 = vld [vmem:[#allocation8 + $0x5c8] ss:$28 sps:$4 sm:$0xff]   ;;  %v5561_v39 = vld [vmem:[#allocation8 + $0x240] ss:$28 sps:$4 sm:$0xff]  }
 0x44e   :  { %v5565_v24 = vld [vmem:[#allocation8 + $0x408] ss:$28 sps:$4 sm:$0xff]  }
 0x450   :  { %3874 = vmatpush1.bf16.msra.mxu0 %v5493_v42  ;;  %3960 = vmatpush1.bf16.msra.mxu1 %v5496_v44  ;;  %v5568_v42 = vld [vmem:[#allocation8 + $0x27c] ss:$28 sps:$4 sm:$0xff]  }
 0x451   :  { %3875 = vmatprep.subr.bf16.mxu0 %v5501_v45  ;;  %3961 = vmatprep.subr.bf16.mxu1 %v5504_v21  ;;  %v5569_v44 = vld [vmem:[#allocation8 + $0x600] ss:$28 sps:$4 sm:$0xff]   ;;  %v5566_v21 = vld [vmem:[#allocation8 + $0x278] ss:$28 sps:$4 sm:$0xff]  }
 0x454   :  { %3876 = vmatpush1.bf16.msra.mxu0 %v5499_v46  ;;  %3962 = vmatpush1.bf16.msra.mxu1 %v5502_v14  ;;  %v5570_v14 = vld [vmem:[#allocation8 + $0x440] ss:$28 sps:$4 sm:$0xff]  }
 0x455   :  { %3877 = vmatprep.subr.bf16.mxu0 %v5507_v15  ;;  %3963 = vmatprep.subr.bf16.mxu1 %v5510_v49  ;;  %v5573_v15 = vld [vmem:[#allocation8 + $0x2b4] ss:$28 sps:$4 sm:$0xff]  }
 0x456   :  { %v5574_v49 = vld [vmem:[#allocation8 + $0x638] ss:$28 sps:$4 sm:$0xff]  }
 0x458   :  { %3878 = vmatpush1.bf16.msra.mxu0 %v5505_v17  ;;  %3964 = vmatpush1.bf16.msra.mxu1 %v5508_v50  ;;  %v5571_v17 = vld [vmem:[#allocation8 + $0x2b0] ss:$28 sps:$4 sm:$0xff]   ;;  %v5575_v50 = vld [vmem:[#allocation8 + $0x478] ss:$28 sps:$4 sm:$0xff]  }
 0x459   :  { %3976 = vmatprep.subr.bf16.mxu0 %v5513_v51  ;;  %4785 = vmatprep.subr.bf16.mxu1 %v5514_v52  ;;  %v5578_v51 = vld [vmem:[#allocation8 + $0x2ec] ss:$28 sps:$4 sm:$0xff]  }
 0x45a   :  { %v5579_v52 = vld [vmem:[#allocation8 + $0x670] ss:$28 sps:$4 sm:$0xff]  }
 0x45b   :  { %3880 = vmatmul.mubr.bf16.vlgmr.msra.gmra.mrb[8].mxu0 %v6095_v43  ;;  %3966 = vmatmul.mubr.bf16.vlgmr.msra.gmra.mrb[12].mxu1 %v6095_v43 }
 0x45c   :  { %3977 = vmatpush1.bf16.msra.mxu0 %v5511_v53  ;;  %4008 = vmatprep.mubr.bf16.mxu0 %v6093_v41  ;;  %v5576_v53 = vld [vmem:[#allocation8 + $0x2e8] ss:$28 sps:$4 sm:$0xff]  }
 0x45d   :  { %4786 = vmatpush3.bf16.msra.mxu1 %v5515_v54  ;;  %4094 = vmatprep.mubr.bf16.mxu1 %v6093_v41  ;;  %v5534_v41 = vld [vmem:[#allocation8 + $0x2b8] ss:$28 sps:$4 sm:$0xff]   ;;  %v5580_v54 = vld [vmem:[#allocation8 + $0x4b0] ss:$28 sps:$4 sm:$0xff]  }
 0x45e   :  { %3978 = vmatprep.subr.bf16.mxu0 %v5518_v59  ;;  %4787 = vmatprep.subr.bf16.mxu1 %v5519_v60  ;;  %v5583_v59 = vld [vmem:[#allocation8 + $0x324] ss:$28 sps:$4 sm:$0xff]  }
 0x45f   :  { %v5584_v60 = vld [vmem:[#allocation8 + $0x6a8] ss:$28 sps:$4 sm:$0xff]  }
 0x460   :  { %3979 = vmatpush1.bf16.msra.mxu0 %v5516_v61 }
 0x461   :  { %4788 = vmatpush3.bf16.msra.mxu1 %v5520_v63  ;;  %3980 = vmatprep.subr.bf16.mxu0 %v5523_v1  ;;  %v5581_v63 = vld [vmem:[#allocation8 + $0x320] ss:$28 sps:$4 sm:$0xff]  }
 0x462   :  { %4789 = vmatprep.subr.bf16.mxu1 %v5524_v2  ;;  %v5585_v2 = vld [vmem:[#allocation8 + $0x4e8] ss:$28 sps:$4 sm:$0xff]  }
 0x464   :  { %3981 = vmatpush1.bf16.msra.mxu0 %v5521_v3  ;;  %v5588_v3 = vld [vmem:[#allocation8 + $0x35c] ss:$28 sps:$4 sm:$0xff]  }
 0x465   :  { %4790 = vmatpush3.bf16.msra.mxu1 %v5525_v4  ;;  %3982 = vmatprep.subr.bf16.mxu0 %v5528_v57  ;;  %v5589_v4 = vld [vmem:[#allocation8 + $0x6e0] ss:$28 sps:$4 sm:$0xff]   ;;  %v5586_v57 = vld [vmem:[#allocation8 + $0x358] ss:$28 sps:$4 sm:$0xff]  }
 0x466   :  { %4791 = vmatprep.subr.bf16.mxu1 %v5529_v5  ;;  %v5590_v5 = vld [vmem:[#allocation8 + $0x520] ss:$28 sps:$4 sm:$0xff]  }
 0x468   :  { %3983 = vmatpush1.bf16.msra.mxu0 %v5526_v58  ;;  %v5593_v58 = vld [vmem:[#allocation8 + $0x394] ss:$28 sps:$4 sm:$0xff]  }
 0x469   :  { %4792 = vmatpush3.bf16.msra.mxu1 %v5530_v25  ;;  %3984 = vmatprep.subr.bf16.mxu0 %v5533_v6  ;;  %v5591_v25 = vld [vmem:[#allocation8 + $0x390] ss:$28 sps:$4 sm:$0xff]  }
 0x46a   :  { %4793 = vmatprep.subr.bf16.mxu1 %v5534_v41  ;;  %v5596_v6 = vld [vmem:[#allocation8 + $0x3cc] ss:$28 sps:$4 sm:$0xff]  }
 0x46b   :  { %v5594_v41 = vld [vmem:[#allocation8 + $0x3c8] ss:$28 sps:$4 sm:$0xff]  }
 0x46c   :  { %3985 = vmatpush1.bf16.msra.mxu0 %v5531_v8  ;;  %v5599_v8 = vld [vmem:[#allocation8 + $0x404] ss:$28 sps:$4 sm:$0xff]  }
 0x46d   :  { %4794 = vmatpush3.bf16.msra.mxu1 %v5535_v10  ;;  %3986 = vmatprep.subr.bf16.mxu0 %v5538_v9  ;;  %v5597_v10 = vld [vmem:[#allocation8 + $0x400] ss:$28 sps:$4 sm:$0xff]  }
 0x46e   :  { %4795 = vmatprep.subr.bf16.mxu1 %v5539_v11  ;;  %v5602_v9 = vld [vmem:[#allocation8 + $0x43c] ss:$28 sps:$4 sm:$0xff]  }
 0x46f   :  { %v5600_v11 = vld [vmem:[#allocation8 + $0x438] ss:$28 sps:$4 sm:$0xff]  }
 0x470   :  { %3987 = vmatpush1.bf16.msra.mxu0 %v5536_v12  ;;  %v5605_v12 = vld [vmem:[#allocation8 + $0x474] ss:$28 sps:$4 sm:$0xff]  }
 0x471   :  { %4796 = vmatpush3.bf16.msra.mxu1 %v5540_v19  ;;  %3988 = vmatprep.subr.bf16.mxu0 %v5543_v22  ;;  %v5603_v19 = vld [vmem:[#allocation8 + $0x470] ss:$28 sps:$4 sm:$0xff]   ;;  %v5606_v22 = vld [vmem:[#allocation8 + $0x4a8] ss:$28 sps:$4 sm:$0xff]  }
 0x472   :  { %4797 = vmatprep.subr.bf16.mxu1 %v5544_v20  ;;  %v5611_v20 = vld [vmem:[#allocation8 + $0x4e4] ss:$28 sps:$4 sm:$0xff]  }
 0x474   :  { %3989 = vmatpush1.bf16.msra.mxu0 %v5541_v7  ;;  %v5614_v7 = vld [vmem:[#allocation8 + $0x51c] ss:$28 sps:$4 sm:$0xff]  }
 0x475   :  { %4798 = vmatpush3.bf16.msra.mxu1 %v5545_v23  ;;  %3990 = vmatprep.subr.bf16.mxu0 %v5548_v27  ;;  %v5612_v23 = vld [vmem:[#allocation8 + $0x518] ss:$28 sps:$4 sm:$0xff]  }
 0x476   :  { %4799 = vmatprep.subr.bf16.mxu1 %v5549_v62  ;;  %v5617_v27 = vld [vmem:[#allocation8 + $0x554] ss:$28 sps:$4 sm:$0xff]  }
 0x477   :  { %v5615_v62 = vld [vmem:[#allocation8 + $0x550] ss:$28 sps:$4 sm:$0xff]  }
 0x478   :  { %3991 = vmatpush1.bf16.msra.mxu0 %v5546_v29  ;;  %v5620_v29 = vld [vmem:[#allocation8 + $0x58c] ss:$28 sps:$4 sm:$0xff]  }
 0x479   :  { %4800 = vmatpush3.bf16.msra.mxu1 %v5550_v30  ;;  %3992 = vmatprep.subr.bf16.mxu0 %v5553_v31  ;;  %v5618_v30 = vld [vmem:[#allocation8 + $0x588] ss:$28 sps:$4 sm:$0xff]  }
 0x47a   :  { %4807 = vmatprep.subr.bf16.mxu1 %v5554_v32  ;;  %v5623_v31 = vld [vmem:[#allocation8 + $0x5c4] ss:$28 sps:$4 sm:$0xff]  }
 0x47b   :  { %v5621_v32 = vld [vmem:[#allocation8 + $0x5c0] ss:$28 sps:$4 sm:$0xff]  }
 0x47c   :  { %4095 = vmatmul.mubr.bf16.vlgmr.msra.gmra.mrb[16].mxu1 %v6091_v40  ;;  %3993 = vmatpush1.bf16.msra.mxu0 %v5551_v33  ;;  %v5626_v33 = vld [vmem:[#allocation8 + $0x5fc] ss:$28 sps:$4 sm:$0xff]  }
 0x47d   :  { %4808 = vmatpush3.bf16.msra.mxu1 %v5555_v35  ;;  %4135 = vmatprep.mubr.bf16.mxu1 %v6101_v16  ;;  %v5624_v35 = vld [vmem:[#allocation8 + $0x5f8] ss:$28 sps:$4 sm:$0xff]  }
 0x47e   :  { %3994 = vmatprep.subr.bf16.mxu0 %v5558_v36  ;;  %4809 = vmatprep.subr.bf16.mxu1 %v5559_v37  ;;  %v5629_v36 = vld [vmem:[#allocation8 + $0x634] ss:$28 sps:$4 sm:$0xff]  }
 0x47f   :  { %v5627_v37 = vld [vmem:[#allocation8 + $0x630] ss:$28 sps:$4 sm:$0xff]  }
 0x480   :  { %3995 = vmatpush1.bf16.msra.mxu0 %v5556_v18  ;;  %v5632_v18 = vld [vmem:[#allocation8 + $0x66c] ss:$28 sps:$4 sm:$0xff]  }
 0x481   :  { %4810 = vmatpush3.bf16.msra.mxu1 %v5560_v34  ;;  %3996 = vmatprep.subr.bf16.mxu0 %v5563_v0  ;;  %v5630_v34 = vld [vmem:[#allocation8 + $0x668] ss:$28 sps:$4 sm:$0xff]  }
 0x482   :  { %4811 = vmatprep.subr.bf16.mxu1 %v5564_v38  ;;  %v5635_v0 = vld [vmem:[#allocation8 + $0x6a4] ss:$28 sps:$4 sm:$0xff]  }
 0x483   :  { %v5633_v38 = vld [vmem:[#allocation8 + $0x6a0] ss:$28 sps:$4 sm:$0xff]  }
 0x484   :  { %3997 = vmatpush1.bf16.msra.mxu0 %v5561_v39  ;;  %v5638_v39 = vld [vmem:[#allocation8 + $0x6dc] ss:$28 sps:$4 sm:$0xff]  }
 0x485   :  { %v2124_v45 = vpop.permute.xlu0 %2123  ;;  %4812 = vmatpush3.bf16.msra.mxu1 %v5565_v24  ;;  %3998 = vmatprep.subr.bf16.mxu0 %v5568_v42  ;;  %v5636_v24 = vld [vmem:[#allocation8 + $0x6d8] ss:$28 sps:$4 sm:$0xff]  }
 0x486   :  { %v2130_v46 = vsel %vm2129_vm0, %v2124_v45, 0.0  ;;  %4813 = vmatprep.subr.bf16.mxu1 %v5569_v44  ;;  %v6127_v45 = vld [vmem:[%s6164_s9] sm:$0xff]  ;;  %s5833_s9 = smov [#allocation10]  }
 0x487   :  { %2131 = vadd.xlane.f32.xlu0 %v2130_v46  ;;  %v2624_v46 = vrot.slane %v6127_v45, %v5994_v28 }
 0x488   :  { %3999 = vmatpush1.bf16.msra.mxu0 %v5566_v21  ;;  %v2620_v21 = vrot.slane %v6127_v45, %v5988_v26 }
 0x489   :  { %4814 = vmatpush3.bf16.msra.mxu1 %v5570_v14  ;;  %4000 = vmatprep.subr.bf16.mxu0 %v5573_v15  ;;  %v2632_v14 = vrot.slane %v6127_v45, %v6006_v13 }
 0x48a   :  { %4815 = vmatprep.subr.bf16.mxu1 %v5574_v49 }
 0x48c   :  { %4001 = vmatpush1.bf16.msra.mxu0 %v5571_v17 }
 0x48d   :  { %4816 = vmatpush3.bf16.msra.mxu1 %v5575_v50  ;;  %4002 = vmatprep.subr.bf16.mxu0 %v5578_v51 }
 0x48e   :  { %4817 = vmatprep.subr.bf16.mxu1 %v5579_v52 }
 0x490   :  { %v2126_v61 = vpop.permute.xlu1 %2125  ;;  %4003 = vmatpush1.bf16.msra.mxu0 %v5576_v53 }
 0x491   :  { %4818 = vmatpush3.bf16.msra.mxu1 %v5580_v54  ;;  %v2133_v1 = vsel %vm2129_vm0, %v2126_v61, 0.0  ;;  %4004 = vmatprep.subr.bf16.mxu0 %v5583_v59 }
 0x492   :  { %2134 = vadd.xlane.f32.xlu1 %v2133_v1  ;;  %4819 = vmatprep.subr.bf16.mxu1 %v5584_v60 }
 0x494   :  { %4005 = vmatpush1.bf16.msra.mxu0 %v5581_v63 }
 0x495   :  { %4820 = vmatpush3.bf16.msra.mxu1 %v5585_v2  ;;  %4006 = vmatprep.subr.bf16.mxu0 %v5588_v3 }
 0x496   :  { %4821 = vmatprep.subr.bf16.mxu1 %v5589_v4 }
 0x498   :  { %4007 = vmatpush1.bf16.msra.mxu0 %v5586_v57 }
 0x499   :  { %4822 = vmatpush3.bf16.msra.mxu1 %v5590_v5  ;;  %4019 = vmatprep.subr.bf16.mxu0 %v5593_v58 }
 0x49b   :  { %4009 = vmatmul.mubr.bf16.vlgmr.msra.gmra.mrb[12].mxu0 %v6091_v40  ;;  %v5608_v40 = vld [vmem:[#allocation8 + $0x4ac] ss:$28 sps:$4 sm:$0xff]  }
 0x49c   :  { %4136 = vmatmul.mubr.bf16.vlgmr.msra.gmra.mrb[20].mxu1 %v6095_v43  ;;  %4020 = vmatpush1.bf16.msra.mxu0 %v5591_v25 }
 0x49d   :  { %4051 = vmatprep.mubr.bf16.mxu0 %v6101_v16  ;;  %4021 = vmatprep.subr.bf16.mxu0 %v5596_v6  ;;  %v5609_v16 = vld [vmem:[#allocation8 + $0x4e0] ss:$28 sps:$4 sm:$0xff]  }
 0x4a0   :  { %4022 = vmatpush1.bf16.msra.mxu0 %v5594_v41 }
 0x4a1   :  { %4023 = vmatprep.subr.bf16.mxu0 %v5599_v8 }
 0x4a4   :  { %4024 = vmatpush1.bf16.msra.mxu0 %v5597_v10 }
 0x4a5   :  { %4025 = vmatprep.subr.bf16.mxu0 %v5602_v9 }
 0x4a8   :  { %4026 = vmatpush1.bf16.msra.mxu0 %v5600_v11 }
 0x4a9   :  { %4027 = vmatprep.subr.bf16.mxu0 %v5605_v12 }
 0x4ac   :  { %4028 = vmatpush1.bf16.msra.mxu0 %v5603_v19 }
 0x4ad   :  { %4029 = vmatprep.subr.bf16.mxu0 %v5608_v40 }
 0x4b0   :  { %4030 = vmatpush1.bf16.msra.mxu0 %v5606_v22 }
 0x4b1   :  { %4031 = vmatprep.subr.bf16.mxu0 %v5611_v20 }
 0x4b4   :  { %4032 = vmatpush1.bf16.msra.mxu0 %v5609_v16 }
 0x4b5   :  { %4033 = vmatprep.subr.bf16.mxu0 %v5614_v7 }
 0x4b8   :  { %4034 = vmatpush1.bf16.msra.mxu0 %v5612_v23 }
 0x4b9   :  { %4035 = vmatprep.subr.bf16.mxu0 %v5617_v27 }
 0x4bc   :  { %4036 = vmatpush1.bf16.msra.mxu0 %v5615_v62 }
 0x4bd   :  { %4037 = vmatprep.subr.bf16.mxu0 %v5620_v29 }
 0x4c0   :  { %4038 = vmatpush1.bf16.msra.mxu0 %v5618_v30 }
 0x4c1   :  { %4039 = vmatprep.subr.bf16.mxu0 %v5623_v31 }
 0x4c4   :  { %4040 = vmatpush1.bf16.msra.mxu0 %v5621_v32 }
 0x4c5   :  { %4041 = vmatprep.subr.bf16.mxu0 %v5626_v33 }
 0x4c8   :  { %4042 = vmatpush1.bf16.msra.mxu0 %v5624_v35 }
 0x4c9   :  { %4043 = vmatprep.subr.bf16.mxu0 %v5629_v36 }
 0x4cc   :  { %4044 = vmatpush1.bf16.msra.mxu0 %v5627_v37 }
 0x4cd   :  { %4045 = vmatprep.subr.bf16.mxu0 %v5632_v18 }
 0x4d0   :  { %4046 = vmatpush1.bf16.msra.mxu0 %v5630_v34 }
 0x4d1   :  { %4047 = vmatprep.subr.bf16.mxu0 %v5635_v0 }
 0x4d4   :  { %4048 = vmatpush1.bf16.msra.mxu0 %v5633_v38 }
 0x4d5   :  { %4049 = vmatprep.subr.bf16.mxu0 %v5638_v39 }
 0x4d8   :  { %4050 = vmatpush1.bf16.msra.mxu0 %v5636_v24 }
 0x4db   :  { %4052 = vmatmul.mubr.bf16.vlgmr.msra.gmra.mrb[12].mxu0 %v6095_v43  ;;  %v2628_v43 = vrot.slane %v6127_v45, %v6003_v47 }
 0x514   :  { %v2132_v42 = vpop.xlane.xlu0 %2131 }
 0x515   :  { %2137 = vst.msk [vmem:[%s6166_s11] sm:$0xff] %vm2136_vm1, %v2132_v42 }
 0x51f   :  { %v2135_v44 = vpop.xlane.xlu1 %2134 }
 0x520   :  { %2138 = vst.msk [vmem:[%s6166_s11 + $0x8] sm:$0xff] %vm2136_vm1, %v2135_v44  ;;  %s4233_s11 = sshll.u32 %s5833_s9, 4  ;;  %s4234_s11 = int_to_ptr.vmem [resolvable:$true] %s4233_s11 }
 0x521   :  { %s5788_s27 = scalar_lea.vmem %s4234_s11, 1792  ;;  %p5793_p5 = scmp.lt.s32.totalorder %s4234_s11, %s4234_s11 }
 0x522   :  { %p5789_p4 = scmp.ne.s32.totalorder %s4234_s11, %s5788_s27  ;;  %p5794_p6 = scmp.lt.s32.totalorder %s5788_s27, %s5788_s27 }
 0x524   :  { %p5795_p7 = por %p5794_p6, %p5793_p5 }
 0x526   :  { %p5796_p8 = pnand %p5795_p7, %p5789_p4 }
 0x52e   :  { %v3881_v15 = vpop.f32.mrb[8].mxu0  ;;  %v3967_v49 = vpop.f32.mrb[12].mxu1 }
 0x52f   :  { %v4905_v17 = vadd.f32 %v3881_v15, %v2620_v21  ;;  %v4909_v50 = vadd.f32 %v3967_v49, %v2628_v43  ;;  %v3883_v51 = vpop.f32.mrb[9].mxu0  ;;  %v3969_v52 = vpop.f32.mrb[13].mxu1 }
 0x530   :  { %v4906_v53 = vadd.f32 %v3883_v51, %v2624_v46  ;;  %v4910_v54 = vadd.f32 %v3969_v52, %v2632_v14  ;;  %v3885_v59 = vpop.f32.mrb[10].mxu0  ;;  %v3971_v60 = vpop.f32.mrb[14].mxu1 }
 0x531   :  { %v4144_v26 = vsub.f32 0.0, %v4905_v17  ;;  %v4146_v61 = vsub.f32 0.0, %v4909_v50  ;;  %v4907_v63 = vadd.f32 %v3885_v59, %v2620_v21  ;;  %v4911_v47 = vadd.f32 %v3971_v60, %v2628_v43  ;;  %v3887_v1 = vpop.f32.mrb[11].mxu0  ;;  %v3973_v2 = vpop.f32.mrb[15].mxu1 }
 0x532   :  { %v4145_v28 = vsub.f32 0.0, %v4906_v53  ;;  %v4147_v3 = vsub.f32 0.0, %v4910_v54  ;;  %v4908_v4 = vadd.f32 %v3887_v1, %v2624_v46  ;;  %v4912_v13 = vadd.f32 %v3973_v2, %v2632_v14 }
 0x533   :  { %v4158_v57 = vmul.f32 1.442695, %v4144_v26  ;;  %v4162_v5 = vmul.f32 1.442695, %v4146_v61  ;;  %v4151_v58 = vsub.f32 0.0, %v4907_v63  ;;  %v4153_v25 = vsub.f32 0.0, %v4911_v47 }
 0x534   :  { %v4160_v6 = vmul.f32 1.442695, %v4145_v28  ;;  %v4164_v41 = vmul.f32 1.442695, %v4147_v3  ;;  %v4152_v8 = vsub.f32 0.0, %v4908_v4  ;;  %v4154_v10 = vsub.f32 0.0, %v4912_v13 }
 0x535   :  { %5643 = vpow2.f32 %v4158_v57  ;;  %v4172_v9 = vmul.f32 1.442695, %v4151_v58  ;;  %v4176_v11 = vmul.f32 1.442695, %v4153_v25  ;;  %v2644_v17 = vrot.slane %v6127_v45, %v6060_v56 }
 0x536   :  { %5645 = vpow2.f32 %v4162_v5  ;;  %v4174_v12 = vmul.f32 1.442695, %v4152_v8  ;;  %v4178_v19 = vmul.f32 1.442695, %v4154_v10  ;;  %v2636_v58 = vrot.slane %v6127_v45, %v6045_v48 }
 0x537   :  { %5647 = vpow2.f32 %v4160_v6  ;;  %v2640_v25 = vrot.slane %v6127_v45, %v6057_v55 }
 0x538   :  { %5649 = vpow2.f32 %v4164_v41 }
 0x539   :  { %5651 = vpow2.f32 %v4172_v9 }
 0x53a   :  { %5653 = vpow2.f32 %v4176_v11 }
 0x53b   :  { %5655 = vpow2.f32 %v4174_v12 }
 0x53c   :  { %5657 = vpow2.f32 %v4178_v19 }
 0x53f   :  { %v5644_v40 = vpop.eup %5643 }
 0x540   :  { %v5646_v22 = vpop.eup %5645  ;;  %v4186_v20 = vadd.f32 1.0, %v5644_v40 }
 0x541   :  { %v5648_v16 = vpop.eup %5647  ;;  %v4188_v7 = vadd.f32 1.0, %v5646_v22 }
 0x542   :  { %v5650_v23 = vpop.eup %5649  ;;  %5659 = vrcp.f32 %v4186_v20  ;;  %v4187_v27 = vadd.f32 1.0, %v5648_v16 }
 0x543   :  { %v5652_v62 = vpop.eup %5651  ;;  %5661 = vrcp.f32 %v4188_v7  ;;  %v4189_v29 = vadd.f32 1.0, %v5650_v23 }
 0x544   :  { %v5654_v30 = vpop.eup %5653  ;;  %5663 = vrcp.f32 %v4187_v27  ;;  %v4193_v31 = vadd.f32 1.0, %v5652_v62 }
 0x545   :  { %v5656_v32 = vpop.eup %5655  ;;  %5665 = vrcp.f32 %v4189_v29  ;;  %v4195_v33 = vadd.f32 1.0, %v5654_v30 }
 0x546   :  { %v5658_v35 = vpop.eup %5657  ;;  %5667 = vrcp.f32 %v4193_v31  ;;  %v4194_v36 = vadd.f32 1.0, %v5656_v32 }
 0x547   :  { %5669 = vrcp.f32 %v4195_v33  ;;  %v4196_v37 = vadd.f32 1.0, %v5658_v35 }
 0x548   :  { %5671 = vrcp.f32 %v4194_v36 }
 0x549   :  { %5673 = vrcp.f32 %v4196_v37 }
 0x54c   :  { %v5660_v18 = vpop.eup %5659 }
 0x54d   :  { %v5662_v34 = vpop.eup %5661  ;;  %4214 = vst [vmem:[#allocation10] sm:$0xff] %v5660_v18 }
 0x54e   :  { %v5664_v0 = vpop.eup %5663  ;;  %4216 = vst [vmem:[#allocation10 + $0x10] sm:$0xff] %v5662_v34 }
 0x54f   :  { %v5666_v38 = vpop.eup %5665  ;;  %4215 = vst [vmem:[#allocation10 + $0x8] sm:$0xff] %v5664_v0  ;;  %v4801_v39 = vpop.f32.mrb[16].mxu1 }
 0x550   :  { %v5668_v24 = vpop.eup %5667  ;;  %4217 = vst [vmem:[#allocation10 + $0x18] sm:$0xff] %v5666_v38  ;;  %v4802_v42 = vpop.f32.mrb[17].mxu1 }
 0x551   :  { %v5670_v44 = vpop.eup %5669  ;;  %4221 = vst [vmem:[#allocation10 + $0x38] sm:$0xff] %v5668_v24  ;;  %v4803_v21 = vadd.f32 %v4802_v42, %v4801_v39  ;;  %v4804_v43 = vpop.f32.mrb[18].mxu1 }
 0x552   :  { %v5672_v46 = vpop.eup %5671  ;;  %4223 = vst [vmem:[#allocation10 + $0x48] sm:$0xff] %v5670_v44  ;;  %v4805_v14 = vpop.f32.mrb[19].mxu1 }
 0x553   :  { %v5674_v15 = vpop.eup %5673  ;;  %4222 = vst [vmem:[#allocation10 + $0x40] sm:$0xff] %v5672_v46  ;;  %v4806_v49 = vadd.f32 %v4805_v14, %v4804_v43  ;;  %v4097_v52 = vadd.f32 %v4803_v21, %v2644_v17 }
 0x554   :  { %4224 = vst [vmem:[#allocation10 + $0x50] sm:$0xff] %v5674_v15 }
 0x555   :  { %v4100_v60 = vadd.f32 %v4806_v49, %v2644_v17 }
 0x56f   :  { %v4823_v50 = vpop.f32.mrb[20].mxu1 }
 0x570   :  { %v4824_v51 = vpop.f32.mrb[21].mxu1 }
 0x571   :  { %v4825_v53 = vadd.f32 %v4824_v51, %v4823_v50  ;;  %v4826_v54 = vpop.f32.mrb[22].mxu1 }
 0x572   :  { %v4827_v59 = vpop.f32.mrb[23].mxu1 }
 0x573   :  { %v4138_v26 = vadd.f32 %v4825_v53, %v4097_v52  ;;  %v4828_v61 = vadd.f32 %v4827_v59, %v4826_v54 }
 0x575   :  { %v4150_v63 = vsub.f32 0.0, %v4138_v26  ;;  %v4141_v47 = vadd.f32 %v4828_v61, %v4100_v60 }
 0x577   :  { %v4170_v1 = vmul.f32 1.442695, %v4150_v63  ;;  %v4157_v2 = vsub.f32 0.0, %v4141_v47 }
 0x579   :  { %5675 = vpow2.f32 %v4170_v1  ;;  %v4184_v28 = vmul.f32 1.442695, %v4157_v2 }
 0x57b   :  { %5677 = vpow2.f32 %v4184_v28 }
 0x583   :  { %v5676_v3 = vpop.eup %5675 }
 0x584   :  { %v4192_v4 = vadd.f32 1.0, %v5676_v3 }
 0x585   :  { %v5678_v13 = vpop.eup %5677 }
 0x586   :  { %5679 = vrcp.f32 %v4192_v4  ;;  %v4199_v56 = vadd.f32 1.0, %v5678_v13 }
 0x588   :  { %5681 = vrcp.f32 %v4199_v56 }
 0x590   :  { %v5680_v57 = vpop.eup %5679 }
 0x591   :  { %4220 = vst [vmem:[#allocation10 + $0x30] sm:$0xff] %v5680_v57 }
 0x592   :  { %v5682_v5 = vpop.eup %5681 }
 0x593   :  { %4227 = vst [vmem:[#allocation10 + $0x68] sm:$0xff] %v5682_v5 }
 0x5ae   :  { %v4053_v6 = vpop.f32.mrb[12].mxu0 }
 0x5af   :  { %v4913_v41 = vadd.f32 %v4053_v6, %v2636_v58  ;;  %v4055_v8 = vpop.f32.mrb[13].mxu0 }
 0x5b0   :  { %v4914_v10 = vadd.f32 %v4055_v8, %v2640_v25  ;;  %v4057_v9 = vpop.f32.mrb[14].mxu0 }
 0x5b1   :  { %v4148_v11 = vsub.f32 0.0, %v4913_v41  ;;  %v4915_v12 = vadd.f32 %v4057_v9, %v2636_v58  ;;  %v4059_v19 = vpop.f32.mrb[15].mxu0 }
 0x5b2   :  { %v4149_v40 = vsub.f32 0.0, %v4914_v10  ;;  %v4916_v22 = vadd.f32 %v4059_v19, %v2640_v25 }
 0x5b3   :  { %v4166_v20 = vmul.f32 1.442695, %v4148_v11  ;;  %v4155_v16 = vsub.f32 0.0, %v4915_v12 }
 0x5b4   :  { %v4168_v7 = vmul.f32 1.442695, %v4149_v40  ;;  %v4156_v23 = vsub.f32 0.0, %v4916_v22 }
 0x5b5   :  { %5683 = vpow2.f32 %v4166_v20  ;;  %v4180_v27 = vmul.f32 1.442695, %v4155_v16 }
 0x5b6   :  { %5685 = vpow2.f32 %v4168_v7  ;;  %v4182_v48 = vmul.f32 1.442695, %v4156_v23 }
 0x5b7   :  { %5687 = vpow2.f32 %v4180_v27 }
 0x5b8   :  { %5689 = vpow2.f32 %v4182_v48 }
 0x5bf   :  { %v5684_v55 = vpop.eup %5683 }
 0x5c0   :  { %v5686_v45 = vpop.eup %5685  ;;  %v4190_v62 = vadd.f32 1.0, %v5684_v55 }
 0x5c1   :  { %v5688_v29 = vpop.eup %5687  ;;  %v4191_v30 = vadd.f32 1.0, %v5686_v45 }
 0x5c2   :  { %v5690_v31 = vpop.eup %5689  ;;  %5691 = vrcp.f32 %v4190_v62  ;;  %v4197_v32 = vadd.f32 1.0, %v5688_v29 }
 0x5c3   :  { %5693 = vrcp.f32 %v4191_v30  ;;  %v4198_v33 = vadd.f32 1.0, %v5690_v31 }
 0x5c4   :  { %5695 = vrcp.f32 %v4197_v32 }
 0x5c5   :  { %5697 = vrcp.f32 %v4198_v33 }
 0x5cc   :  { %v5692_v35 = vpop.eup %5691 }
 0x5cd   :  { %v5694_v36 = vpop.eup %5693  ;;  %4218 = vst [vmem:[#allocation10 + $0x20] sm:$0xff] %v5692_v35 }
 0x5ce   :  { %v5696_v37 = vpop.eup %5695  ;;  %4219 = vst [vmem:[#allocation10 + $0x28] sm:$0xff] %v5694_v36 }
 0x5cf   :  { %v5698_v18 = vpop.eup %5697  ;;  %4225 = vst [vmem:[#allocation10 + $0x58] sm:$0xff] %v5696_v37 }
 0x5d0   :  { %4226 = vst [vmem:[#allocation10 + $0x60] sm:$0xff] %v5698_v18 }
 0x5d1   :  { %5799 = shalt.err (!%p5796_p8)
}
 0x5d2   :  { %s5800_s30 = scalar_lea.hbm %s6165_s10, 1792 }
 0x5d3   :  { %p5801_p9 = scmp.ne.s32.totalorder %s6165_s10, %s5800_s30  ;;  %p5804_p10 = scmp.lt.u32.totalorder %s5800_s30, %s6165_s10 }
 0x5d5   :  { %p5806_p11 = pnand %p5804_p10, %p5801_p9 }
 0x5d7   :  { %5809 = shalt.err (!%p5806_p11)
}
 0x5d8   :  { %s5834_s18 = smov 896   ;;  %s5835_s12 = smov 56  }
 0x5d9   :  { %4239 = dma.vmem_to_hbm [thread:$0]  %s4234_s11, 1792, %s6165_s10, [#allocation4], %s5834_s18, %s5834_s18, %s5835_s12  }
 0x5da   :  { %5816 = dma.done.wait [#allocation4], 1792  }
 0x5db   :  { %5817 = vsyncadd [#allocation4], 4294965504 }
 0x5dc   :  { %4247 = vsyncpa [#allocation3], 1 }
 0x5dd   :  { %4248 = vsyncpa [#allocation6], 1 }
 0x5de   :  { %4249 = vsyncpa [#allocation9], 1 }
 0x5df   :  { %4250 = vsyncpa [#allocation4], 1 }

</bundles_post_ra>
